<compile_context>
chip_gen: v7x
topology: tpu7x:2x2x1
jax: 0.10.0
libtpu: 0.0.40
codegen_flags: <defaults>
</compile_context>

<pallas_src>
import functools

import jax
import jax.numpy as jnp
from jax import lax
from jax.experimental import pallas as pl
from jax.experimental.pallas import tpu as pltpu


# ----------------------------- helpers ---------------------------------------

def _rup(x, m):
    return ((x + m - 1) // m) * m


def _gru_cell(x_bf16, h, wi, wh, bi, bh, hp):
    """Fused-gate PyTorch GRU cell.

    x_bf16: (B, Ep) bf16     wi: (Ep, 3Hp) bf16    bi: (B, 3Hp) f32 (pre-bcast)
    h:      (B, Hp) f32      wh: (Hp, 3Hp) bf16    bh: (B, 3Hp) f32 (pre-bcast)
    Gate order along 3Hp axis: r, z, n (torch.nn.GRU).
    """
    gi = jnp.dot(x_bf16, wi, preferred_element_type=jnp.float32) + bi
    gh = jnp.dot(h.astype(jnp.bfloat16), wh,
                 preferred_element_type=jnp.float32) + bh
    r = jax.nn.sigmoid(gi[:, :hp] + gh[:, :hp])
    z = jax.nn.sigmoid(gi[:, hp:2 * hp] + gh[:, hp:2 * hp])
    n = jnp.tanh(gi[:, 2 * hp:] + r * gh[:, 2 * hp:])
    return (1.0 - z) * n + z * h


# ----------------------------- kernels ----------------------------------------

def bigru_encoder_kernel(src_ref,
                         wif_ref, whf_ref, bif_ref, bhf_ref,
                         wib_ref, whb_ref, bib_ref, bhb_ref,
                         wmf_ref, wmb_ref, bm_ref,
                         hid_ref):
    """Bidirectional single-layer GRU over (T, B, E) + fused tanh(map_h).

    Emits hidden = tanh([h_fwd | h_bwd] @ W_maph + b_maph), which is exactly
    what RNNModel.encode hands to the decoder (dec_layers == 1).
    """
    t_src, bp, _ = src_ref.shape
    hp = whf_ref.shape[0]

    # Hoist loop-invariant weight loads and bias broadcasts out of the loop.
    wif = wif_ref[...]
    whf = whf_ref[...]
    wib = wib_ref[...]
    whb = whb_ref[...]
    bif = jnp.broadcast_to(bif_ref[...], (bp, 3 * hp))
    bhf = jnp.broadcast_to(bhf_ref[...], (bp, 3 * hp))
    bib = jnp.broadcast_to(bib_ref[...], (bp, 3 * hp))
    bhb = jnp.broadcast_to(bhb_ref[...], (bp, 3 * hp))

    h0 = jnp.zeros((bp, hp), jnp.float32)

    def body(t, carry):
        h_f, h_b = carry
        # forward direction consumes src[t], backward consumes src[T-1-t];
        # interleaving the two cells keeps MXU and VPU both busy.
        h_f = _gru_cell(src_ref[t], h_f, wif, whf, bif, bhf, hp)
        h_b = _gru_cell(src_ref[t_src - 1 - t], h_b, wib, whb, bib, bhb, hp)
        return (h_f, h_b)

    h_f, h_b = lax.fori_loop(0, t_src, body, (h0, h0), unroll=True)

    # Fused map_h: tanh([h_f | h_b] @ W + b), expressed as two matmuls to
    # avoid a lane concat; weight halves correspond to the torch concat order.
    pre = (jnp.dot(h_f.astype(jnp.bfloat16), wmf_ref[...],
                   preferred_element_type=jnp.float32)
           + jnp.dot(h_b.astype(jnp.bfloat16), wmb_ref[...],
                     preferred_element_type=jnp.float32)
           + bm_ref[...])
    hid_ref[...] = jnp.tanh(pre)


def greedy_decode_kernel(hid_ref, emb_ref,
                         wi_ref, wh_ref, bi_ref, bh_ref,
                         wo_ref, bo_ref,
                         out_ref, *, sos, vocab):
    """Entire greedy decode loop fused into one kernel.

    Per step: one-hot embedding gather (MXU), GRU cell, fc_out logits,
    write logits[t], masked argmax -> next token.  Hidden state and the
    current token ride in the fori_loop carry (vregs); all weights are
    loaded into VMEM/vregs once.
    """
    t_out, bp, vp = out_ref.shape
    hp = wh_ref.shape[0]

    emb_tbl = emb_ref[...]                                   # (Vp, Ep) bf16
    wi = wi_ref[...]
    wh = wh_ref[...]
    wo = wo_ref[...]
    bi = jnp.broadcast_to(bi_ref[...], (bp, 3 * hp))
    bh = jnp.broadcast_to(bh_ref[...], (bp, 3 * hp))
    bo = jnp.broadcast_to(bo_ref[...], (bp, vp))

    col = lax.broadcasted_iota(jnp.int32, (bp, vp), 1)
    valid = col < vocab                                      # mask padded vocab

    h0 = hid_ref[...]
    tok0 = jnp.full((bp, 1), sos, jnp.int32)

    def body(t, carry):
        h, tok = carry
        # embedding gather as one-hot matmul (exact, MXU-friendly)
        onehot = jnp.where(col == tok, 1.0, 0.0).astype(jnp.bfloat16)
        x = jnp.dot(onehot, emb_tbl,
                    preferred_element_type=jnp.float32).astype(jnp.bfloat16)
        h = _gru_cell(x, h, wi, wh, bi, bh, hp)
        logits = jnp.dot(h.astype(jnp.bfloat16), wo,
                         preferred_element_type=jnp.float32) + bo
        out_ref[t] = logits
        # greedy next token == topk(1): masked argmax (first max occurrence)
        masked = jnp.where(valid, logits, jnp.float32(-1e30))
        mx = jnp.max(masked, axis=1, keepdims=True)
        tok = jnp.min(jnp.where(masked == mx, col, vp),
                      axis=1, keepdims=True).astype(jnp.int32)
        return (h, tok)

    lax.fori_loop(0, t_out, body, (h0, tok0), unroll=True)


# ----------------------------- wrappers ---------------------------------------

_VMEM = pl.BlockSpec(memory_space=pltpu.MemorySpace.VMEM)


def rnn_model_forward(pp, src, src_len, tgt, sos, teacher_forcing_ratio=0.5):
    """Mirrors RNNModel.forward (eval mode, config.model == 'GRU')."""
    del src_len, teacher_forcing_ratio   # src_len only used by 'OM'; eval => no TF
    d = pp["dims"]
    batch, _, emb = src.shape
    _, t_tgt = tgt.shape
    bp = _rup(batch, 8)

    # (B, T, E) -> (T, B, E), pad to lane/sublane-dense (T, Bp, Ep) bf16
    src_tbe = jnp.transpose(src, (1, 0, 2))
    src_p = jnp.pad(src_tbe,
                    ((0, 0), (0, bp - batch), (0, d["Ep"] - emb))
                    ).astype(jnp.bfloat16)

    f, b = pp["enc_fwd"], pp["enc_bwd"]
    hidden = pl.pallas_call(
        bigru_encoder_kernel,
        out_shape=jax.ShapeDtypeStruct((bp, d["Hp"]), jnp.float32),
        in_specs=[_VMEM] * 12,
        out_specs=_VMEM,
    )(src_p,
      f["wi"], f["wh"], f["bi"], f["bh"],
      b["wi"], b["wh"], b["bi"], b["bh"],
      pp["map_h_wf"], pp["map_h_wb"], pp["map_h_b"])

    g = pp["dec_gru"]
    out_p = pl.pallas_call(
        functools.partial(greedy_decode_kernel, sos=int(sos), vocab=d["V"]),
        out_shape=jax.ShapeDtypeStruct((t_tgt, bp, d["Vp"]), jnp.float32),
        in_specs=[_VMEM] * 8,
        out_specs=_VMEM,
    )(hidden, pp["dec_emb"],
      g["wi"], g["wh"], g["bi"], g["bh"],
      pp["fc_out_w"], pp["fc_out_b"])

    out = jnp.transpose(out_p, (1, 0, 2))            # (Bp, T_tgt, Vp)
    return out[:batch, :, :d["V"]]                   # (B, T_tgt, V)


# ----------------------------- params -----------------------------------------

def init_params(key, emb_dim, hid_dim, vocab_size):
    """Real (unpadded) parameters; same init scales as torch defaults."""
    def uni(k, shape, scale):
        return jax.random.uniform(k, shape, jnp.float32, -scale, scale)

    def gru_dir(k, in_dim, hid):
        s = 1.0 / float(hid) ** 0.5
        k0, k1, k2, k3 = jax.random.split(k, 4)
        return dict(wi=uni(k0, (3, in_dim, hid), s),
                    wh=uni(k1, (3, hid, hid), s),
                    bi=uni(k2, (3, 1, hid), s),
                    bh=uni(k3, (3, 1, hid), s))

    ks = jax.random.split(key, 8)
    s_h = 1.0 / float(2 * hid_dim) ** 0.5
    s_o = 1.0 / float(hid_dim) ** 0.5
    return dict(
        enc_fwd=gru_dir(ks[0], emb_dim, hid_dim),
        enc_bwd=gru_dir(ks[1], emb_dim, hid_dim),
        map_h_w=uni(ks[2], (2 * hid_dim, hid_dim), s_h),
        map_h_b=uni(ks[3], (1, hid_dim), s_h),      # independent key (review fix)
        dec_emb=jax.random.normal(ks[4], (vocab_size, emb_dim), jnp.float32),
        dec_gru=gru_dir(ks[5], emb_dim, hid_dim),
        fc_out_w=uni(ks[6], (hid_dim, vocab_size), s_o),
        fc_out_b=uni(ks[7], (1, vocab_size), s_o),
    )


def pad_params(p, emb_dim, hid_dim, vocab_size):
    """Zero-pad to lane-dense shapes and pack fused-gate bf16 weights."""
    ep = _rup(emb_dim, 128)
    hp = _rup(hid_dim, 128)
    vp = _rup(vocab_size, 128)

    def pad2(x, rows, cols):
        return jnp.pad(x, ((0, rows - x.shape[0]), (0, cols - x.shape[1])))

    def pack_gru(g, in_p):
        wi = jnp.concatenate([pad2(g["wi"][i], in_p, hp) for i in range(3)], 1)
        wh = jnp.concatenate([pad2(g["wh"][i], hp, hp) for i in range(3)], 1)
        bi = jnp.concatenate([pad2(g["bi"][i], 1, hp) for i in range(3)], 1)
        bh = jnp.concatenate([pad2(g["bh"][i], 1, hp) for i in range(3)], 1)
        return dict(wi=wi.astype(jnp.bfloat16), wh=wh.astype(jnp.bfloat16),
                    bi=bi, bh=bh)

    return dict(
        dims=dict(E=emb_dim, H=hid_dim, V=vocab_size, Ep=ep, Hp=hp, Vp=vp),
        enc_fwd=pack_gru(p["enc_fwd"], ep),
        enc_bwd=pack_gru(p["enc_bwd"], ep),
        map_h_wf=pad2(p["map_h_w"][:hid_dim], hp, hp).astype(jnp.bfloat16),
        map_h_wb=pad2(p["map_h_w"][hid_dim:], hp, hp).astype(jnp.bfloat16),
        map_h_b=pad2(p["map_h_b"], 1, hp),
        dec_emb=pad2(p["dec_emb"], vp, ep).astype(jnp.bfloat16),
        dec_gru=pack_gru(p["dec_gru"], ep),
        fc_out_w=pad2(p["fc_out_w"], hp, vp).astype(jnp.bfloat16),
        fc_out_b=pad2(p["fc_out_b"], 1, vp),
    )


# ----------------------------- main --------------------------------------------

if __name__ == "__main__":
    B, T_SRC, T_TGT = 2, 8, 8
    EMB, HID, VOCAB = 32, 32, 16
    SOS = 1

    k_src, k_tgt = jax.random.split(jax.random.PRNGKey(0))
    src = jax.random.normal(k_src, (B, T_SRC, EMB), jnp.float32)
    tgt = jax.random.randint(k_tgt, (B, T_TGT), 0, VOCAB, dtype=jnp.int32)
    src_len = [T_SRC] * B

    params = init_params(jax.random.PRNGKey(42), EMB, HID, VOCAB)
    padded = pad_params(params, EMB, HID, VOCAB)

    out = rnn_model_forward(padded, src, src_len, tgt, sos=SOS)
    out = jax.block_until_ready(out)

    assert out.shape == (B, T_TGT, VOCAB), out.shape
    assert bool(jnp.all(jnp.isfinite(out)))
    print("KERNEL_OK")
</pallas_src>

<mosaic_0001>
module attributes {stable_mosaic.version = 11 : i64} {
  func.func @bigru_encoder_kernel(%arg0: memref<8x8x128xbf16, #tpu.memory_space<vmem>>, %arg1: memref<128x384xbf16, #tpu.memory_space<vmem>>, %arg2: memref<128x384xbf16, #tpu.memory_space<vmem>>, %arg3: memref<1x384xf32, #tpu.memory_space<vmem>>, %arg4: memref<1x384xf32, #tpu.memory_space<vmem>>, %arg5: memref<128x384xbf16, #tpu.memory_space<vmem>>, %arg6: memref<128x384xbf16, #tpu.memory_space<vmem>>, %arg7: memref<1x384xf32, #tpu.memory_space<vmem>>, %arg8: memref<1x384xf32, #tpu.memory_space<vmem>>, %arg9: memref<128x128xbf16, #tpu.memory_space<vmem>>, %arg10: memref<128x128xbf16, #tpu.memory_space<vmem>>, %arg11: memref<1x128xf32, #tpu.memory_space<vmem>>, %arg12: memref<8x128xf32, #tpu.memory_space<vmem>>) attributes {dimension_semantics = [], scalar_prefetch = 0 : i64, scratch_operands = 0 : i64, tpu.core_type = #tpu.core_type<tc>} {
    %c0 = arith.constant 0 : index
    %c0_0 = arith.constant 0 : index
    %0 = vector.load %arg1[%c0, %c0_0] : memref<128x384xbf16, #tpu.memory_space<vmem>>, vector<128x384xbf16>
    %c0_1 = arith.constant 0 : index
    %c0_2 = arith.constant 0 : index
    %1 = vector.load %arg2[%c0_1, %c0_2] : memref<128x384xbf16, #tpu.memory_space<vmem>>, vector<128x384xbf16>
    %c0_3 = arith.constant 0 : index
    %c0_4 = arith.constant 0 : index
    %2 = vector.load %arg5[%c0_3, %c0_4] : memref<128x384xbf16, #tpu.memory_space<vmem>>, vector<128x384xbf16>
    %c0_5 = arith.constant 0 : index
    %c0_6 = arith.constant 0 : index
    %3 = vector.load %arg6[%c0_5, %c0_6] : memref<128x384xbf16, #tpu.memory_space<vmem>>, vector<128x384xbf16>
    %c0_7 = arith.constant 0 : index
    %c0_8 = arith.constant 0 : index
    %4 = vector.load %arg3[%c0_7, %c0_8] : memref<1x384xf32, #tpu.memory_space<vmem>>, vector<1x384xf32>
    %5 = vector.shape_cast %4 : vector<1x384xf32> to vector<1x384xf32>
    %6 = vector.broadcast %5 : vector<1x384xf32> to vector<8x384xf32>
    %c0_9 = arith.constant 0 : index
    %c0_10 = arith.constant 0 : index
    %7 = vector.load %arg4[%c0_9, %c0_10] : memref<1x384xf32, #tpu.memory_space<vmem>>, vector<1x384xf32>
    %8 = vector.shape_cast %7 : vector<1x384xf32> to vector<1x384xf32>
    %9 = vector.broadcast %8 : vector<1x384xf32> to vector<8x384xf32>
    %c0_11 = arith.constant 0 : index
    %c0_12 = arith.constant 0 : index
    %10 = vector.load %arg7[%c0_11, %c0_12] : memref<1x384xf32, #tpu.memory_space<vmem>>, vector<1x384xf32>
    %11 = vector.shape_cast %10 : vector<1x384xf32> to vector<1x384xf32>
    %12 = vector.broadcast %11 : vector<1x384xf32> to vector<8x384xf32>
    %c0_13 = arith.constant 0 : index
    %c0_14 = arith.constant 0 : index
    %13 = vector.load %arg8[%c0_13, %c0_14] : memref<1x384xf32, #tpu.memory_space<vmem>>, vector<1x384xf32>
    %14 = vector.shape_cast %13 : vector<1x384xf32> to vector<1x384xf32>
    %15 = vector.broadcast %14 : vector<1x384xf32> to vector<8x384xf32>
    %cst = arith.constant 0.000000e+00 : f32
    %16 = vector.broadcast %cst : f32 to vector<8x128xf32>
    %c0_i32 = arith.constant 0 : i32
    %17 = arith.index_cast %c0_i32 : i32 to index
    %c0_15 = arith.constant 0 : index
    %c0_16 = arith.constant 0 : index
    %18 = vector.load %arg0[%17, %c0_15, %c0_16] : memref<8x8x128xbf16, #tpu.memory_space<vmem>>, vector<1x8x128xbf16>
    %19 = vector.shape_cast %18 : vector<1x8x128xbf16> to vector<8x128xbf16>
    %cst_17 = arith.constant dense<0.000000e+00> : vector<8x384xf32>
    %20 = tpu.matmul %19, %0, %cst_17 {dimension_numbers = #tpu.dot_dimension_numbers<[1], [0], [0], [1], [0, 0, 1, 1], [], []>} : vector<8x128xbf16>, vector<128x384xbf16>, vector<8x384xf32> -> vector<8x384xf32>
    %21 = arith.addf %20, %6 : vector<8x384xf32>
    %22 = arith.truncf %16 : vector<8x128xf32> to vector<8x128xbf16>
    %cst_18 = arith.constant dense<0.000000e+00> : vector<8x384xf32>
    %23 = tpu.matmul %22, %1, %cst_18 {dimension_numbers = #tpu.dot_dimension_numbers<[1], [0], [0], [1], [0, 0, 1, 1], [], []>} : vector<8x128xbf16>, vector<128x384xbf16>, vector<8x384xf32> -> vector<8x384xf32>
    %24 = arith.addf %23, %9 : vector<8x384xf32>
    %25 = vector.extract_strided_slice %21 {offsets = [0, 0], sizes = [8, 128], strides = [1, 1]} : vector<8x384xf32> to vector<8x128xf32>
    %26 = vector.extract_strided_slice %24 {offsets = [0, 0], sizes = [8, 128], strides = [1, 1]} : vector<8x384xf32> to vector<8x128xf32>
    %27 = arith.addf %25, %26 : vector<8x128xf32>
    %28 = arith.negf %27 : vector<8x128xf32>
    %29 = math.exp %28 : vector<8x128xf32>
    %cst_19 = arith.constant 1.000000e+00 : f32
    %30 = vector.broadcast %cst_19 : f32 to vector<8x128xf32>
    %31 = arith.addf %30, %29 : vector<8x128xf32>
    %32 = arith.divf %30, %31 : vector<8x128xf32>
    %33 = vector.extract_strided_slice %21 {offsets = [0, 128], sizes = [8, 128], strides = [1, 1]} : vector<8x384xf32> to vector<8x128xf32>
    %34 = vector.extract_strided_slice %24 {offsets = [0, 128], sizes = [8, 128], strides = [1, 1]} : vector<8x384xf32> to vector<8x128xf32>
    %35 = arith.addf %33, %34 : vector<8x128xf32>
    %36 = arith.negf %35 : vector<8x128xf32>
    %37 = math.exp %36 : vector<8x128xf32>
    %cst_20 = arith.constant 1.000000e+00 : f32
    %38 = vector.broadcast %cst_20 : f32 to vector<8x128xf32>
    %39 = arith.addf %38, %37 : vector<8x128xf32>
    %40 = arith.divf %38, %39 : vector<8x128xf32>
    %41 = vector.extract_strided_slice %21 {offsets = [0, 256], sizes = [8, 128], strides = [1, 1]} : vector<8x384xf32> to vector<8x128xf32>
    %42 = vector.extract_strided_slice %24 {offsets = [0, 256], sizes = [8, 128], strides = [1, 1]} : vector<8x384xf32> to vector<8x128xf32>
    %43 = arith.mulf %32, %42 : vector<8x128xf32>
    %44 = arith.addf %41, %43 : vector<8x128xf32>
    %45 = math.tanh %44 : vector<8x128xf32>
    %cst_21 = arith.constant 1.000000e+00 : f32
    %46 = vector.broadcast %cst_21 : f32 to vector<8x128xf32>
    %47 = arith.subf %46, %40 : vector<8x128xf32>
    %48 = arith.mulf %47, %45 : vector<8x128xf32>
    %49 = arith.mulf %40, %16 : vector<8x128xf32>
    %50 = arith.addf %48, %49 : vector<8x128xf32>
    %c7_i32 = arith.constant 7 : i32
    %51 = arith.subi %c7_i32, %c0_i32 : i32
    %52 = arith.index_cast %51 : i32 to index
    %c0_22 = arith.constant 0 : index
    %c0_23 = arith.constant 0 : index
    %53 = vector.load %arg0[%52, %c0_22, %c0_23] : memref<8x8x128xbf16, #tpu.memory_space<vmem>>, vector<1x8x128xbf16>
    %54 = vector.shape_cast %53 : vector<1x8x128xbf16> to vector<8x128xbf16>
    %cst_24 = arith.constant dense<0.000000e+00> : vector<8x384xf32>
    %55 = tpu.matmul %54, %2, %cst_24 {dimension_numbers = #tpu.dot_dimension_numbers<[1], [0], [0], [1], [0, 0, 1, 1], [], []>} : vector<8x128xbf16>, vector<128x384xbf16>, vector<8x384xf32> -> vector<8x384xf32>
    %56 = arith.addf %55, %12 : vector<8x384xf32>
    %57 = arith.truncf %16 : vector<8x128xf32> to vector<8x128xbf16>
    %cst_25 = arith.constant dense<0.000000e+00> : vector<8x384xf32>
    %58 = tpu.matmul %57, %3, %cst_25 {dimension_numbers = #tpu.dot_dimension_numbers<[1], [0], [0], [1], [0, 0, 1, 1], [], []>} : vector<8x128xbf16>, vector<128x384xbf16>, vector<8x384xf32> -> vector<8x384xf32>
    %59 = arith.addf %58, %15 : vector<8x384xf32>
    %60 = vector.extract_strided_slice %56 {offsets = [0, 0], sizes = [8, 128], strides = [1, 1]} : vector<8x384xf32> to vector<8x128xf32>
    %61 = vector.extract_strided_slice %59 {offsets = [0, 0], sizes = [8, 128], strides = [1, 1]} : vector<8x384xf32> to vector<8x128xf32>
    %62 = arith.addf %60, %61 : vector<8x128xf32>
    %63 = arith.negf %62 : vector<8x128xf32>
    %64 = math.exp %63 : vector<8x128xf32>
    %cst_26 = arith.constant 1.000000e+00 : f32
    %65 = vector.broadcast %cst_26 : f32 to vector<8x128xf32>
    %66 = arith.addf %65, %64 : vector<8x128xf32>
    %67 = arith.divf %65, %66 : vector<8x128xf32>
    %68 = vector.extract_strided_slice %56 {offsets = [0, 128], sizes = [8, 128], strides = [1, 1]} : vector<8x384xf32> to vector<8x128xf32>
    %69 = vector.extract_strided_slice %59 {offsets = [0, 128], sizes = [8, 128], strides = [1, 1]} : vector<8x384xf32> to vector<8x128xf32>
    %70 = arith.addf %68, %69 : vector<8x128xf32>
    %71 = arith.negf %70 : vector<8x128xf32>
    %72 = math.exp %71 : vector<8x128xf32>
    %cst_27 = arith.constant 1.000000e+00 : f32
    %73 = vector.broadcast %cst_27 : f32 to vector<8x128xf32>
    %74 = arith.addf %73, %72 : vector<8x128xf32>
    %75 = arith.divf %73, %74 : vector<8x128xf32>
    %76 = vector.extract_strided_slice %56 {offsets = [0, 256], sizes = [8, 128], strides = [1, 1]} : vector<8x384xf32> to vector<8x128xf32>
    %77 = vector.extract_strided_slice %59 {offsets = [0, 256], sizes = [8, 128], strides = [1, 1]} : vector<8x384xf32> to vector<8x128xf32>
    %78 = arith.mulf %67, %77 : vector<8x128xf32>
    %79 = arith.addf %76, %78 : vector<8x128xf32>
    %80 = math.tanh %79 : vector<8x128xf32>
    %cst_28 = arith.constant 1.000000e+00 : f32
    %81 = vector.broadcast %cst_28 : f32 to vector<8x128xf32>
    %82 = arith.subf %81, %75 : vector<8x128xf32>
    %83 = arith.mulf %82, %80 : vector<8x128xf32>
    %84 = arith.mulf %75, %16 : vector<8x128xf32>
    %85 = arith.addf %83, %84 : vector<8x128xf32>
    %c1_i32 = arith.constant 1 : i32
    %86 = arith.index_cast %c1_i32 : i32 to index
    %c0_29 = arith.constant 0 : index
    %c0_30 = arith.constant 0 : index
    %87 = vector.load %arg0[%86, %c0_29, %c0_30] : memref<8x8x128xbf16, #tpu.memory_space<vmem>>, vector<1x8x128xbf16>
    %88 = vector.shape_cast %87 : vector<1x8x128xbf16> to vector<8x128xbf16>
    %cst_31 = arith.constant dense<0.000000e+00> : vector<8x384xf32>
    %89 = tpu.matmul %88, %0, %cst_31 {dimension_numbers = #tpu.dot_dimension_numbers<[1], [0], [0], [1], [0, 0, 1, 1], [], []>} : vector<8x128xbf16>, vector<128x384xbf16>, vector<8x384xf32> -> vector<8x384xf32>
    %90 = arith.addf %89, %6 : vector<8x384xf32>
    %91 = arith.truncf %50 : vector<8x128xf32> to vector<8x128xbf16>
    %cst_32 = arith.constant dense<0.000000e+00> : vector<8x384xf32>
    %92 = tpu.matmul %91, %1, %cst_32 {dimension_numbers = #tpu.dot_dimension_numbers<[1], [0], [0], [1], [0, 0, 1, 1], [], []>} : vector<8x128xbf16>, vector<128x384xbf16>, vector<8x384xf32> -> vector<8x384xf32>
    %93 = arith.addf %92, %9 : vector<8x384xf32>
    %94 = vector.extract_strided_slice %90 {offsets = [0, 0], sizes = [8, 128], strides = [1, 1]} : vector<8x384xf32> to vector<8x128xf32>
    %95 = vector.extract_strided_slice %93 {offsets = [0, 0], sizes = [8, 128], strides = [1, 1]} : vector<8x384xf32> to vector<8x128xf32>
    %96 = arith.addf %94, %95 : vector<8x128xf32>
    %97 = arith.negf %96 : vector<8x128xf32>
    %98 = math.exp %97 : vector<8x128xf32>
    %cst_33 = arith.constant 1.000000e+00 : f32
    %99 = vector.broadcast %cst_33 : f32 to vector<8x128xf32>
    %100 = arith.addf %99, %98 : vector<8x128xf32>
    %101 = arith.divf %99, %100 : vector<8x128xf32>
    %102 = vector.extract_strided_slice %90 {offsets = [0, 128], sizes = [8, 128], strides = [1, 1]} : vector<8x384xf32> to vector<8x128xf32>
    %103 = vector.extract_strided_slice %93 {offsets = [0, 128], sizes = [8, 128], strides = [1, 1]} : vector<8x384xf32> to vector<8x128xf32>
    %104 = arith.addf %102, %103 : vector<8x128xf32>
    %105 = arith.negf %104 : vector<8x128xf32>
    %106 = math.exp %105 : vector<8x128xf32>
    %cst_34 = arith.constant 1.000000e+00 : f32
    %107 = vector.broadcast %cst_34 : f32 to vector<8x128xf32>
    %108 = arith.addf %107, %106 : vector<8x128xf32>
    %109 = arith.divf %107, %108 : vector<8x128xf32>
    %110 = vector.extract_strided_slice %90 {offsets = [0, 256], sizes = [8, 128], strides = [1, 1]} : vector<8x384xf32> to vector<8x128xf32>
    %111 = vector.extract_strided_slice %93 {offsets = [0, 256], sizes = [8, 128], strides = [1, 1]} : vector<8x384xf32> to vector<8x128xf32>
    %112 = arith.mulf %101, %111 : vector<8x128xf32>
    %113 = arith.addf %110, %112 : vector<8x128xf32>
    %114 = math.tanh %113 : vector<8x128xf32>
    %cst_35 = arith.constant 1.000000e+00 : f32
    %115 = vector.broadcast %cst_35 : f32 to vector<8x128xf32>
    %116 = arith.subf %115, %109 : vector<8x128xf32>
    %117 = arith.mulf %116, %114 : vector<8x128xf32>
    %118 = arith.mulf %109, %50 : vector<8x128xf32>
    %119 = arith.addf %117, %118 : vector<8x128xf32>
    %c7_i32_36 = arith.constant 7 : i32
    %120 = arith.subi %c7_i32_36, %c1_i32 : i32
    %121 = arith.index_cast %120 : i32 to index
    %c0_37 = arith.constant 0 : index
    %c0_38 = arith.constant 0 : index
    %122 = vector.load %arg0[%121, %c0_37, %c0_38] : memref<8x8x128xbf16, #tpu.memory_space<vmem>>, vector<1x8x128xbf16>
    %123 = vector.shape_cast %122 : vector<1x8x128xbf16> to vector<8x128xbf16>
    %cst_39 = arith.constant dense<0.000000e+00> : vector<8x384xf32>
    %124 = tpu.matmul %123, %2, %cst_39 {dimension_numbers = #tpu.dot_dimension_numbers<[1], [0], [0], [1], [0, 0, 1, 1], [], []>} : vector<8x128xbf16>, vector<128x384xbf16>, vector<8x384xf32> -> vector<8x384xf32>
    %125 = arith.addf %124, %12 : vector<8x384xf32>
    %126 = arith.truncf %85 : vector<8x128xf32> to vector<8x128xbf16>
    %cst_40 = arith.constant dense<0.000000e+00> : vector<8x384xf32>
    %127 = tpu.matmul %126, %3, %cst_40 {dimension_numbers = #tpu.dot_dimension_numbers<[1], [0], [0], [1], [0, 0, 1, 1], [], []>} : vector<8x128xbf16>, vector<128x384xbf16>, vector<8x384xf32> -> vector<8x384xf32>
    %128 = arith.addf %127, %15 : vector<8x384xf32>
    %129 = vector.extract_strided_slice %125 {offsets = [0, 0], sizes = [8, 128], strides = [1, 1]} : vector<8x384xf32> to vector<8x128xf32>
    %130 = vector.extract_strided_slice %128 {offsets = [0, 0], sizes = [8, 128], strides = [1, 1]} : vector<8x384xf32> to vector<8x128xf32>
    %131 = arith.addf %129, %130 : vector<8x128xf32>
    %132 = arith.negf %131 : vector<8x128xf32>
    %133 = math.exp %132 : vector<8x128xf32>
    %cst_41 = arith.constant 1.000000e+00 : f32
    %134 = vector.broadcast %cst_41 : f32 to vector<8x128xf32>
    %135 = arith.addf %134, %133 : vector<8x128xf32>
    %136 = arith.divf %134, %135 : vector<8x128xf32>
    %137 = vector.extract_strided_slice %125 {offsets = [0, 128], sizes = [8, 128], strides = [1, 1]} : vector<8x384xf32> to vector<8x128xf32>
    %138 = vector.extract_strided_slice %128 {offsets = [0, 128], sizes = [8, 128], strides = [1, 1]} : vector<8x384xf32> to vector<8x128xf32>
    %139 = arith.addf %137, %138 : vector<8x128xf32>
    %140 = arith.negf %139 : vector<8x128xf32>
    %141 = math.exp %140 : vector<8x128xf32>
    %cst_42 = arith.constant 1.000000e+00 : f32
    %142 = vector.broadcast %cst_42 : f32 to vector<8x128xf32>
    %143 = arith.addf %142, %141 : vector<8x128xf32>
    %144 = arith.divf %142, %143 : vector<8x128xf32>
    %145 = vector.extract_strided_slice %125 {offsets = [0, 256], sizes = [8, 128], strides = [1, 1]} : vector<8x384xf32> to vector<8x128xf32>
    %146 = vector.extract_strided_slice %128 {offsets = [0, 256], sizes = [8, 128], strides = [1, 1]} : vector<8x384xf32> to vector<8x128xf32>
    %147 = arith.mulf %136, %146 : vector<8x128xf32>
    %148 = arith.addf %145, %147 : vector<8x128xf32>
    %149 = math.tanh %148 : vector<8x128xf32>
    %cst_43 = arith.constant 1.000000e+00 : f32
    %150 = vector.broadcast %cst_43 : f32 to vector<8x128xf32>
    %151 = arith.subf %150, %144 : vector<8x128xf32>
    %152 = arith.mulf %151, %149 : vector<8x128xf32>
    %153 = arith.mulf %144, %85 : vector<8x128xf32>
    %154 = arith.addf %152, %153 : vector<8x128xf32>
    %c2_i32 = arith.constant 2 : i32
    %155 = arith.index_cast %c2_i32 : i32 to index
    %c0_44 = arith.constant 0 : index
    %c0_45 = arith.constant 0 : index
    %156 = vector.load %arg0[%155, %c0_44, %c0_45] : memref<8x8x128xbf16, #tpu.memory_space<vmem>>, vector<1x8x128xbf16>
    %157 = vector.shape_cast %156 : vector<1x8x128xbf16> to vector<8x128xbf16>
    %cst_46 = arith.constant dense<0.000000e+00> : vector<8x384xf32>
    %158 = tpu.matmul %157, %0, %cst_46 {dimension_numbers = #tpu.dot_dimension_numbers<[1], [0], [0], [1], [0, 0, 1, 1], [], []>} : vector<8x128xbf16>, vector<128x384xbf16>, vector<8x384xf32> -> vector<8x384xf32>
    %159 = arith.addf %158, %6 : vector<8x384xf32>
    %160 = arith.truncf %119 : vector<8x128xf32> to vector<8x128xbf16>
    %cst_47 = arith.constant dense<0.000000e+00> : vector<8x384xf32>
    %161 = tpu.matmul %160, %1, %cst_47 {dimension_numbers = #tpu.dot_dimension_numbers<[1], [0], [0], [1], [0, 0, 1, 1], [], []>} : vector<8x128xbf16>, vector<128x384xbf16>, vector<8x384xf32> -> vector<8x384xf32>
    %162 = arith.addf %161, %9 : vector<8x384xf32>
    %163 = vector.extract_strided_slice %159 {offsets = [0, 0], sizes = [8, 128], strides = [1, 1]} : vector<8x384xf32> to vector<8x128xf32>
    %164 = vector.extract_strided_slice %162 {offsets = [0, 0], sizes = [8, 128], strides = [1, 1]} : vector<8x384xf32> to vector<8x128xf32>
    %165 = arith.addf %163, %164 : vector<8x128xf32>
    %166 = arith.negf %165 : vector<8x128xf32>
    %167 = math.exp %166 : vector<8x128xf32>
    %cst_48 = arith.constant 1.000000e+00 : f32
    %168 = vector.broadcast %cst_48 : f32 to vector<8x128xf32>
    %169 = arith.addf %168, %167 : vector<8x128xf32>
    %170 = arith.divf %168, %169 : vector<8x128xf32>
    %171 = vector.extract_strided_slice %159 {offsets = [0, 128], sizes = [8, 128], strides = [1, 1]} : vector<8x384xf32> to vector<8x128xf32>
    %172 = vector.extract_strided_slice %162 {offsets = [0, 128], sizes = [8, 128], strides = [1, 1]} : vector<8x384xf32> to vector<8x128xf32>
    %173 = arith.addf %171, %172 : vector<8x128xf32>
    %174 = arith.negf %173 : vector<8x128xf32>
    %175 = math.exp %174 : vector<8x128xf32>
    %cst_49 = arith.constant 1.000000e+00 : f32
    %176 = vector.broadcast %cst_49 : f32 to vector<8x128xf32>
    %177 = arith.addf %176, %175 : vector<8x128xf32>
    %178 = arith.divf %176, %177 : vector<8x128xf32>
    %179 = vector.extract_strided_slice %159 {offsets = [0, 256], sizes = [8, 128], strides = [1, 1]} : vector<8x384xf32> to vector<8x128xf32>
    %180 = vector.extract_strided_slice %162 {offsets = [0, 256], sizes = [8, 128], strides = [1, 1]} : vector<8x384xf32> to vector<8x128xf32>
    %181 = arith.mulf %170, %180 : vector<8x128xf32>
    %182 = arith.addf %179, %181 : vector<8x128xf32>
    %183 = math.tanh %182 : vector<8x128xf32>
    %cst_50 = arith.constant 1.000000e+00 : f32
    %184 = vector.broadcast %cst_50 : f32 to vector<8x128xf32>
    %185 = arith.subf %184, %178 : vector<8x128xf32>
    %186 = arith.mulf %185, %183 : vector<8x128xf32>
    %187 = arith.mulf %178, %119 : vector<8x128xf32>
    %188 = arith.addf %186, %187 : vector<8x128xf32>
    %c7_i32_51 = arith.constant 7 : i32
    %189 = arith.subi %c7_i32_51, %c2_i32 : i32
    %190 = arith.index_cast %189 : i32 to index
    %c0_52 = arith.constant 0 : index
    %c0_53 = arith.constant 0 : index
    %191 = vector.load %arg0[%190, %c0_52, %c0_53] : memref<8x8x128xbf16, #tpu.memory_space<vmem>>, vector<1x8x128xbf16>
    %192 = vector.shape_cast %191 : vector<1x8x128xbf16> to vector<8x128xbf16>
    %cst_54 = arith.constant dense<0.000000e+00> : vector<8x384xf32>
    %193 = tpu.matmul %192, %2, %cst_54 {dimension_numbers = #tpu.dot_dimension_numbers<[1], [0], [0], [1], [0, 0, 1, 1], [], []>} : vector<8x128xbf16>, vector<128x384xbf16>, vector<8x384xf32> -> vector<8x384xf32>
    %194 = arith.addf %193, %12 : vector<8x384xf32>
    %195 = arith.truncf %154 : vector<8x128xf32> to vector<8x128xbf16>
    %cst_55 = arith.constant dense<0.000000e+00> : vector<8x384xf32>
    %196 = tpu.matmul %195, %3, %cst_55 {dimension_numbers = #tpu.dot_dimension_numbers<[1], [0], [0], [1], [0, 0, 1, 1], [], []>} : vector<8x128xbf16>, vector<128x384xbf16>, vector<8x384xf32> -> vector<8x384xf32>
    %197 = arith.addf %196, %15 : vector<8x384xf32>
    %198 = vector.extract_strided_slice %194 {offsets = [0, 0], sizes = [8, 128], strides = [1, 1]} : vector<8x384xf32> to vector<8x128xf32>
    %199 = vector.extract_strided_slice %197 {offsets = [0, 0], sizes = [8, 128], strides = [1, 1]} : vector<8x384xf32> to vector<8x128xf32>
    %200 = arith.addf %198, %199 : vector<8x128xf32>
    %201 = arith.negf %200 : vector<8x128xf32>
    %202 = math.exp %201 : vector<8x128xf32>
    %cst_56 = arith.constant 1.000000e+00 : f32
    %203 = vector.broadcast %cst_56 : f32 to vector<8x128xf32>
    %204 = arith.addf %203, %202 : vector<8x128xf32>
    %205 = arith.divf %203, %204 : vector<8x128xf32>
    %206 = vector.extract_strided_slice %194 {offsets = [0, 128], sizes = [8, 128], strides = [1, 1]} : vector<8x384xf32> to vector<8x128xf32>
    %207 = vector.extract_strided_slice %197 {offsets = [0, 128], sizes = [8, 128], strides = [1, 1]} : vector<8x384xf32> to vector<8x128xf32>
    %208 = arith.addf %206, %207 : vector<8x128xf32>
    %209 = arith.negf %208 : vector<8x128xf32>
    %210 = math.exp %209 : vector<8x128xf32>
    %cst_57 = arith.constant 1.000000e+00 : f32
    %211 = vector.broadcast %cst_57 : f32 to vector<8x128xf32>
    %212 = arith.addf %211, %210 : vector<8x128xf32>
    %213 = arith.divf %211, %212 : vector<8x128xf32>
    %214 = vector.extract_strided_slice %194 {offsets = [0, 256], sizes = [8, 128], strides = [1, 1]} : vector<8x384xf32> to vector<8x128xf32>
    %215 = vector.extract_strided_slice %197 {offsets = [0, 256], sizes = [8, 128], strides = [1, 1]} : vector<8x384xf32> to vector<8x128xf32>
    %216 = arith.mulf %205, %215 : vector<8x128xf32>
    %217 = arith.addf %214, %216 : vector<8x128xf32>
    %218 = math.tanh %217 : vector<8x128xf32>
    %cst_58 = arith.constant 1.000000e+00 : f32
    %219 = vector.broadcast %cst_58 : f32 to vector<8x128xf32>
    %220 = arith.subf %219, %213 : vector<8x128xf32>
    %221 = arith.mulf %220, %218 : vector<8x128xf32>
    %222 = arith.mulf %213, %154 : vector<8x128xf32>
    %223 = arith.addf %221, %222 : vector<8x128xf32>
    %c3_i32 = arith.constant 3 : i32
    %224 = arith.index_cast %c3_i32 : i32 to index
    %c0_59 = arith.constant 0 : index
    %c0_60 = arith.constant 0 : index
    %225 = vector.load %arg0[%224, %c0_59, %c0_60] : memref<8x8x128xbf16, #tpu.memory_space<vmem>>, vector<1x8x128xbf16>
    %226 = vector.shape_cast %225 : vector<1x8x128xbf16> to vector<8x128xbf16>
    %cst_61 = arith.constant dense<0.000000e+00> : vector<8x384xf32>
    %227 = tpu.matmul %226, %0, %cst_61 {dimension_numbers = #tpu.dot_dimension_numbers<[1], [0], [0], [1], [0, 0, 1, 1], [], []>} : vector<8x128xbf16>, vector<128x384xbf16>, vector<8x384xf32> -> vector<8x384xf32>
    %228 = arith.addf %227, %6 : vector<8x384xf32>
    %229 = arith.truncf %188 : vector<8x128xf32> to vector<8x128xbf16>
    %cst_62 = arith.constant dense<0.000000e+00> : vector<8x384xf32>
    %230 = tpu.matmul %229, %1, %cst_62 {dimension_numbers = #tpu.dot_dimension_numbers<[1], [0], [0], [1], [0, 0, 1, 1], [], []>} : vector<8x128xbf16>, vector<128x384xbf16>, vector<8x384xf32> -> vector<8x384xf32>
    %231 = arith.addf %230, %9 : vector<8x384xf32>
    %232 = vector.extract_strided_slice %228 {offsets = [0, 0], sizes = [8, 128], strides = [1, 1]} : vector<8x384xf32> to vector<8x128xf32>
    %233 = vector.extract_strided_slice %231 {offsets = [0, 0], sizes = [8, 128], strides = [1, 1]} : vector<8x384xf32> to vector<8x128xf32>
    %234 = arith.addf %232, %233 : vector<8x128xf32>
    %235 = arith.negf %234 : vector<8x128xf32>
    %236 = math.exp %235 : vector<8x128xf32>
    %cst_63 = arith.constant 1.000000e+00 : f32
    %237 = vector.broadcast %cst_63 : f32 to vector<8x128xf32>
    %238 = arith.addf %237, %236 : vector<8x128xf32>
    %239 = arith.divf %237, %238 : vector<8x128xf32>
    %240 = vector.extract_strided_slice %228 {offsets = [0, 128], sizes = [8, 128], strides = [1, 1]} : vector<8x384xf32> to vector<8x128xf32>
    %241 = vector.extract_strided_slice %231 {offsets = [0, 128], sizes = [8, 128], strides = [1, 1]} : vector<8x384xf32> to vector<8x128xf32>
    %242 = arith.addf %240, %241 : vector<8x128xf32>
    %243 = arith.negf %242 : vector<8x128xf32>
    %244 = math.exp %243 : vector<8x128xf32>
    %cst_64 = arith.constant 1.000000e+00 : f32
    %245 = vector.broadcast %cst_64 : f32 to vector<8x128xf32>
    %246 = arith.addf %245, %244 : vector<8x128xf32>
    %247 = arith.divf %245, %246 : vector<8x128xf32>
    %248 = vector.extract_strided_slice %228 {offsets = [0, 256], sizes = [8, 128], strides = [1, 1]} : vector<8x384xf32> to vector<8x128xf32>
    %249 = vector.extract_strided_slice %231 {offsets = [0, 256], sizes = [8, 128], strides = [1, 1]} : vector<8x384xf32> to vector<8x128xf32>
    %250 = arith.mulf %239, %249 : vector<8x128xf32>
    %251 = arith.addf %248, %250 : vector<8x128xf32>
    %252 = math.tanh %251 : vector<8x128xf32>
    %cst_65 = arith.constant 1.000000e+00 : f32
    %253 = vector.broadcast %cst_65 : f32 to vector<8x128xf32>
    %254 = arith.subf %253, %247 : vector<8x128xf32>
    %255 = arith.mulf %254, %252 : vector<8x128xf32>
    %256 = arith.mulf %247, %188 : vector<8x128xf32>
    %257 = arith.addf %255, %256 : vector<8x128xf32>
    %c7_i32_66 = arith.constant 7 : i32
    %258 = arith.subi %c7_i32_66, %c3_i32 : i32
    %259 = arith.index_cast %258 : i32 to index
    %c0_67 = arith.constant 0 : index
    %c0_68 = arith.constant 0 : index
    %260 = vector.load %arg0[%259, %c0_67, %c0_68] : memref<8x8x128xbf16, #tpu.memory_space<vmem>>, vector<1x8x128xbf16>
    %261 = vector.shape_cast %260 : vector<1x8x128xbf16> to vector<8x128xbf16>
    %cst_69 = arith.constant dense<0.000000e+00> : vector<8x384xf32>
    %262 = tpu.matmul %261, %2, %cst_69 {dimension_numbers = #tpu.dot_dimension_numbers<[1], [0], [0], [1], [0, 0, 1, 1], [], []>} : vector<8x128xbf16>, vector<128x384xbf16>, vector<8x384xf32> -> vector<8x384xf32>
    %263 = arith.addf %262, %12 : vector<8x384xf32>
    %264 = arith.truncf %223 : vector<8x128xf32> to vector<8x128xbf16>
    %cst_70 = arith.constant dense<0.000000e+00> : vector<8x384xf32>
    %265 = tpu.matmul %264, %3, %cst_70 {dimension_numbers = #tpu.dot_dimension_numbers<[1], [0], [0], [1], [0, 0, 1, 1], [], []>} : vector<8x128xbf16>, vector<128x384xbf16>, vector<8x384xf32> -> vector<8x384xf32>
    %266 = arith.addf %265, %15 : vector<8x384xf32>
    %267 = vector.extract_strided_slice %263 {offsets = [0, 0], sizes = [8, 128], strides = [1, 1]} : vector<8x384xf32> to vector<8x128xf32>
    %268 = vector.extract_strided_slice %266 {offsets = [0, 0], sizes = [8, 128], strides = [1, 1]} : vector<8x384xf32> to vector<8x128xf32>
    %269 = arith.addf %267, %268 : vector<8x128xf32>
    %270 = arith.negf %269 : vector<8x128xf32>
    %271 = math.exp %270 : vector<8x128xf32>
    %cst_71 = arith.constant 1.000000e+00 : f32
    %272 = vector.broadcast %cst_71 : f32 to vector<8x128xf32>
    %273 = arith.addf %272, %271 : vector<8x128xf32>
    %274 = arith.divf %272, %273 : vector<8x128xf32>
    %275 = vector.extract_strided_slice %263 {offsets = [0, 128], sizes = [8, 128], strides = [1, 1]} : vector<8x384xf32> to vector<8x128xf32>
    %276 = vector.extract_strided_slice %266 {offsets = [0, 128], sizes = [8, 128], strides = [1, 1]} : vector<8x384xf32> to vector<8x128xf32>
    %277 = arith.addf %275, %276 : vector<8x128xf32>
    %278 = arith.negf %277 : vector<8x128xf32>
    %279 = math.exp %278 : vector<8x128xf32>
    %cst_72 = arith.constant 1.000000e+00 : f32
    %280 = vector.broadcast %cst_72 : f32 to vector<8x128xf32>
    %281 = arith.addf %280, %279 : vector<8x128xf32>
    %282 = arith.divf %280, %281 : vector<8x128xf32>
    %283 = vector.extract_strided_slice %263 {offsets = [0, 256], sizes = [8, 128], strides = [1, 1]} : vector<8x384xf32> to vector<8x128xf32>
    %284 = vector.extract_strided_slice %266 {offsets = [0, 256], sizes = [8, 128], strides = [1, 1]} : vector<8x384xf32> to vector<8x128xf32>
    %285 = arith.mulf %274, %284 : vector<8x128xf32>
    %286 = arith.addf %283, %285 : vector<8x128xf32>
    %287 = math.tanh %286 : vector<8x128xf32>
    %cst_73 = arith.constant 1.000000e+00 : f32
    %288 = vector.broadcast %cst_73 : f32 to vector<8x128xf32>
    %289 = arith.subf %288, %282 : vector<8x128xf32>
    %290 = arith.mulf %289, %287 : vector<8x128xf32>
    %291 = arith.mulf %282, %223 : vector<8x128xf32>
    %292 = arith.addf %290, %291 : vector<8x128xf32>
    %c4_i32 = arith.constant 4 : i32
    %293 = arith.index_cast %c4_i32 : i32 to index
    %c0_74 = arith.constant 0 : index
    %c0_75 = arith.constant 0 : index
    %294 = vector.load %arg0[%293, %c0_74, %c0_75] : memref<8x8x128xbf16, #tpu.memory_space<vmem>>, vector<1x8x128xbf16>
    %295 = vector.shape_cast %294 : vector<1x8x128xbf16> to vector<8x128xbf16>
    %cst_76 = arith.constant dense<0.000000e+00> : vector<8x384xf32>
    %296 = tpu.matmul %295, %0, %cst_76 {dimension_numbers = #tpu.dot_dimension_numbers<[1], [0], [0], [1], [0, 0, 1, 1], [], []>} : vector<8x128xbf16>, vector<128x384xbf16>, vector<8x384xf32> -> vector<8x384xf32>
    %297 = arith.addf %296, %6 : vector<8x384xf32>
    %298 = arith.truncf %257 : vector<8x128xf32> to vector<8x128xbf16>
    %cst_77 = arith.constant dense<0.000000e+00> : vector<8x384xf32>
    %299 = tpu.matmul %298, %1, %cst_77 {dimension_numbers = #tpu.dot_dimension_numbers<[1], [0], [0], [1], [0, 0, 1, 1], [], []>} : vector<8x128xbf16>, vector<128x384xbf16>, vector<8x384xf32> -> vector<8x384xf32>
    %300 = arith.addf %299, %9 : vector<8x384xf32>
    %301 = vector.extract_strided_slice %297 {offsets = [0, 0], sizes = [8, 128], strides = [1, 1]} : vector<8x384xf32> to vector<8x128xf32>
    %302 = vector.extract_strided_slice %300 {offsets = [0, 0], sizes = [8, 128], strides = [1, 1]} : vector<8x384xf32> to vector<8x128xf32>
    %303 = arith.addf %301, %302 : vector<8x128xf32>
    %304 = arith.negf %303 : vector<8x128xf32>
    %305 = math.exp %304 : vector<8x128xf32>
    %cst_78 = arith.constant 1.000000e+00 : f32
    %306 = vector.broadcast %cst_78 : f32 to vector<8x128xf32>
    %307 = arith.addf %306, %305 : vector<8x128xf32>
    %308 = arith.divf %306, %307 : vector<8x128xf32>
    %309 = vector.extract_strided_slice %297 {offsets = [0, 128], sizes = [8, 128], strides = [1, 1]} : vector<8x384xf32> to vector<8x128xf32>
    %310 = vector.extract_strided_slice %300 {offsets = [0, 128], sizes = [8, 128], strides = [1, 1]} : vector<8x384xf32> to vector<8x128xf32>
    %311 = arith.addf %309, %310 : vector<8x128xf32>
    %312 = arith.negf %311 : vector<8x128xf32>
    %313 = math.exp %312 : vector<8x128xf32>
    %cst_79 = arith.constant 1.000000e+00 : f32
    %314 = vector.broadcast %cst_79 : f32 to vector<8x128xf32>
    %315 = arith.addf %314, %313 : vector<8x128xf32>
    %316 = arith.divf %314, %315 : vector<8x128xf32>
    %317 = vector.extract_strided_slice %297 {offsets = [0, 256], sizes = [8, 128], strides = [1, 1]} : vector<8x384xf32> to vector<8x128xf32>
    %318 = vector.extract_strided_slice %300 {offsets = [0, 256], sizes = [8, 128], strides = [1, 1]} : vector<8x384xf32> to vector<8x128xf32>
    %319 = arith.mulf %308, %318 : vector<8x128xf32>
    %320 = arith.addf %317, %319 : vector<8x128xf32>
    %321 = math.tanh %320 : vector<8x128xf32>
    %cst_80 = arith.constant 1.000000e+00 : f32
    %322 = vector.broadcast %cst_80 : f32 to vector<8x128xf32>
    %323 = arith.subf %322, %316 : vector<8x128xf32>
    %324 = arith.mulf %323, %321 : vector<8x128xf32>
    %325 = arith.mulf %316, %257 : vector<8x128xf32>
    %326 = arith.addf %324, %325 : vector<8x128xf32>
    %c7_i32_81 = arith.constant 7 : i32
    %327 = arith.subi %c7_i32_81, %c4_i32 : i32
    %328 = arith.index_cast %327 : i32 to index
    %c0_82 = arith.constant 0 : index
    %c0_83 = arith.constant 0 : index
    %329 = vector.load %arg0[%328, %c0_82, %c0_83] : memref<8x8x128xbf16, #tpu.memory_space<vmem>>, vector<1x8x128xbf16>
    %330 = vector.shape_cast %329 : vector<1x8x128xbf16> to vector<8x128xbf16>
    %cst_84 = arith.constant dense<0.000000e+00> : vector<8x384xf32>
    %331 = tpu.matmul %330, %2, %cst_84 {dimension_numbers = #tpu.dot_dimension_numbers<[1], [0], [0], [1], [0, 0, 1, 1], [], []>} : vector<8x128xbf16>, vector<128x384xbf16>, vector<8x384xf32> -> vector<8x384xf32>
    %332 = arith.addf %331, %12 : vector<8x384xf32>
    %333 = arith.truncf %292 : vector<8x128xf32> to vector<8x128xbf16>
    %cst_85 = arith.constant dense<0.000000e+00> : vector<8x384xf32>
    %334 = tpu.matmul %333, %3, %cst_85 {dimension_numbers = #tpu.dot_dimension_numbers<[1], [0], [0], [1], [0, 0, 1, 1], [], []>} : vector<8x128xbf16>, vector<128x384xbf16>, vector<8x384xf32> -> vector<8x384xf32>
    %335 = arith.addf %334, %15 : vector<8x384xf32>
    %336 = vector.extract_strided_slice %332 {offsets = [0, 0], sizes = [8, 128], strides = [1, 1]} : vector<8x384xf32> to vector<8x128xf32>
    %337 = vector.extract_strided_slice %335 {offsets = [0, 0], sizes = [8, 128], strides = [1, 1]} : vector<8x384xf32> to vector<8x128xf32>
    %338 = arith.addf %336, %337 : vector<8x128xf32>
    %339 = arith.negf %338 : vector<8x128xf32>
    %340 = math.exp %339 : vector<8x128xf32>
    %cst_86 = arith.constant 1.000000e+00 : f32
    %341 = vector.broadcast %cst_86 : f32 to vector<8x128xf32>
    %342 = arith.addf %341, %340 : vector<8x128xf32>
    %343 = arith.divf %341, %342 : vector<8x128xf32>
    %344 = vector.extract_strided_slice %332 {offsets = [0, 128], sizes = [8, 128], strides = [1, 1]} : vector<8x384xf32> to vector<8x128xf32>
    %345 = vector.extract_strided_slice %335 {offsets = [0, 128], sizes = [8, 128], strides = [1, 1]} : vector<8x384xf32> to vector<8x128xf32>
    %346 = arith.addf %344, %345 : vector<8x128xf32>
    %347 = arith.negf %346 : vector<8x128xf32>
    %348 = math.exp %347 : vector<8x128xf32>
    %cst_87 = arith.constant 1.000000e+00 : f32
    %349 = vector.broadcast %cst_87 : f32 to vector<8x128xf32>
    %350 = arith.addf %349, %348 : vector<8x128xf32>
    %351 = arith.divf %349, %350 : vector<8x128xf32>
    %352 = vector.extract_strided_slice %332 {offsets = [0, 256], sizes = [8, 128], strides = [1, 1]} : vector<8x384xf32> to vector<8x128xf32>
    %353 = vector.extract_strided_slice %335 {offsets = [0, 256], sizes = [8, 128], strides = [1, 1]} : vector<8x384xf32> to vector<8x128xf32>
    %354 = arith.mulf %343, %353 : vector<8x128xf32>
    %355 = arith.addf %352, %354 : vector<8x128xf32>
    %356 = math.tanh %355 : vector<8x128xf32>
    %cst_88 = arith.constant 1.000000e+00 : f32
    %357 = vector.broadcast %cst_88 : f32 to vector<8x128xf32>
    %358 = arith.subf %357, %351 : vector<8x128xf32>
    %359 = arith.mulf %358, %356 : vector<8x128xf32>
    %360 = arith.mulf %351, %292 : vector<8x128xf32>
    %361 = arith.addf %359, %360 : vector<8x128xf32>
    %c5_i32 = arith.constant 5 : i32
    %362 = arith.index_cast %c5_i32 : i32 to index
    %c0_89 = arith.constant 0 : index
    %c0_90 = arith.constant 0 : index
    %363 = vector.load %arg0[%362, %c0_89, %c0_90] : memref<8x8x128xbf16, #tpu.memory_space<vmem>>, vector<1x8x128xbf16>
    %364 = vector.shape_cast %363 : vector<1x8x128xbf16> to vector<8x128xbf16>
    %cst_91 = arith.constant dense<0.000000e+00> : vector<8x384xf32>
    %365 = tpu.matmul %364, %0, %cst_91 {dimension_numbers = #tpu.dot_dimension_numbers<[1], [0], [0], [1], [0, 0, 1, 1], [], []>} : vector<8x128xbf16>, vector<128x384xbf16>, vector<8x384xf32> -> vector<8x384xf32>
    %366 = arith.addf %365, %6 : vector<8x384xf32>
    %367 = arith.truncf %326 : vector<8x128xf32> to vector<8x128xbf16>
    %cst_92 = arith.constant dense<0.000000e+00> : vector<8x384xf32>
    %368 = tpu.matmul %367, %1, %cst_92 {dimension_numbers = #tpu.dot_dimension_numbers<[1], [0], [0], [1], [0, 0, 1, 1], [], []>} : vector<8x128xbf16>, vector<128x384xbf16>, vector<8x384xf32> -> vector<8x384xf32>
    %369 = arith.addf %368, %9 : vector<8x384xf32>
    %370 = vector.extract_strided_slice %366 {offsets = [0, 0], sizes = [8, 128], strides = [1, 1]} : vector<8x384xf32> to vector<8x128xf32>
    %371 = vector.extract_strided_slice %369 {offsets = [0, 0], sizes = [8, 128], strides = [1, 1]} : vector<8x384xf32> to vector<8x128xf32>
    %372 = arith.addf %370, %371 : vector<8x128xf32>
    %373 = arith.negf %372 : vector<8x128xf32>
    %374 = math.exp %373 : vector<8x128xf32>
    %cst_93 = arith.constant 1.000000e+00 : f32
    %375 = vector.broadcast %cst_93 : f32 to vector<8x128xf32>
    %376 = arith.addf %375, %374 : vector<8x128xf32>
    %377 = arith.divf %375, %376 : vector<8x128xf32>
    %378 = vector.extract_strided_slice %366 {offsets = [0, 128], sizes = [8, 128], strides = [1, 1]} : vector<8x384xf32> to vector<8x128xf32>
    %379 = vector.extract_strided_slice %369 {offsets = [0, 128], sizes = [8, 128], strides = [1, 1]} : vector<8x384xf32> to vector<8x128xf32>
    %380 = arith.addf %378, %379 : vector<8x128xf32>
    %381 = arith.negf %380 : vector<8x128xf32>
    %382 = math.exp %381 : vector<8x128xf32>
    %cst_94 = arith.constant 1.000000e+00 : f32
    %383 = vector.broadcast %cst_94 : f32 to vector<8x128xf32>
    %384 = arith.addf %383, %382 : vector<8x128xf32>
    %385 = arith.divf %383, %384 : vector<8x128xf32>
    %386 = vector.extract_strided_slice %366 {offsets = [0, 256], sizes = [8, 128], strides = [1, 1]} : vector<8x384xf32> to vector<8x128xf32>
    %387 = vector.extract_strided_slice %369 {offsets = [0, 256], sizes = [8, 128], strides = [1, 1]} : vector<8x384xf32> to vector<8x128xf32>
    %388 = arith.mulf %377, %387 : vector<8x128xf32>
    %389 = arith.addf %386, %388 : vector<8x128xf32>
    %390 = math.tanh %389 : vector<8x128xf32>
    %cst_95 = arith.constant 1.000000e+00 : f32
    %391 = vector.broadcast %cst_95 : f32 to vector<8x128xf32>
    %392 = arith.subf %391, %385 : vector<8x128xf32>
    %393 = arith.mulf %392, %390 : vector<8x128xf32>
    %394 = arith.mulf %385, %326 : vector<8x128xf32>
    %395 = arith.addf %393, %394 : vector<8x128xf32>
    %c7_i32_96 = arith.constant 7 : i32
    %396 = arith.subi %c7_i32_96, %c5_i32 : i32
    %397 = arith.index_cast %396 : i32 to index
    %c0_97 = arith.constant 0 : index
    %c0_98 = arith.constant 0 : index
    %398 = vector.load %arg0[%397, %c0_97, %c0_98] : memref<8x8x128xbf16, #tpu.memory_space<vmem>>, vector<1x8x128xbf16>
    %399 = vector.shape_cast %398 : vector<1x8x128xbf16> to vector<8x128xbf16>
    %cst_99 = arith.constant dense<0.000000e+00> : vector<8x384xf32>
    %400 = tpu.matmul %399, %2, %cst_99 {dimension_numbers = #tpu.dot_dimension_numbers<[1], [0], [0], [1], [0, 0, 1, 1], [], []>} : vector<8x128xbf16>, vector<128x384xbf16>, vector<8x384xf32> -> vector<8x384xf32>
    %401 = arith.addf %400, %12 : vector<8x384xf32>
    %402 = arith.truncf %361 : vector<8x128xf32> to vector<8x128xbf16>
    %cst_100 = arith.constant dense<0.000000e+00> : vector<8x384xf32>
    %403 = tpu.matmul %402, %3, %cst_100 {dimension_numbers = #tpu.dot_dimension_numbers<[1], [0], [0], [1], [0, 0, 1, 1], [], []>} : vector<8x128xbf16>, vector<128x384xbf16>, vector<8x384xf32> -> vector<8x384xf32>
    %404 = arith.addf %403, %15 : vector<8x384xf32>
    %405 = vector.extract_strided_slice %401 {offsets = [0, 0], sizes = [8, 128], strides = [1, 1]} : vector<8x384xf32> to vector<8x128xf32>
    %406 = vector.extract_strided_slice %404 {offsets = [0, 0], sizes = [8, 128], strides = [1, 1]} : vector<8x384xf32> to vector<8x128xf32>
    %407 = arith.addf %405, %406 : vector<8x128xf32>
    %408 = arith.negf %407 : vector<8x128xf32>
    %409 = math.exp %408 : vector<8x128xf32>
    %cst_101 = arith.constant 1.000000e+00 : f32
    %410 = vector.broadcast %cst_101 : f32 to vector<8x128xf32>
    %411 = arith.addf %410, %409 : vector<8x128xf32>
    %412 = arith.divf %410, %411 : vector<8x128xf32>
    %413 = vector.extract_strided_slice %401 {offsets = [0, 128], sizes = [8, 128], strides = [1, 1]} : vector<8x384xf32> to vector<8x128xf32>
    %414 = vector.extract_strided_slice %404 {offsets = [0, 128], sizes = [8, 128], strides = [1, 1]} : vector<8x384xf32> to vector<8x128xf32>
    %415 = arith.addf %413, %414 : vector<8x128xf32>
    %416 = arith.negf %415 : vector<8x128xf32>
    %417 = math.exp %416 : vector<8x128xf32>
    %cst_102 = arith.constant 1.000000e+00 : f32
    %418 = vector.broadcast %cst_102 : f32 to vector<8x128xf32>
    %419 = arith.addf %418, %417 : vector<8x128xf32>
    %420 = arith.divf %418, %419 : vector<8x128xf32>
    %421 = vector.extract_strided_slice %401 {offsets = [0, 256], sizes = [8, 128], strides = [1, 1]} : vector<8x384xf32> to vector<8x128xf32>
    %422 = vector.extract_strided_slice %404 {offsets = [0, 256], sizes = [8, 128], strides = [1, 1]} : vector<8x384xf32> to vector<8x128xf32>
    %423 = arith.mulf %412, %422 : vector<8x128xf32>
    %424 = arith.addf %421, %423 : vector<8x128xf32>
    %425 = math.tanh %424 : vector<8x128xf32>
    %cst_103 = arith.constant 1.000000e+00 : f32
    %426 = vector.broadcast %cst_103 : f32 to vector<8x128xf32>
    %427 = arith.subf %426, %420 : vector<8x128xf32>
    %428 = arith.mulf %427, %425 : vector<8x128xf32>
    %429 = arith.mulf %420, %361 : vector<8x128xf32>
    %430 = arith.addf %428, %429 : vector<8x128xf32>
    %c6_i32 = arith.constant 6 : i32
    %431 = arith.index_cast %c6_i32 : i32 to index
    %c0_104 = arith.constant 0 : index
    %c0_105 = arith.constant 0 : index
    %432 = vector.load %arg0[%431, %c0_104, %c0_105] : memref<8x8x128xbf16, #tpu.memory_space<vmem>>, vector<1x8x128xbf16>
    %433 = vector.shape_cast %432 : vector<1x8x128xbf16> to vector<8x128xbf16>
    %cst_106 = arith.constant dense<0.000000e+00> : vector<8x384xf32>
    %434 = tpu.matmul %433, %0, %cst_106 {dimension_numbers = #tpu.dot_dimension_numbers<[1], [0], [0], [1], [0, 0, 1, 1], [], []>} : vector<8x128xbf16>, vector<128x384xbf16>, vector<8x384xf32> -> vector<8x384xf32>
    %435 = arith.addf %434, %6 : vector<8x384xf32>
    %436 = arith.truncf %395 : vector<8x128xf32> to vector<8x128xbf16>
    %cst_107 = arith.constant dense<0.000000e+00> : vector<8x384xf32>
    %437 = tpu.matmul %436, %1, %cst_107 {dimension_numbers = #tpu.dot_dimension_numbers<[1], [0], [0], [1], [0, 0, 1, 1], [], []>} : vector<8x128xbf16>, vector<128x384xbf16>, vector<8x384xf32> -> vector<8x384xf32>
    %438 = arith.addf %437, %9 : vector<8x384xf32>
    %439 = vector.extract_strided_slice %435 {offsets = [0, 0], sizes = [8, 128], strides = [1, 1]} : vector<8x384xf32> to vector<8x128xf32>
    %440 = vector.extract_strided_slice %438 {offsets = [0, 0], sizes = [8, 128], strides = [1, 1]} : vector<8x384xf32> to vector<8x128xf32>
    %441 = arith.addf %439, %440 : vector<8x128xf32>
    %442 = arith.negf %441 : vector<8x128xf32>
    %443 = math.exp %442 : vector<8x128xf32>
    %cst_108 = arith.constant 1.000000e+00 : f32
    %444 = vector.broadcast %cst_108 : f32 to vector<8x128xf32>
    %445 = arith.addf %444, %443 : vector<8x128xf32>
    %446 = arith.divf %444, %445 : vector<8x128xf32>
    %447 = vector.extract_strided_slice %435 {offsets = [0, 128], sizes = [8, 128], strides = [1, 1]} : vector<8x384xf32> to vector<8x128xf32>
    %448 = vector.extract_strided_slice %438 {offsets = [0, 128], sizes = [8, 128], strides = [1, 1]} : vector<8x384xf32> to vector<8x128xf32>
    %449 = arith.addf %447, %448 : vector<8x128xf32>
    %450 = arith.negf %449 : vector<8x128xf32>
    %451 = math.exp %450 : vector<8x128xf32>
    %cst_109 = arith.constant 1.000000e+00 : f32
    %452 = vector.broadcast %cst_109 : f32 to vector<8x128xf32>
    %453 = arith.addf %452, %451 : vector<8x128xf32>
    %454 = arith.divf %452, %453 : vector<8x128xf32>
    %455 = vector.extract_strided_slice %435 {offsets = [0, 256], sizes = [8, 128], strides = [1, 1]} : vector<8x384xf32> to vector<8x128xf32>
    %456 = vector.extract_strided_slice %438 {offsets = [0, 256], sizes = [8, 128], strides = [1, 1]} : vector<8x384xf32> to vector<8x128xf32>
    %457 = arith.mulf %446, %456 : vector<8x128xf32>
    %458 = arith.addf %455, %457 : vector<8x128xf32>
    %459 = math.tanh %458 : vector<8x128xf32>
    %cst_110 = arith.constant 1.000000e+00 : f32
    %460 = vector.broadcast %cst_110 : f32 to vector<8x128xf32>
    %461 = arith.subf %460, %454 : vector<8x128xf32>
    %462 = arith.mulf %461, %459 : vector<8x128xf32>
    %463 = arith.mulf %454, %395 : vector<8x128xf32>
    %464 = arith.addf %462, %463 : vector<8x128xf32>
    %c7_i32_111 = arith.constant 7 : i32
    %465 = arith.subi %c7_i32_111, %c6_i32 : i32
    %466 = arith.index_cast %465 : i32 to index
    %c0_112 = arith.constant 0 : index
    %c0_113 = arith.constant 0 : index
    %467 = vector.load %arg0[%466, %c0_112, %c0_113] : memref<8x8x128xbf16, #tpu.memory_space<vmem>>, vector<1x8x128xbf16>
    %468 = vector.shape_cast %467 : vector<1x8x128xbf16> to vector<8x128xbf16>
    %cst_114 = arith.constant dense<0.000000e+00> : vector<8x384xf32>
    %469 = tpu.matmul %468, %2, %cst_114 {dimension_numbers = #tpu.dot_dimension_numbers<[1], [0], [0], [1], [0, 0, 1, 1], [], []>} : vector<8x128xbf16>, vector<128x384xbf16>, vector<8x384xf32> -> vector<8x384xf32>
    %470 = arith.addf %469, %12 : vector<8x384xf32>
    %471 = arith.truncf %430 : vector<8x128xf32> to vector<8x128xbf16>
    %cst_115 = arith.constant dense<0.000000e+00> : vector<8x384xf32>
    %472 = tpu.matmul %471, %3, %cst_115 {dimension_numbers = #tpu.dot_dimension_numbers<[1], [0], [0], [1], [0, 0, 1, 1], [], []>} : vector<8x128xbf16>, vector<128x384xbf16>, vector<8x384xf32> -> vector<8x384xf32>
    %473 = arith.addf %472, %15 : vector<8x384xf32>
    %474 = vector.extract_strided_slice %470 {offsets = [0, 0], sizes = [8, 128], strides = [1, 1]} : vector<8x384xf32> to vector<8x128xf32>
    %475 = vector.extract_strided_slice %473 {offsets = [0, 0], sizes = [8, 128], strides = [1, 1]} : vector<8x384xf32> to vector<8x128xf32>
    %476 = arith.addf %474, %475 : vector<8x128xf32>
    %477 = arith.negf %476 : vector<8x128xf32>
    %478 = math.exp %477 : vector<8x128xf32>
    %cst_116 = arith.constant 1.000000e+00 : f32
    %479 = vector.broadcast %cst_116 : f32 to vector<8x128xf32>
    %480 = arith.addf %479, %478 : vector<8x128xf32>
    %481 = arith.divf %479, %480 : vector<8x128xf32>
    %482 = vector.extract_strided_slice %470 {offsets = [0, 128], sizes = [8, 128], strides = [1, 1]} : vector<8x384xf32> to vector<8x128xf32>
    %483 = vector.extract_strided_slice %473 {offsets = [0, 128], sizes = [8, 128], strides = [1, 1]} : vector<8x384xf32> to vector<8x128xf32>
    %484 = arith.addf %482, %483 : vector<8x128xf32>
    %485 = arith.negf %484 : vector<8x128xf32>
    %486 = math.exp %485 : vector<8x128xf32>
    %cst_117 = arith.constant 1.000000e+00 : f32
    %487 = vector.broadcast %cst_117 : f32 to vector<8x128xf32>
    %488 = arith.addf %487, %486 : vector<8x128xf32>
    %489 = arith.divf %487, %488 : vector<8x128xf32>
    %490 = vector.extract_strided_slice %470 {offsets = [0, 256], sizes = [8, 128], strides = [1, 1]} : vector<8x384xf32> to vector<8x128xf32>
    %491 = vector.extract_strided_slice %473 {offsets = [0, 256], sizes = [8, 128], strides = [1, 1]} : vector<8x384xf32> to vector<8x128xf32>
    %492 = arith.mulf %481, %491 : vector<8x128xf32>
    %493 = arith.addf %490, %492 : vector<8x128xf32>
    %494 = math.tanh %493 : vector<8x128xf32>
    %cst_118 = arith.constant 1.000000e+00 : f32
    %495 = vector.broadcast %cst_118 : f32 to vector<8x128xf32>
    %496 = arith.subf %495, %489 : vector<8x128xf32>
    %497 = arith.mulf %496, %494 : vector<8x128xf32>
    %498 = arith.mulf %489, %430 : vector<8x128xf32>
    %499 = arith.addf %497, %498 : vector<8x128xf32>
    %c7_i32_119 = arith.constant 7 : i32
    %500 = arith.index_cast %c7_i32_119 : i32 to index
    %c0_120 = arith.constant 0 : index
    %c0_121 = arith.constant 0 : index
    %501 = vector.load %arg0[%500, %c0_120, %c0_121] : memref<8x8x128xbf16, #tpu.memory_space<vmem>>, vector<1x8x128xbf16>
    %502 = vector.shape_cast %501 : vector<1x8x128xbf16> to vector<8x128xbf16>
    %cst_122 = arith.constant dense<0.000000e+00> : vector<8x384xf32>
    %503 = tpu.matmul %502, %0, %cst_122 {dimension_numbers = #tpu.dot_dimension_numbers<[1], [0], [0], [1], [0, 0, 1, 1], [], []>} : vector<8x128xbf16>, vector<128x384xbf16>, vector<8x384xf32> -> vector<8x384xf32>
    %504 = arith.addf %503, %6 : vector<8x384xf32>
    %505 = arith.truncf %464 : vector<8x128xf32> to vector<8x128xbf16>
    %cst_123 = arith.constant dense<0.000000e+00> : vector<8x384xf32>
    %506 = tpu.matmul %505, %1, %cst_123 {dimension_numbers = #tpu.dot_dimension_numbers<[1], [0], [0], [1], [0, 0, 1, 1], [], []>} : vector<8x128xbf16>, vector<128x384xbf16>, vector<8x384xf32> -> vector<8x384xf32>
    %507 = arith.addf %506, %9 : vector<8x384xf32>
    %508 = vector.extract_strided_slice %504 {offsets = [0, 0], sizes = [8, 128], strides = [1, 1]} : vector<8x384xf32> to vector<8x128xf32>
    %509 = vector.extract_strided_slice %507 {offsets = [0, 0], sizes = [8, 128], strides = [1, 1]} : vector<8x384xf32> to vector<8x128xf32>
    %510 = arith.addf %508, %509 : vector<8x128xf32>
    %511 = arith.negf %510 : vector<8x128xf32>
    %512 = math.exp %511 : vector<8x128xf32>
    %cst_124 = arith.constant 1.000000e+00 : f32
    %513 = vector.broadcast %cst_124 : f32 to vector<8x128xf32>
    %514 = arith.addf %513, %512 : vector<8x128xf32>
    %515 = arith.divf %513, %514 : vector<8x128xf32>
    %516 = vector.extract_strided_slice %504 {offsets = [0, 128], sizes = [8, 128], strides = [1, 1]} : vector<8x384xf32> to vector<8x128xf32>
    %517 = vector.extract_strided_slice %507 {offsets = [0, 128], sizes = [8, 128], strides = [1, 1]} : vector<8x384xf32> to vector<8x128xf32>
    %518 = arith.addf %516, %517 : vector<8x128xf32>
    %519 = arith.negf %518 : vector<8x128xf32>
    %520 = math.exp %519 : vector<8x128xf32>
    %cst_125 = arith.constant 1.000000e+00 : f32
    %521 = vector.broadcast %cst_125 : f32 to vector<8x128xf32>
    %522 = arith.addf %521, %520 : vector<8x128xf32>
    %523 = arith.divf %521, %522 : vector<8x128xf32>
    %524 = vector.extract_strided_slice %504 {offsets = [0, 256], sizes = [8, 128], strides = [1, 1]} : vector<8x384xf32> to vector<8x128xf32>
    %525 = vector.extract_strided_slice %507 {offsets = [0, 256], sizes = [8, 128], strides = [1, 1]} : vector<8x384xf32> to vector<8x128xf32>
    %526 = arith.mulf %515, %525 : vector<8x128xf32>
    %527 = arith.addf %524, %526 : vector<8x128xf32>
    %528 = math.tanh %527 : vector<8x128xf32>
    %cst_126 = arith.constant 1.000000e+00 : f32
    %529 = vector.broadcast %cst_126 : f32 to vector<8x128xf32>
    %530 = arith.subf %529, %523 : vector<8x128xf32>
    %531 = arith.mulf %530, %528 : vector<8x128xf32>
    %532 = arith.mulf %523, %464 : vector<8x128xf32>
    %533 = arith.addf %531, %532 : vector<8x128xf32>
    %c7_i32_127 = arith.constant 7 : i32
    %534 = arith.subi %c7_i32_127, %c7_i32_119 : i32
    %535 = arith.index_cast %534 : i32 to index
    %c0_128 = arith.constant 0 : index
    %c0_129 = arith.constant 0 : index
    %536 = vector.load %arg0[%535, %c0_128, %c0_129] : memref<8x8x128xbf16, #tpu.memory_space<vmem>>, vector<1x8x128xbf16>
    %537 = vector.shape_cast %536 : vector<1x8x128xbf16> to vector<8x128xbf16>
    %cst_130 = arith.constant dense<0.000000e+00> : vector<8x384xf32>
    %538 = tpu.matmul %537, %2, %cst_130 {dimension_numbers = #tpu.dot_dimension_numbers<[1], [0], [0], [1], [0, 0, 1, 1], [], []>} : vector<8x128xbf16>, vector<128x384xbf16>, vector<8x384xf32> -> vector<8x384xf32>
    %539 = arith.addf %538, %12 : vector<8x384xf32>
    %540 = arith.truncf %499 : vector<8x128xf32> to vector<8x128xbf16>
    %cst_131 = arith.constant dense<0.000000e+00> : vector<8x384xf32>
    %541 = tpu.matmul %540, %3, %cst_131 {dimension_numbers = #tpu.dot_dimension_numbers<[1], [0], [0], [1], [0, 0, 1, 1], [], []>} : vector<8x128xbf16>, vector<128x384xbf16>, vector<8x384xf32> -> vector<8x384xf32>
    %542 = arith.addf %541, %15 : vector<8x384xf32>
    %543 = vector.extract_strided_slice %539 {offsets = [0, 0], sizes = [8, 128], strides = [1, 1]} : vector<8x384xf32> to vector<8x128xf32>
    %544 = vector.extract_strided_slice %542 {offsets = [0, 0], sizes = [8, 128], strides = [1, 1]} : vector<8x384xf32> to vector<8x128xf32>
    %545 = arith.addf %543, %544 : vector<8x128xf32>
    %546 = arith.negf %545 : vector<8x128xf32>
    %547 = math.exp %546 : vector<8x128xf32>
    %cst_132 = arith.constant 1.000000e+00 : f32
    %548 = vector.broadcast %cst_132 : f32 to vector<8x128xf32>
    %549 = arith.addf %548, %547 : vector<8x128xf32>
    %550 = arith.divf %548, %549 : vector<8x128xf32>
    %551 = vector.extract_strided_slice %539 {offsets = [0, 128], sizes = [8, 128], strides = [1, 1]} : vector<8x384xf32> to vector<8x128xf32>
    %552 = vector.extract_strided_slice %542 {offsets = [0, 128], sizes = [8, 128], strides = [1, 1]} : vector<8x384xf32> to vector<8x128xf32>
    %553 = arith.addf %551, %552 : vector<8x128xf32>
    %554 = arith.negf %553 : vector<8x128xf32>
    %555 = math.exp %554 : vector<8x128xf32>
    %cst_133 = arith.constant 1.000000e+00 : f32
    %556 = vector.broadcast %cst_133 : f32 to vector<8x128xf32>
    %557 = arith.addf %556, %555 : vector<8x128xf32>
    %558 = arith.divf %556, %557 : vector<8x128xf32>
    %559 = vector.extract_strided_slice %539 {offsets = [0, 256], sizes = [8, 128], strides = [1, 1]} : vector<8x384xf32> to vector<8x128xf32>
    %560 = vector.extract_strided_slice %542 {offsets = [0, 256], sizes = [8, 128], strides = [1, 1]} : vector<8x384xf32> to vector<8x128xf32>
    %561 = arith.mulf %550, %560 : vector<8x128xf32>
    %562 = arith.addf %559, %561 : vector<8x128xf32>
    %563 = math.tanh %562 : vector<8x128xf32>
    %cst_134 = arith.constant 1.000000e+00 : f32
    %564 = vector.broadcast %cst_134 : f32 to vector<8x128xf32>
    %565 = arith.subf %564, %558 : vector<8x128xf32>
    %566 = arith.mulf %565, %563 : vector<8x128xf32>
    %567 = arith.mulf %558, %499 : vector<8x128xf32>
    %568 = arith.addf %566, %567 : vector<8x128xf32>
    %c8_i32 = arith.constant 8 : i32
    %569 = arith.truncf %533 : vector<8x128xf32> to vector<8x128xbf16>
    %c0_135 = arith.constant 0 : index
    %c0_136 = arith.constant 0 : index
    %570 = vector.load %arg9[%c0_135, %c0_136] : memref<128x128xbf16, #tpu.memory_space<vmem>>, vector<128x128xbf16>
    %cst_137 = arith.constant dense<0.000000e+00> : vector<8x128xf32>
    %571 = tpu.matmul %569, %570, %cst_137 {dimension_numbers = #tpu.dot_dimension_numbers<[1], [0], [0], [1], [0, 0, 1, 1], [], []>} : vector<8x128xbf16>, vector<128x128xbf16>, vector<8x128xf32> -> vector<8x128xf32>
    %572 = arith.truncf %568 : vector<8x128xf32> to vector<8x128xbf16>
    %c0_138 = arith.constant 0 : index
    %c0_139 = arith.constant 0 : index
    %573 = vector.load %arg10[%c0_138, %c0_139] : memref<128x128xbf16, #tpu.memory_space<vmem>>, vector<128x128xbf16>
    %cst_140 = arith.constant dense<0.000000e+00> : vector<8x128xf32>
    %574 = tpu.matmul %572, %573, %cst_140 {dimension_numbers = #tpu.dot_dimension_numbers<[1], [0], [0], [1], [0, 0, 1, 1], [], []>} : vector<8x128xbf16>, vector<128x128xbf16>, vector<8x128xf32> -> vector<8x128xf32>
    %575 = arith.addf %571, %574 : vector<8x128xf32>
    %c0_141 = arith.constant 0 : index
    %c0_142 = arith.constant 0 : index
    %576 = vector.load %arg11[%c0_141, %c0_142] : memref<1x128xf32, #tpu.memory_space<vmem>>, vector<1x128xf32>
    %577 = vector.broadcast %576 : vector<1x128xf32> to vector<8x128xf32>
    %578 = arith.addf %575, %577 : vector<8x128xf32>
    %579 = math.tanh %578 : vector<8x128xf32>
    %c0_143 = arith.constant 0 : index
    %c0_144 = arith.constant 0 : index
    %580 = vector.load %arg12[%c0_143, %c0_144] : memref<8x128xf32, #tpu.memory_space<vmem>>, vector<8x128xf32>
    tpu.vector_store %arg12[%c0_143, %c0_144], %579 {strides = array<i32>} : memref<8x128xf32, #tpu.memory_space<vmem>>, vector<8x128xf32>,
    return
  }
}

</mosaic_0001>

<bundles_post_ra>
// kernel: tpu_custom_call.1
= control target key start
LH: loop header
LB: loop body
LE: loop exit
PB: predicated region body
PF: predicated region fallthrough
CT: control target
= control target key end

     0   :  { %17 = vsyncpa [#allocation3], 0  ;;  %s8184_s0 = inlined_call_operand.hbm [shape: bf16[8,8,128], index: 0, kind: input, shape index: {}]   ;;  %s8185_s1 = inlined_call_operand.hbm [shape: bf16[128,384], index: 1, kind: input, shape index: {}]   ;;  %s8186_s2 = inlined_call_operand.hbm [shape: bf16[128,384], index: 2, kind: input, shape index: {}]   ;;  %s8187_s3 = inlined_call_operand.vmem [shape: f32[1,384], index: 3, kind: input, shape index: {}]   ;;  %s8188_s4 = inlined_call_operand.vmem [shape: f32[1,384], index: 4, kind: input, shape index: {}]   ;;  %s8189_s5 = inlined_call_operand.hbm [shape: bf16[128,384], index: 5, kind: input, shape index: {}]   ;;  %s8190_s6 = inlined_call_operand.hbm [shape: bf16[128,384], index: 6, kind: input, shape index: {}]   ;;  %s8191_s7 = inlined_call_operand.vmem [shape: f32[1,384], index: 7, kind: input, shape index: {}]   ;;  %s8192_s8 = inlined_call_operand.vmem [shape: f32[1,384], index: 8, kind: input, shape index: {}]   ;;  %s8193_s9 = inlined_call_operand.hbm [shape: bf16[128,128], index: 9, kind: input, shape index: {}]   ;;  %s8194_s10 = inlined_call_operand.hbm [shape: bf16[128,128], index: 10, kind: input, shape index: {}]   ;;  %s8195_s11 = inlined_call_operand.vmem [shape: f32[1,128], index: 11, kind: input, shape index: {}]   ;;  %s8196_s12 = inlined_call_operand.hbm [shape: f32[8,128], index: 12, kind: output, shape index: {}]  }
   0x1   :  { %18 = vsyncpa [#allocation6], 0 }
   0x2   :  { %19 = vsyncpa [#allocation9], 0 }
   0x3   :  { %20 = vsyncpa [#allocation12], 0 }
   0x4   :  { %21 = vsyncpa [#allocation4], 0  ;;  %s6005_s21 = smov [#allocation5]   ;;  %s5819_s25 = scalar_lea.hbm %s8185_s1, 3072 }
   0x5   :  { %s39_s22 = sshll.u32 %s6005_s21, 4  ;;  %p5820_p0 = scmp.ne.s32.totalorder %s8185_s1, %s5819_s25  ;;  %s40_s22 = int_to_ptr.vmem [resolvable:$true] %s39_s22 }
   0x6   :  { %p5823_p1 = scmp.lt.u32.totalorder %s5819_s25, %s8185_s1 }
   0x8   :  { %p5825_p2 = pnand %p5823_p1, %p5820_p0 }
   0xa   :  { %5828 = shalt.err (!%p5825_p2)
}
   0xb   :  { %s5829_s30 = scalar_lea.vmem %s40_s22, 3072  ;;  %p5834_p4 = scmp.lt.s32.totalorder %s40_s22, %s40_s22 }
   0xc   :  { %p5830_p3 = scmp.ne.s32.totalorder %s40_s22, %s5829_s30  ;;  %p5835_p5 = scmp.lt.s32.totalorder %s5829_s30, %s5829_s30 }
   0xe   :  { %p5836_p6 = por %p5835_p5, %p5834_p4 }
  0x10   :  { %p5837_p7 = pnand %p5836_p6, %p5830_p3 }
  0x12   :  { %5840 = shalt.err (!%p5837_p7)
}
  0x13   :  { %s6006_s13 = smov 192   ;;  %s6007_s14 = smov 12  }
  0x14   :  { %45 = dma.hbm_to_vmem [thread:$0]  %s8185_s1, 3072, %s40_s22, [#allocation6], %s6006_s13, %s6006_s13, %s6007_s14  }
  0x15   :  { %s6008_s17 = smov [#allocation8]   ;;  %s5841_s21 = scalar_lea.hbm %s8189_s5, 3072 }
  0x16   :  { %s67_s18 = sshll.u32 %s6008_s17, 4  ;;  %p5842_p8 = scmp.ne.s32.totalorder %s8189_s5, %s5841_s21  ;;  %s68_s18 = int_to_ptr.vmem [resolvable:$true] %s67_s18 }
  0x17   :  { %p5845_p9 = scmp.lt.u32.totalorder %s5841_s21, %s8189_s5 }
  0x19   :  { %p5847_p10 = pnand %p5845_p9, %p5842_p8 }
  0x1b   :  { %5850 = shalt.err (!%p5847_p10)
}
  0x1c   :  { %s5851_s27 = scalar_lea.vmem %s68_s18, 3072  ;;  %p5856_p12 = scmp.lt.s32.totalorder %s68_s18, %s68_s18 }
  0x1d   :  { %p5852_p11 = scmp.ne.s32.totalorder %s68_s18, %s5851_s27  ;;  %p5857_p13 = scmp.lt.s32.totalorder %s5851_s27, %s5851_s27 }
  0x1f   :  { %p5858_p0 = por %p5857_p13, %p5856_p12 }
  0x21   :  { %p5859_p1 = pnand %p5858_p0, %p5852_p11 }
  0x23   :  { %5862 = shalt.err (!%p5859_p1)
}
  0x24   :  { %73 = dma.hbm_to_vmem [thread:$0]  %s8189_s5, 3072, %s68_s18, [#allocation9], %s6006_s13, %s6006_s13, %s6007_s14  }
  0x25   :  { %s6009_s28 = smov [#allocation11]   ;;  %s6010_s30 = smov [#allocation2]  }
  0x26   :  { %s95_s29 = sshll.u32 %s6009_s28, 4  ;;  %s27_s15 = sshll.u32 %s6010_s30, 4  ;;  %s96_s29 = int_to_ptr.vmem [resolvable:$true] %s95_s29  ;;  %s6115_s15 = int_to_ptr.vmem [resolvable:$true] %s27_s15 }
  0x27   :  { %s5863_s19 = scalar_lea.hbm %s8193_s9, 1024 }
  0x28   :  { %p5864_p2 = scmp.ne.s32.totalorder %s8193_s9, %s5863_s19  ;;  %p5867_p3 = scmp.lt.u32.totalorder %s5863_s19, %s8193_s9 }
  0x2a   :  { %p5869_p4 = pnand %p5867_p3, %p5864_p2 }
  0x2c   :  { %5872 = shalt.err (!%p5869_p4)
}
  0x2d   :  { %s5873_s5 = scalar_lea.vmem %s96_s29, 1024  ;;  %p5878_p6 = scmp.lt.s32.totalorder %s96_s29, %s96_s29 }
  0x2e   :  { %p5874_p5 = scmp.ne.s32.totalorder %s96_s29, %s5873_s5  ;;  %p5879_p7 = scmp.lt.s32.totalorder %s5873_s5, %s5873_s5 }
  0x30   :  { %p5880_p8 = por %p5879_p7, %p5878_p6 }
  0x32   :  { %p5881_p9 = pnand %p5880_p8, %p5874_p5 }
  0x34   :  { %5884 = shalt.err (!%p5881_p9)
}
  0x35   :  { %s6011_s18 = smov 64   ;;  %s6012_s25 = smov 4  }
  0x36   :  { %101 = dma.hbm_to_vmem [thread:$0]  %s8193_s9, 1024, %s96_s29, [#allocation12], %s6011_s18, %s6011_s18, %s6012_s25  }
  0x37   :  { %s5885_s28 = scalar_lea.hbm %s8184_s0, 512 }
  0x38   :  { %p5886_p10 = scmp.ne.s32.totalorder %s8184_s0, %s5885_s28  ;;  %p5889_p11 = scmp.lt.u32.totalorder %s5885_s28, %s8184_s0 }
  0x3a   :  { %p5891_p12 = pnand %p5889_p11, %p5886_p10 }
  0x3c   :  { %5894 = shalt.err (!%p5891_p12)
}
  0x3d   :  { %s5895_s20 = scalar_lea.vmem %s6115_s15, 512  ;;  %p5900_p0 = scmp.lt.s32.totalorder %s6115_s15, %s6115_s15 }
  0x3e   :  { %p5896_p13 = scmp.ne.s32.totalorder %s6115_s15, %s5895_s20  ;;  %p5901_p1 = scmp.lt.s32.totalorder %s5895_s20, %s5895_s20 }
  0x40   :  { %p5902_p2 = por %p5901_p1, %p5900_p0 }
  0x42   :  { %p5903_p3 = pnand %p5902_p2, %p5896_p13 }
  0x44   :  { %5906 = shalt.err (!%p5903_p3)
}
  0x45   :  { %33 = dma.hbm_to_vmem [thread:$0]  %s8184_s0, 512, %s6115_s15, [#allocation3], %s6011_s18, %s6011_s18, %s6012_s25  }
  0x46   :  { %s6013_s21 = smov [#allocation7]   ;;  %s6014_s24 = smov [#allocation10]  }
  0x47   :  { %s51_s23 = sshll.u32 %s6013_s21, 4  ;;  %s79_s5 = sshll.u32 %s6014_s24, 4  ;;  %s52_s23 = int_to_ptr.vmem [resolvable:$true] %s51_s23  ;;  %s6152_s5 = int_to_ptr.vmem [resolvable:$true] %s79_s5 }
  0x48   :  { %s5907_s1 = scalar_lea.hbm %s8186_s2, 3072 }
  0x49   :  { %p5908_p4 = scmp.ne.s32.totalorder %s8186_s2, %s5907_s1  ;;  %p5911_p5 = scmp.lt.u32.totalorder %s5907_s1, %s8186_s2 }
  0x4b   :  { %p5913_p6 = pnand %p5911_p5, %p5908_p4 }
  0x4d   :  { %5916 = shalt.err (!%p5913_p6)
}
  0x4e   :  { %s5917_s0 = scalar_lea.vmem %s52_s23, 3072  ;;  %p5922_p8 = scmp.lt.s32.totalorder %s52_s23, %s52_s23 }
  0x4f   :  { %p5918_p7 = scmp.ne.s32.totalorder %s52_s23, %s5917_s0  ;;  %p5923_p9 = scmp.lt.s32.totalorder %s5917_s0, %s5917_s0 }
  0x51   :  { %p5924_p10 = por %p5923_p9, %p5922_p8 }
  0x53   :  { %p5925_p11 = pnand %p5924_p10, %p5918_p7 }
  0x55   :  { %5928 = shalt.err (!%p5925_p11)
}
  0x56   :  { %57 = dma.hbm_to_vmem [thread:$0]  %s8186_s2, 3072, %s52_s23, [#allocation6], %s6006_s13, %s6006_s13, %s6007_s14  }
  0x57   :  { %s5929_s9 = scalar_lea.hbm %s8190_s6, 3072 }
  0x58   :  { %p5930_p12 = scmp.ne.s32.totalorder %s8190_s6, %s5929_s9  ;;  %p5933_p13 = scmp.lt.u32.totalorder %s5929_s9, %s8190_s6 }
  0x5a   :  { %p5935_p0 = pnand %p5933_p13, %p5930_p12 }
  0x5c   :  { %5938 = shalt.err (!%p5935_p0)
}
  0x5d   :  { %s5939_s27 = scalar_lea.vmem %s6152_s5, 3072  ;;  %p5944_p2 = scmp.lt.s32.totalorder %s6152_s5, %s6152_s5 }
  0x5e   :  { %p5940_p1 = scmp.ne.s32.totalorder %s6152_s5, %s5939_s27  ;;  %p5945_p3 = scmp.lt.s32.totalorder %s5939_s27, %s5939_s27 }
  0x60   :  { %p5946_p4 = por %p5945_p3, %p5944_p2 }
  0x62   :  { %p5947_p5 = pnand %p5946_p4, %p5940_p1 }
  0x64   :  { %5950 = shalt.err (!%p5947_p5)
}
  0x65   :  { %85 = dma.hbm_to_vmem [thread:$0]  %s8190_s6, 3072, %s6152_s5, [#allocation9], %s6006_s13, %s6006_s13, %s6007_s14  }
  0x66   :  { %s6015_s1 = smov [#allocation13]   ;;  %s5951_s16 = scalar_lea.hbm %s8194_s10, 1024 }
  0x67   :  { %s107_s22 = sshll.u32 %s6015_s1, 4  ;;  %p5952_p6 = scmp.ne.s32.totalorder %s8194_s10, %s5951_s16  ;;  %s108_s22 = int_to_ptr.vmem [resolvable:$true] %s107_s22 }
  0x68   :  { %p5955_p7 = scmp.lt.u32.totalorder %s5951_s16, %s8194_s10 }
  0x6a   :  { %p5957_p8 = pnand %p5955_p7, %p5952_p6 }
  0x6c   :  { %5960 = shalt.err (!%p5957_p8)
}
  0x6d   :  { %s5961_s20 = scalar_lea.vmem %s108_s22, 1024  ;;  %p5966_p10 = scmp.lt.s32.totalorder %s108_s22, %s108_s22 }
  0x6e   :  { %p5962_p9 = scmp.ne.s32.totalorder %s108_s22, %s5961_s20  ;;  %p5967_p11 = scmp.lt.s32.totalorder %s5961_s20, %s5961_s20 }
  0x70   :  { %p5968_p12 = por %p5967_p11, %p5966_p10 }
  0x72   :  { %p5969_p13 = pnand %p5968_p12, %p5962_p9 }
  0x74   :  { %5972 = shalt.err (!%p5969_p13)
}
  0x75   :  { %113 = dma.hbm_to_vmem [thread:$0]  %s8194_s10, 1024, %s108_s22, [#allocation12], %s6011_s18, %s6011_s18, %s6012_s25  }
  0x76   :  { %5995 = dma.done.wait [#allocation3], 512  }
  0x77   :  { %5996 = vsyncadd [#allocation3], 4294966784 }
  0x78   :  { %5997 = dma.done.wait [#allocation6], 6144  }
  0x79   :  { %5998 = vsyncadd [#allocation6], 4294961152 }
  0x7a   :  { %5999 = dma.done.wait [#allocation9], 6144  }
  0x7b   :  { %6000 = vsyncadd [#allocation9], 4294961152 }
  0x7c   :  { %6001 = dma.done.wait [#allocation12], 2048  }
  0x7d   :  { %6002 = vsyncadd [#allocation12], 4294965248  ;;  %v8350_v0 = vmov 0.0   ;;  %v8197_v1 = vmov 0   ;;  %vm6018_vm0 = vmmov 0   ;;  %s6019_s29 = smov [#allocation14]  }
  0x7e   :  { %4492 = vmatprep.subr.bf16.mxu1 %v8350_v0  ;;  %495 = vmatprep.mubr.bf16.mxu0 %v8197_v1  ;;  %v6208_v2 = vld [vmem:[#allocation5 + $0x4] ss:$12 sps:$4 sm:$0xff]   ;;  %v6210_v3 = vld [vmem:[#allocation5] ss:$12 sps:$4 sm:$0xff]   ;;  %v6213_v4 = vld [vmem:[#allocation5 + $0x1c] ss:$12 sps:$4 sm:$0xff]  }
  0x7f   :  { %4508 = vmatprep.mubr.msk.bf16.mxu1 %vm6018_vm0, %v8350_v0  ;;  %463 = vmatprep.subr.bf16.mxu0 %v6208_v2  ;;  %v6216_v5 = vld [vmem:[#allocation5 + $0x18] ss:$12 sps:$4 sm:$0xff]   ;;  %v6219_v6 = vld [vmem:[#allocation5 + $0x34] ss:$12 sps:$4 sm:$0xff]   ;;  %v6222_v7 = vld [vmem:[#allocation5 + $0x30] ss:$12 sps:$4 sm:$0xff]  }
  0x80   :  { %464 = vmatpush1.bf16.msra.mxu0 %v6210_v3  ;;  %v6225_v8 = vld [vmem:[#allocation5 + $0x4c] ss:$12 sps:$4 sm:$0xff]   ;;  %v6227_v9 = vld [vmem:[#allocation5 + $0x8] ss:$12 sps:$4 sm:$0xff]   ;;  %v6234_v11 = vld [vmem:[#allocation5 + $0x64] ss:$12 sps:$4 sm:$0xff]  }
  0x81   :  { %465 = vmatprep.subr.bf16.mxu0 %v6213_v4  ;;  %v6230_v10 = vld [vmem:[#allocation5 + $0x48] ss:$12 sps:$4 sm:$0xff]   ;;  %4493 = vmatpush3.bf16.msra.mxu1 %v6227_v9  ;;  %v6237_v12 = vld [vmem:[#allocation5 + $0x20] ss:$12 sps:$4 sm:$0xff]   ;;  %v6243_v14 = vld [vmem:[#allocation5 + $0x38] ss:$12 sps:$4 sm:$0xff]  }
  0x82   :  { %4494 = vmatprep.subr.bf16.mxu1 %v8350_v0  ;;  %v6239_v13 = vld [vmem:[#allocation5 + $0x60] ss:$12 sps:$4 sm:$0xff]   ;;  %v6246_v15 = vld [vmem:[#allocation5 + $0x7c] ss:$12 sps:$4 sm:$0xff]   ;;  %v6250_v16 = vld [vmem:[#allocation5 + $0x78] ss:$12 sps:$4 sm:$0xff]  }
  0x83   :  { %v6253_v17 = vld [vmem:[#allocation5 + $0x50] ss:$12 sps:$4 sm:$0xff]   ;;  %v6256_v18 = vld [vmem:[#allocation5 + $0x94] ss:$12 sps:$4 sm:$0xff]   ;;  %v6266_v21 = vld [vmem:[#allocation5 + $0xac] ss:$12 sps:$4 sm:$0xff]  }
  0x84   :  { %466 = vmatpush1.bf16.msra.mxu0 %v6216_v5  ;;  %v6259_v19 = vld [vmem:[#allocation5 + $0x90] ss:$12 sps:$4 sm:$0xff]   ;;  %v6263_v20 = vld [vmem:[#allocation5 + $0x68] ss:$12 sps:$4 sm:$0xff]   ;;  %v6273_v23 = vld [vmem:[#allocation5 + $0x80] ss:$12 sps:$4 sm:$0xff]  }
  0x85   :  { %467 = vmatprep.subr.bf16.mxu0 %v6219_v6  ;;  %4495 = vmatpush3.bf16.msra.mxu1 %v6237_v12  ;;  %v6269_v22 = vld [vmem:[#allocation5 + $0xa8] ss:$12 sps:$4 sm:$0xff]   ;;  %v6276_v24 = vld [vmem:[#allocation7 + $0x4] ss:$12 sps:$4 sm:$0xff]   ;;  %v334_v25 = vld [vmem:[#allocation2] sm:$0xf] }
  0x86   :  { %4496 = vmatprep.subr.bf16.mxu1 %v8350_v0  ;;  %v6280_v26 = vld [vmem:[#allocation7] ss:$12 sps:$4 sm:$0xff]   ;;  %v6283_v27 = vld [vmem:[#allocation5 + $0x98] ss:$12 sps:$4 sm:$0xff]   ;;  %v6286_v28 = vld [vmem:[#allocation7 + $0x1c] ss:$12 sps:$4 sm:$0xff]  }
  0x87   :  { %v6289_v29 = vld [vmem:[#allocation7 + $0x18] ss:$12 sps:$4 sm:$0xff]   ;;  %v6293_v30 = vld [vmem:[#allocation5 + $0xb0] ss:$12 sps:$4 sm:$0xff]   ;;  %v6296_v31 = vld [vmem:[#allocation7 + $0x34] ss:$12 sps:$4 sm:$0xff]  }
  0x88   :  { %468 = vmatpush1.bf16.msra.mxu0 %v6222_v7  ;;  %v6300_v32 = vld [vmem:[#allocation7 + $0x30] ss:$12 sps:$4 sm:$0xff]   ;;  %v6304_v33 = vld [vmem:[#allocation7 + $0x8] ss:$12 sps:$4 sm:$0xff]   ;;  %v6307_v34 = vld [vmem:[#allocation7 + $0x4c] ss:$12 sps:$4 sm:$0xff]  }
  0x89   :  { %469 = vmatprep.subr.bf16.mxu0 %v6225_v8  ;;  %4497 = vmatpush3.bf16.msra.mxu1 %v6243_v14  ;;  %v6310_v35 = vld [vmem:[#allocation7 + $0x48] ss:$12 sps:$4 sm:$0xff]   ;;  %v6314_v36 = vld [vmem:[#allocation7 + $0x20] ss:$12 sps:$4 sm:$0xff]   ;;  %v6317_v37 = vld [vmem:[#allocation7 + $0x64] ss:$12 sps:$4 sm:$0xff]  }
  0x8a   :  { %4498 = vmatprep.subr.bf16.mxu1 %v8350_v0  ;;  %v6323_v38 = vld [vmem:[#allocation7 + $0x60] ss:$12 sps:$4 sm:$0xff]   ;;  %v6326_v39 = vld [vmem:[#allocation7 + $0x38] ss:$12 sps:$4 sm:$0xff]   ;;  %v6329_v40 = vld [vmem:[#allocation7 + $0x7c] ss:$12 sps:$4 sm:$0xff]  }
  0x8b   :  { %v6332_v41 = vld [vmem:[#allocation7 + $0x78] ss:$12 sps:$4 sm:$0xff]   ;;  %v6336_v42 = vld [vmem:[#allocation7 + $0x50] ss:$12 sps:$4 sm:$0xff]   ;;  %v6339_v43 = vld [vmem:[#allocation7 + $0x94] ss:$12 sps:$4 sm:$0xff]  }
  0x8c   :  { %470 = vmatpush1.bf16.msra.mxu0 %v6230_v10  ;;  %v6342_v44 = vld [vmem:[#allocation7 + $0x90] ss:$12 sps:$4 sm:$0xff]   ;;  %v6346_v45 = vld [vmem:[#allocation7 + $0x68] ss:$12 sps:$4 sm:$0xff]   ;;  %v6349_v46 = vld [vmem:[#allocation7 + $0xac] ss:$12 sps:$4 sm:$0xff]  }
  0x8d   :  { %471 = vmatprep.subr.bf16.mxu0 %v6234_v11  ;;  %4499 = vmatpush3.bf16.msra.mxu1 %v6253_v17  ;;  %v6353_v47 = vld [vmem:[#allocation7 + $0xa8] ss:$12 sps:$4 sm:$0xff]   ;;  %v6356_v48 = vld [vmem:[#allocation7 + $0x80] ss:$12 sps:$4 sm:$0xff]   ;;  %v6359_v49 = vld [vmem:[#allocation8 + $0x4] ss:$12 sps:$4 sm:$0xff]  }
  0x8e   :  { %4500 = vmatprep.subr.bf16.mxu1 %v8350_v0  ;;  %v6362_v50 = vld [vmem:[#allocation8] ss:$12 sps:$4 sm:$0xff]   ;;  %v6366_v51 = vld [vmem:[#allocation7 + $0x98] ss:$12 sps:$4 sm:$0xff]   ;;  %v6369_v52 = vld [vmem:[#allocation8 + $0x1c] ss:$12 sps:$4 sm:$0xff]  }
  0x8f   :  { %v6373_v53 = vld [vmem:[#allocation8 + $0x18] ss:$12 sps:$4 sm:$0xff]   ;;  %v6377_v54 = vld [vmem:[#allocation7 + $0xb0] ss:$12 sps:$4 sm:$0xff]   ;;  %v6380_v55 = vld [vmem:[#allocation8 + $0x34] ss:$12 sps:$4 sm:$0xff]  }
  0x90   :  { %472 = vmatpush1.bf16.msra.mxu0 %v6239_v13  ;;  %8558 = vst [vmem:[#allocation20_spill] sm:$0xff] %v6380_v55  ;;  %v6384_v56 = vld [vmem:[#allocation8 + $0x30] ss:$12 sps:$4 sm:$0xff]   ;;  %v6388_v57 = vld [vmem:[#allocation8 + $0x8] ss:$12 sps:$4 sm:$0xff]   ;;  %s4029_s21 = sshll.u32 %s6019_s29, 4  ;;  %s4030_s21 = int_to_ptr.vmem [resolvable:$true] %s4029_s21 }
  0x91   :  { %473 = vmatprep.subr.bf16.mxu0 %v6246_v15  ;;  %4501 = vmatpush3.bf16.msra.mxu1 %v6263_v20  ;;  %8559 = vst [vmem:[#allocation21_spill] sm:$0xff] %v6384_v56  ;;  %v6391_v58 = vld [vmem:[#allocation8 + $0x4c] ss:$12 sps:$4 sm:$0xff]   ;;  %v6394_v59 = vld [vmem:[#allocation8 + $0x48] ss:$12 sps:$4 sm:$0xff]   ;;  %s5973_s24 = scalar_lea.vmem %s4030_s21, 128  ;;  %p5978_p1 = scmp.lt.s32.totalorder %s4030_s21, %s4030_s21 }
  0x92   :  { %4502 = vmatprep.subr.bf16.mxu1 %v8350_v0  ;;  %8560 = vst [vmem:[#allocation22_spill] sm:$0xff] %v6391_v58  ;;  %8561 = vst [vmem:[#allocation23_spill] sm:$0xff] %v6394_v59  ;;  %v6398_v60 = vld [vmem:[#allocation8 + $0x64] ss:$12 sps:$4 sm:$0xff]   ;;  %v6401_v61 = vld [vmem:[#allocation8 + $0x20] ss:$12 sps:$4 sm:$0xff]   ;;  %p5974_p0 = scmp.ne.s32.totalorder %s4030_s21, %s5973_s24  ;;  %p5979_p2 = scmp.lt.s32.totalorder %s5973_s24, %s5973_s24 }
  0x93   :  { %8562 = vst [vmem:[#allocation24_spill] sm:$0xff] %v6398_v60  ;;  %v6405_v62 = vld [vmem:[#allocation8 + $0x60] ss:$12 sps:$4 sm:$0xff]   ;;  %v6407_v63 = vld [vmem:[#allocation8 + $0x38] ss:$12 sps:$4 sm:$0xff]  }
  0x94   :  { %474 = vmatpush1.bf16.msra.mxu0 %v6250_v16  ;;  %8563 = vst [vmem:[#allocation25_spill] sm:$0xff] %v6405_v62  ;;  %8564 = vst [vmem:[#allocation26_spill] sm:$0xff] %v6407_v63  ;;  %p5980_p3 = por %p5979_p2, %p5978_p1 }
  0x95   :  { %475 = vmatprep.subr.bf16.mxu0 %v6256_v18  ;;  %4503 = vmatpush3.bf16.msra.mxu1 %v6273_v23 }
  0x96   :  { %4504 = vmatprep.subr.bf16.mxu1 %v8350_v0  ;;  %p5981_p4 = pnand %p5980_p3, %p5974_p0 }
  0x98   :  { %476 = vmatpush1.bf16.msra.mxu0 %v6259_v19 }
  0x99   :  { %477 = vmatprep.subr.bf16.mxu0 %v6266_v21  ;;  %4505 = vmatpush3.bf16.msra.mxu1 %v6283_v27 }
  0x9a   :  { %4506 = vmatprep.subr.bf16.mxu1 %v8350_v0 }
  0x9c   :  { %478 = vmatpush1.bf16.msra.mxu0 %v6269_v22 }
  0x9d   :  { %672 = vmatprep.subr.bf16.mxu0 %v6276_v24  ;;  %4507 = vmatpush3.bf16.msra.mxu1 %v6293_v30 }
  0x9e   :  { %4512 = vmatprep.subr.bf16.mxu1 %v8350_v0 }
  0x9f   :  { %496 = vmatmul.mubr.bf16.vlgmr.msra.gmra.mrb[0].mxu0 %v334_v25 }
  0xa0   :  { %673 = vmatpush1.bf16.msra.mxu0 %v6280_v26  ;;  %704 = vmatprep.mubr.bf16.mxu0 %v8197_v1 }
  0xa1   :  { %674 = vmatprep.subr.bf16.mxu0 %v6286_v28  ;;  %4509 = vmatmul.mubr.bf16.vlgmr.msra.gmra.mrb[0].mxu1 %v334_v25  ;;  %v6411_v25 = vld [vmem:[#allocation8 + $0x7c] ss:$12 sps:$4 sm:$0xff]  }
  0xa2   :  { %4513 = vmatpush3.bf16.msra.mxu1 %v6304_v33  ;;  %4528 = vmatprep.mubr.msk.bf16.mxu1 %vm6018_vm0, %v8350_v0  ;;  %8565 = vst [vmem:[#allocation27_spill] sm:$0xff] %v6411_v25 }
  0xa3   :  { %4514 = vmatprep.subr.bf16.mxu1 %v8350_v0 }
  0xa4   :  { %675 = vmatpush1.bf16.msra.mxu0 %v6289_v29 }
  0xa5   :  { %676 = vmatprep.subr.bf16.mxu0 %v6296_v31 }
  0xa6   :  { %4515 = vmatpush3.bf16.msra.mxu1 %v6314_v36 }
  0xa7   :  { %4516 = vmatprep.subr.bf16.mxu1 %v8350_v0 }
  0xa8   :  { %677 = vmatpush1.bf16.msra.mxu0 %v6300_v32 }
  0xa9   :  { %678 = vmatprep.subr.bf16.mxu0 %v6307_v34 }
  0xaa   :  { %4517 = vmatpush3.bf16.msra.mxu1 %v6326_v39 }
  0xab   :  { %4518 = vmatprep.subr.bf16.mxu1 %v8350_v0 }
  0xac   :  { %679 = vmatpush1.bf16.msra.mxu0 %v6310_v35 }
  0xad   :  { %680 = vmatprep.subr.bf16.mxu0 %v6317_v37 }
  0xae   :  { %4519 = vmatpush3.bf16.msra.mxu1 %v6336_v42 }
  0xaf   :  { %4520 = vmatprep.subr.bf16.mxu1 %v8350_v0 }
  0xb0   :  { %681 = vmatpush1.bf16.msra.mxu0 %v6323_v38 }
  0xb1   :  { %682 = vmatprep.subr.bf16.mxu0 %v6329_v40 }
  0xb2   :  { %4521 = vmatpush3.bf16.msra.mxu1 %v6346_v45 }
  0xb3   :  { %4522 = vmatprep.subr.bf16.mxu1 %v8350_v0 }
  0xb4   :  { %683 = vmatpush1.bf16.msra.mxu0 %v6332_v41 }
  0xb5   :  { %684 = vmatprep.subr.bf16.mxu0 %v6339_v43 }
  0xb6   :  { %4523 = vmatpush3.bf16.msra.mxu1 %v6356_v48 }
  0xb7   :  { %4524 = vmatprep.subr.bf16.mxu1 %v8350_v0 }
  0xb8   :  { %685 = vmatpush1.bf16.msra.mxu0 %v6342_v44 }
  0xb9   :  { %686 = vmatprep.subr.bf16.mxu0 %v6349_v46 }
  0xba   :  { %4525 = vmatpush3.bf16.msra.mxu1 %v6366_v51 }
  0xbb   :  { %4526 = vmatprep.subr.bf16.mxu1 %v8350_v0 }
  0xbc   :  { %687 = vmatpush1.bf16.msra.mxu0 %v6353_v47 }
  0xbd   :  { %904 = vmatprep.subr.bf16.mxu0 %v6359_v49 }
  0xbe   :  { %4527 = vmatpush3.bf16.msra.mxu1 %v6377_v54 }
  0xbf   :  { %705 = vmatmul.mubr.bf16.vlgmr.msra.gmra.mrb[0].mxu0 %v8197_v1  ;;  %4532 = vmatprep.subr.bf16.mxu1 %v8350_v0 }
  0xc0   :  { %905 = vmatpush1.bf16.msra.mxu0 %v6362_v50  ;;  %936 = vmatprep.mubr.bf16.mxu0 %v8197_v1 }
  0xc1   :  { %906 = vmatprep.subr.bf16.mxu0 %v6369_v52  ;;  %4529 = vmatmul.mubr.bf16.vlgmr.msra.gmra.mrb[4].mxu1 %v8197_v1  ;;  %v6417_v1 = vld [vmem:[#allocation8 + $0x78] ss:$12 sps:$4 sm:$0xff]  }
  0xc2   :  { %4533 = vmatpush3.bf16.msra.mxu1 %v6388_v57  ;;  %4548 = vmatprep.mubr.msk.bf16.mxu1 %vm6018_vm0, %v8350_v0  ;;  %8566 = vst [vmem:[#allocation28_spill] sm:$0xff] %v6417_v1 }
  0xc3   :  { %4534 = vmatprep.subr.bf16.mxu1 %v8350_v0 }
  0xc4   :  { %907 = vmatpush1.bf16.msra.mxu0 %v6373_v53 }
  0xc5   :  { %908 = vmatprep.subr.bf16.mxu0 %v6380_v55  ;;  %v6434_v55 = vld [vmem:[#allocation8 + $0xac] ss:$12 sps:$4 sm:$0xff]  }
  0xc6   :  { %4535 = vmatpush3.bf16.msra.mxu1 %v6401_v61  ;;  %8571 = vst [vmem:[#allocation33_spill] sm:$0xff] %v6434_v55 }
  0xc7   :  { %4536 = vmatprep.subr.bf16.mxu1 %v8350_v0 }
  0xc8   :  { %909 = vmatpush1.bf16.msra.mxu0 %v6384_v56  ;;  %v6421_v56 = vld [vmem:[#allocation8 + $0x94] ss:$12 sps:$4 sm:$0xff]  }
  0xc9   :  { %910 = vmatprep.subr.bf16.mxu0 %v6391_v58  ;;  %v6419_v58 = vld [vmem:[#allocation8 + $0x50] ss:$12 sps:$4 sm:$0xff]   ;;  %8568 = vst [vmem:[#allocation30_spill] sm:$0xff] %v6421_v56 }
  0xca   :  { %8567 = vst [vmem:[#allocation29_spill] sm:$0xff] %v6419_v58  ;;  %4537 = vmatpush3.bf16.msra.mxu1 %v6407_v63  ;;  %v6469_v63 = vld [vmem:[#allocation10 + $0x30] ss:$12 sps:$4 sm:$0xff]  }
  0xcb   :  { %4538 = vmatprep.subr.bf16.mxu1 %v8350_v0  ;;  %8582 = vst [vmem:[#allocation43_spill] sm:$0xff] %v6469_v63 }
  0xcc   :  { %911 = vmatpush1.bf16.msra.mxu0 %v6394_v59  ;;  %v6428_v59 = vld [vmem:[#allocation8 + $0x90] ss:$12 sps:$4 sm:$0xff]  }
  0xcd   :  { %912 = vmatprep.subr.bf16.mxu0 %v6398_v60  ;;  %8569 = vst [vmem:[#allocation31_spill] sm:$0xff] %v6428_v59  ;;  %v6431_v60 = vld [vmem:[#allocation8 + $0x68] ss:$12 sps:$4 sm:$0xff]  }
  0xce   :  { %4539 = vmatpush3.bf16.msra.mxu1 %v6419_v58  ;;  %8570 = vst [vmem:[#allocation32_spill] sm:$0xff] %v6431_v60  ;;  %v6448_v58 = vld [vmem:[#allocation10] ss:$12 sps:$4 sm:$0xff]  }
  0xcf   :  { %4540 = vmatprep.subr.bf16.mxu1 %v8350_v0  ;;  %8575 = vst [vmem:[#allocation37_spill] sm:$0xff] %v6448_v58 }
  0xd0   :  { %913 = vmatpush1.bf16.msra.mxu0 %v6405_v62  ;;  %v6438_v62 = vld [vmem:[#allocation8 + $0xa8] ss:$12 sps:$4 sm:$0xff]  }
  0xd1   :  { %914 = vmatprep.subr.bf16.mxu0 %v6411_v25  ;;  %8572 = vst [vmem:[#allocation34_spill] sm:$0xff] %v6438_v62  ;;  %v6441_v25 = vld [vmem:[#allocation8 + $0x80] ss:$12 sps:$4 sm:$0xff]  }
  0xd2   :  { %4541 = vmatpush3.bf16.msra.mxu1 %v6431_v60  ;;  %8573 = vst [vmem:[#allocation35_spill] sm:$0xff] %v6441_v25  ;;  %v6454_v60 = vld [vmem:[#allocation10 + $0x1c] ss:$12 sps:$4 sm:$0xff]  }
  0xd3   :  { %4542 = vmatprep.subr.bf16.mxu1 %v8350_v0  ;;  %8577 = vst [vmem:[#allocation39_spill] sm:$0xff] %v6454_v60 }
  0xd4   :  { %915 = vmatpush1.bf16.msra.mxu0 %v6417_v1  ;;  %v6444_v1 = vld [vmem:[#allocation10 + $0x4] ss:$12 sps:$4 sm:$0xff]  }
  0xd5   :  { %916 = vmatprep.subr.bf16.mxu0 %v6421_v56  ;;  %8574 = vst [vmem:[#allocation36_spill] sm:$0xff] %v6444_v1  ;;  %v775_v56 = vld [vmem:[#allocation2 + $0x1c] sm:$0xf] }
  0xd6   :  { %4543 = vmatpush3.bf16.msra.mxu1 %v6441_v25  ;;  %v6464_v25 = vld [vmem:[#allocation10 + $0x34] ss:$12 sps:$4 sm:$0xff]  }
  0xd7   :  { %4544 = vmatprep.subr.bf16.mxu1 %v8350_v0  ;;  %8580 = vst [vmem:[#allocation42_spill] sm:$0xff] %v6464_v25 }
  0xd8   :  { %917 = vmatpush1.bf16.msra.mxu0 %v6428_v59  ;;  %v6451_v59 = vld [vmem:[#allocation8 + $0x98] ss:$12 sps:$4 sm:$0xff]  }
  0xd9   :  { %918 = vmatprep.subr.bf16.mxu0 %v6434_v55  ;;  %8576 = vst [vmem:[#allocation38_spill] sm:$0xff] %v6451_v59  ;;  %v6458_v55 = vld [vmem:[#allocation10 + $0x18] ss:$12 sps:$4 sm:$0xff]  }
  0xda   :  { %8578 = vst [vmem:[#allocation40_spill] sm:$0xff] %v6458_v55  ;;  %4545 = vmatpush3.bf16.msra.mxu1 %v6451_v59  ;;  %v6475_v59 = vld [vmem:[#allocation10 + $0x4c] ss:$12 sps:$4 sm:$0xff]  }
  0xdb   :  { %4546 = vmatprep.subr.bf16.mxu1 %v8350_v0  ;;  %8584 = vst [vmem:[#allocation45_spill] sm:$0xff] %v6475_v59 }
  0xdc   :  { %919 = vmatpush1.bf16.msra.mxu0 %v6438_v62  ;;  %v6461_v62 = vld [vmem:[#allocation8 + $0xb0] ss:$12 sps:$4 sm:$0xff]  }
  0xdd   :  { %1113 = vmatprep.subr.bf16.mxu0 %v6444_v1  ;;  %8579 = vst [vmem:[#allocation41_spill] sm:$0xff] %v6461_v62  ;;  %v8581_v1 = vmov 0  }
  0xde   :  { %4547 = vmatpush3.bf16.msra.mxu1 %v6461_v62  ;;  %v6485_v62 = vld [vmem:[#allocation10 + $0x64] ss:$12 sps:$4 sm:$0xff]  }
  0xdf   :  { %937 = vmatmul.mubr.bf16.vlgmr.msra.gmra.mrb[4].mxu0 %v775_v56  ;;  %4552 = vmatprep.subr.bf16.mxu1 %v8350_v0  ;;  %8587 = vst [vmem:[#allocation48_spill] sm:$0xff] %v6485_v62 }
  0xe0   :  { %1114 = vmatpush1.bf16.msra.mxu0 %v6448_v58  ;;  %1145 = vmatprep.mubr.bf16.mxu0 %v8581_v1  ;;  %v6472_v58 = vld [vmem:[#allocation10 + $0x8] ss:$12 sps:$4 sm:$0xff]  }
  0xe1   :  { %1115 = vmatprep.subr.bf16.mxu0 %v6454_v60  ;;  %8583 = vst [vmem:[#allocation44_spill] sm:$0xff] %v6472_v58  ;;  %4549 = vmatmul.mubr.bf16.vlgmr.msra.gmra.mrb[8].mxu1 %v775_v56  ;;  %v6479_v60 = vld [vmem:[#allocation10 + $0x48] ss:$12 sps:$4 sm:$0xff]   ;;  %v6491_v56 = vld [vmem:[#allocation10 + $0x60] ss:$12 sps:$4 sm:$0xff]  }
  0xe2   :  { %8585 = vst [vmem:[#allocation46_spill] sm:$0xff] %v6479_v60  ;;  %4553 = vmatpush3.bf16.msra.mxu1 %v6472_v58  ;;  %4568 = vmatprep.mubr.msk.bf16.mxu1 %vm6018_vm0, %v8350_v0  ;;  %8588 = vst [vmem:[#allocation49_spill] sm:$0xff] %v6491_v56  ;;  %v6504_v58 = vld [vmem:[#allocation10 + $0x50] ss:$12 sps:$4 sm:$0xff]  }
  0xe3   :  { %4554 = vmatprep.subr.bf16.mxu1 %v8350_v0 }
  0xe4   :  { %1116 = vmatpush1.bf16.msra.mxu0 %v6458_v55  ;;  %v6482_v55 = vld [vmem:[#allocation10 + $0x20] ss:$12 sps:$4 sm:$0xff]  }
  0xe5   :  { %1117 = vmatprep.subr.bf16.mxu0 %v6464_v25  ;;  %8586 = vst [vmem:[#allocation47_spill] sm:$0xff] %v6482_v55  ;;  %v6497_v25 = vld [vmem:[#allocation10 + $0x7c] ss:$12 sps:$4 sm:$0xff]  }
  0xe6   :  { %4555 = vmatpush3.bf16.msra.mxu1 %v6482_v55  ;;  %8590 = vst [vmem:[#allocation51_spill] sm:$0xff] %v6497_v25  ;;  %v6514_v55 = vld [vmem:[#allocation10 + $0x68] ss:$12 sps:$4 sm:$0xff]  }
  0xe7   :  { %4556 = vmatprep.subr.bf16.mxu1 %v8350_v0 }
  0xe8   :  { %1118 = vmatpush1.bf16.msra.mxu0 %v6469_v63  ;;  %v6494_v63 = vld [vmem:[#allocation10 + $0x38] ss:$12 sps:$4 sm:$0xff]  }
  0xe9   :  { %1119 = vmatprep.subr.bf16.mxu0 %v6475_v59  ;;  %8589 = vst [vmem:[#allocation50_spill] sm:$0xff] %v6494_v63  ;;  %v6501_v59 = vld [vmem:[#allocation10 + $0x78] ss:$12 sps:$4 sm:$0xff]  }
  0xea   :  { %4557 = vmatpush3.bf16.msra.mxu1 %v6494_v63  ;;  %v6524_v63 = vld [vmem:[#allocation10 + $0x80] ss:$12 sps:$4 sm:$0xff]  }
  0xeb   :  { %4558 = vmatprep.subr.bf16.mxu1 %v8350_v0 }
  0xec   :  { %1120 = vmatpush1.bf16.msra.mxu0 %v6479_v60  ;;  %v6507_v60 = vld [vmem:[#allocation10 + $0x94] ss:$12 sps:$4 sm:$0xff]  }
  0xed   :  { %1121 = vmatprep.subr.bf16.mxu0 %v6485_v62  ;;  %8591 = vst [vmem:[#allocation52_spill] sm:$0xff] %v6507_v60  ;;  %v6511_v62 = vld [vmem:[#allocation10 + $0x90] ss:$12 sps:$4 sm:$0xff]  }
  0xee   :  { %8592 = vst [vmem:[#allocation53_spill] sm:$0xff] %v6511_v62  ;;  %4559 = vmatpush3.bf16.msra.mxu1 %v6504_v58 }
  0xef   :  { %4560 = vmatprep.subr.bf16.mxu1 %v8350_v0 }
  0xf0   :  { %1122 = vmatpush1.bf16.msra.mxu0 %v6491_v56  ;;  %v6517_v56 = vld [vmem:[#allocation10 + $0xac] ss:$12 sps:$4 sm:$0xff]  }
  0xf1   :  { %1123 = vmatprep.subr.bf16.mxu0 %v6497_v25  ;;  %v6521_v25 = vld [vmem:[#allocation10 + $0xa8] ss:$12 sps:$4 sm:$0xff]  }
  0xf2   :  { %4561 = vmatpush3.bf16.msra.mxu1 %v6514_v55 }
  0xf3   :  { %4562 = vmatprep.subr.bf16.mxu1 %v8350_v0 }
  0xf4   :  { %1124 = vmatpush1.bf16.msra.mxu0 %v6501_v59 }
  0xf5   :  { %1125 = vmatprep.subr.bf16.mxu0 %v6507_v60  ;;  %v6530_v60 = vld [vmem:[#allocation10 + $0x98] ss:$12 sps:$4 sm:$0xff]  }
  0xf6   :  { %4563 = vmatpush3.bf16.msra.mxu1 %v6524_v63 }
  0xf7   :  { %4564 = vmatprep.subr.bf16.mxu1 %v8350_v0 }
  0xf8   :  { %1126 = vmatpush1.bf16.msra.mxu0 %v6511_v62  ;;  %v6536_v62 = vld [vmem:[#allocation10 + $0xb0] ss:$12 sps:$4 sm:$0xff]  }
  0xf9   :  { %1127 = vmatprep.subr.bf16.mxu0 %v6517_v56  ;;  %8593 = vst [vmem:[#allocation54_spill] sm:$0xff] %v6536_v62 }
  0xfa   :  { %4565 = vmatpush3.bf16.msra.mxu1 %v6530_v60 }
  0xfb   :  { %4566 = vmatprep.subr.bf16.mxu1 %v8350_v0 }
  0xfc   :  { %1128 = vmatpush1.bf16.msra.mxu0 %v6521_v25 }
  0xfd   :  { %1217 = vmatprep.subr.bf16.mxu0 %v6208_v2  ;;  %v1216_v2 = vld [vmem:[#allocation2 + $0x4] sm:$0xf] }
  0xfe   :  { %4567 = vmatpush3.bf16.msra.mxu1 %v6536_v62 }
  0xff   :  { %1146 = vmatmul.mubr.bf16.vlgmr.msra.gmra.mrb[4].mxu0 %v8581_v1  ;;  %4572 = vmatprep.subr.bf16.mxu1 %v8350_v0 }
 0x100   :  { %1218 = vmatpush1.bf16.msra.mxu0 %v6210_v3  ;;  %1249 = vmatprep.mubr.bf16.mxu0 %v8581_v1 }
 0x101   :  { %1219 = vmatprep.subr.bf16.mxu0 %v6213_v4  ;;  %4569 = vmatmul.mubr.bf16.vlgmr.msra.gmra.mrb[12].mxu1 %v8581_v1 }
 0x102   :  { %4573 = vmatpush3.bf16.msra.mxu1 %v6227_v9  ;;  %4588 = vmatprep.mubr.msk.bf16.mxu1 %vm6018_vm0, %v8350_v0 }
 0x103   :  { %4574 = vmatprep.subr.bf16.mxu1 %v8350_v0 }
 0x104   :  { %1220 = vmatpush1.bf16.msra.mxu0 %v6216_v5 }
 0x105   :  { %1221 = vmatprep.subr.bf16.mxu0 %v6219_v6 }
 0x106   :  { %4575 = vmatpush3.bf16.msra.mxu1 %v6237_v12 }
 0x107   :  { %4576 = vmatprep.subr.bf16.mxu1 %v8350_v0 }
 0x108   :  { %1222 = vmatpush1.bf16.msra.mxu0 %v6222_v7  ;;  %v268_v7 = vlaneseq }
 0x109   :  { %1223 = vmatprep.subr.bf16.mxu0 %v6225_v8 }
 0x10a   :  { %4577 = vmatpush3.bf16.msra.mxu1 %v6243_v14  ;;  %v269_v8 = vshrl.u32 %v268_v7, 7 }
 0x10b   :  { %4578 = vmatprep.subr.bf16.mxu1 %v8350_v0 }
 0x10c   :  { %1224 = vmatpush1.bf16.msra.mxu0 %v6230_v10  ;;  %v6612_v9 = vsub.s32 0, %v269_v8  ;;  %v283_v10 = vld [vmem:[%s8188_s4] sm:$0x7]  ;;  %v6620_v12 = vsub.s32 1, %v269_v8 }
 0x10d   :  { %1225 = vmatprep.subr.bf16.mxu0 %v6234_v11  ;;  %v266_v11 = vld [vmem:[%s8187_s3] sm:$0x7] }
 0x10e   :  { %4579 = vmatpush3.bf16.msra.mxu1 %v6253_v17  ;;  %v288_v14 = vrot.slane %v283_v10, %v6612_v9 }
 0x10f   :  { %4580 = vmatprep.subr.bf16.mxu1 %v8350_v0 }
 0x110   :  { %1226 = vmatpush1.bf16.msra.mxu0 %v6239_v13  ;;  %v271_v13 = vrot.slane %v266_v11, %v6612_v9 }
 0x111   :  { %1227 = vmatprep.subr.bf16.mxu0 %v6246_v15  ;;  %v275_v15 = vrot.slane %v266_v11, %v6620_v12 }
 0x112   :  { %4581 = vmatpush3.bf16.msra.mxu1 %v6263_v20  ;;  %v6626_v17 = vadd.f32 %v288_v14, %v271_v13  ;;  %v8596_v13 = vld [vmem:[#allocation26_spill] sm:$0xff] }
 0x113   :  { %4582 = vmatprep.subr.bf16.mxu1 %v8350_v0 }
 0x114   :  { %1228 = vmatpush1.bf16.msra.mxu0 %v6250_v16  ;;  %v292_v16 = vrot.slane %v283_v10, %v6620_v12 }
 0x115   :  { %1229 = vmatprep.subr.bf16.mxu0 %v6256_v18 }
 0x116   :  { %4583 = vmatpush3.bf16.msra.mxu1 %v6273_v23 }
 0x117   :  { %4584 = vmatprep.subr.bf16.mxu1 %v8350_v0 }
 0x118   :  { %1230 = vmatpush1.bf16.msra.mxu0 %v6259_v19  ;;  %v6628_v19 = vadd.f32 %v292_v16, %v275_v15 }
 0x119   :  { %1231 = vmatprep.subr.bf16.mxu0 %v6266_v21 }
 0x11a   :  { %4585 = vmatpush3.bf16.msra.mxu1 %v6283_v27 }
 0x11b   :  { %4586 = vmatprep.subr.bf16.mxu1 %v8350_v0 }
 0x11c   :  { %1232 = vmatpush1.bf16.msra.mxu0 %v6269_v22 }
 0x11d   :  { %1299 = vmatprep.subr.bf16.mxu0 %v6276_v24 }
 0x11e   :  { %4587 = vmatpush3.bf16.msra.mxu1 %v6293_v30 }
 0x11f   :  { %4592 = vmatprep.subr.bf16.mxu1 %v8350_v0  ;;  %1250 = vmatmul.mubr.bf16.vlgmr.msra.gmra.mrb[8].mxu0 %v1216_v2 }
 0x120   :  { %1300 = vmatpush1.bf16.msra.mxu0 %v6280_v26  ;;  %1331 = vmatprep.mubr.bf16.mxu0 %v8581_v1 }
 0x121   :  { %4589 = vmatmul.mubr.bf16.vlgmr.msra.gmra.mrb[16].mxu1 %v1216_v2  ;;  %1301 = vmatprep.subr.bf16.mxu0 %v6286_v28 }
 0x122   :  { %4593 = vmatpush3.bf16.msra.mxu1 %v6304_v33  ;;  %4608 = vmatprep.mubr.msk.bf16.mxu1 %vm6018_vm0, %v8350_v0 }
 0x123   :  { %4594 = vmatprep.subr.bf16.mxu1 %v8350_v0 }
 0x124   :  { %1302 = vmatpush1.bf16.msra.mxu0 %v6289_v29 }
 0x125   :  { %1303 = vmatprep.subr.bf16.mxu0 %v6296_v31 }
 0x126   :  { %4595 = vmatpush3.bf16.msra.mxu1 %v6314_v36 }
 0x127   :  { %4596 = vmatprep.subr.bf16.mxu1 %v8350_v0 }
 0x128   :  { %1304 = vmatpush1.bf16.msra.mxu0 %v6300_v32 }
 0x129   :  { %1305 = vmatprep.subr.bf16.mxu0 %v6307_v34  ;;  %v6632_v34 = vsub.s32 2, %v269_v8 }
 0x12a   :  { %4597 = vmatpush3.bf16.msra.mxu1 %v6326_v39 }
 0x12b   :  { %4598 = vmatprep.subr.bf16.mxu1 %v8350_v0 }
 0x12c   :  { %1306 = vmatpush1.bf16.msra.mxu0 %v6310_v35  ;;  %v6635_v35 = vrot.slane %v283_v10, %v6632_v34 }
 0x12d   :  { %1307 = vmatprep.subr.bf16.mxu0 %v6317_v37  ;;  %v6638_v37 = vrot.slane %v266_v11, %v6632_v34  ;;  %v8595_v11 = vld [vmem:[#allocation21_spill] sm:$0xff] }
 0x12e   :  { %4599 = vmatpush3.bf16.msra.mxu1 %v6336_v42 }
 0x12f   :  { %4600 = vmatprep.subr.bf16.mxu1 %v8350_v0 }
 0x130   :  { %1308 = vmatpush1.bf16.msra.mxu0 %v6323_v38 }
 0x131   :  { %1309 = vmatprep.subr.bf16.mxu0 %v6329_v40 }
 0x132   :  { %4601 = vmatpush3.bf16.msra.mxu1 %v6346_v45 }
 0x133   :  { %4602 = vmatprep.subr.bf16.mxu1 %v8350_v0 }
 0x134   :  { %1310 = vmatpush1.bf16.msra.mxu0 %v6332_v41 }
 0x135   :  { %1311 = vmatprep.subr.bf16.mxu0 %v6339_v43 }
 0x136   :  { %4603 = vmatpush3.bf16.msra.mxu1 %v6356_v48 }
 0x137   :  { %4604 = vmatprep.subr.bf16.mxu1 %v8350_v0 }
 0x138   :  { %1312 = vmatpush1.bf16.msra.mxu0 %v6342_v44 }
 0x139   :  { %1313 = vmatprep.subr.bf16.mxu0 %v6349_v46 }
 0x13a   :  { %4605 = vmatpush3.bf16.msra.mxu1 %v6366_v51 }
 0x13b   :  { %4606 = vmatprep.subr.bf16.mxu1 %v8350_v0 }
 0x13c   :  { %1314 = vmatpush1.bf16.msra.mxu0 %v6353_v47 }
 0x13d   :  { %1403 = vmatprep.subr.bf16.mxu0 %v6359_v49 }
 0x13e   :  { %4607 = vmatpush3.bf16.msra.mxu1 %v6377_v54 }
 0x13f   :  { %4612 = vmatprep.subr.bf16.mxu1 %v8350_v0 }
 0x174   :  { %v538_v3 = vpop.f32.mrb[0].mxu1 }
 0x175   :  { %v4510_v4 = vpop.f32.mrb[1].mxu1  ;;  %v539_v41 = vadd.f32 %v538_v3, %v6638_v37  ;;  %v317_v3 = vld [vmem:[%s8192_s8] sm:$0x7] }
 0x176   :  { %v541_v5 = vpop.f32.mrb[2].mxu1  ;;  %v322_v10 = vrot.slane %v317_v3, %v6612_v9  ;;  %v326_v15 = vrot.slane %v317_v3, %v6620_v12 }
 0x177   :  { %v4511_v6 = vpop.f32.mrb[3].mxu1 }
 0x192   :  { %v706_v18 = vpop.f32.mrb[0].mxu0 }
 0x193   :  { %v5173_v20 = vadd.f32 %v6626_v17, %v706_v18  ;;  %v708_v21 = vpop.f32.mrb[1].mxu0  ;;  %v8598_v18 = vld [vmem:[#allocation23_spill] sm:$0xff] }
 0x194   :  { %v710_v22 = vpop.f32.mrb[2].mxu0  ;;  %v5175_v26 = vadd.f32 %v6628_v19, %v708_v21  ;;  %v747_v28 = vpop.f32.mrb[4].mxu1 }
 0x195   :  { %v4089_v23 = vmul.f32 -1.442695, %v5173_v20  ;;  %v711_v24 = vpop.f32.mrb[3].mxu0  ;;  %v4530_v29 = vpop.f32.mrb[5].mxu1  ;;  %v748_v39 = vadd.f32 %v747_v28, %v6635_v35  ;;  %v8599_v20 = vld [vmem:[#allocation29_spill] sm:$0xff]  ;;  %v8600_v22 = vld [vmem:[#allocation24_spill] sm:$0xff] }
 0x196   :  { %v4090_v27 = vmul.f32 -1.442695, %v5175_v26  ;;  %v750_v30 = vpop.f32.mrb[6].mxu1  ;;  %v8602_v29 = vld [vmem:[#allocation32_spill] sm:$0xff] }
 0x197   :  { %5459 = vpow2.f32 %v4089_v23  ;;  %v4531_v31 = vpop.f32.mrb[7].mxu1 }
 0x198   :  { %5461 = vpow2.f32 %v4090_v27  ;;  %v8603_v31 = vld [vmem:[#allocation27_spill] sm:$0xff] }
 0x1a1   :  { %v5460_v32 = vpop.eup %5459 }
 0x1a2   :  { %v757_v33 = vadd.f32 1.0, %v5460_v32  ;;  %v5462_v36 = vpop.eup %5461  ;;  %v8604_v32 = vld [vmem:[#allocation28_spill] sm:$0xff] }
 0x1a3   :  { %v764_v38 = vadd.f32 1.0, %v5462_v36 }
 0x1a4   :  { %5463 = vrcp.f32 %v757_v33  ;;  %v8605_v33 = vld [vmem:[#allocation35_spill] sm:$0xff] }
 0x1a5   :  { %5465 = vrcp.f32 %v764_v38  ;;  %v8606_v38 = vld [vmem:[#allocation30_spill] sm:$0xff] }
 0x1ae   :  { %v5464_v40 = vpop.eup %5463 }
 0x1af   :  { %v767_v42 = vmul.f32 %v5464_v40, %v748_v39  ;;  %v5466_v44 = vpop.eup %5465 }
 0x1b0   :  { %v770_v47 = vsub.f32 1.0, %v5466_v44  ;;  %v772_v6 = vmul.f32 0.0, %v5466_v44 }
 0x1b1   :  { %v768_v43 = vadd.f32 %v767_v42, %v539_v41  ;;  %v8607_v42 = vld [vmem:[#allocation31_spill] sm:$0xff] }
 0x1b3   :  { %5467 = vtanh.f32 %v768_v43  ;;  %v8608_v43 = vld [vmem:[#allocation38_spill] sm:$0xff] }
 0x1b4   :  { %v6642_v45 = vpop.f32.mrb[8].mxu1 }
 0x1b5   :  { %v4550_v46 = vpop.f32.mrb[9].mxu1 }
 0x1b6   :  { %v982_v49 = vpop.f32.mrb[10].mxu1  ;;  %v8609_v46 = vld [vmem:[#allocation33_spill] sm:$0xff] }
 0x1b7   :  { %v4551_v4 = vpop.f32.mrb[11].mxu1  ;;  %v8610_v49 = vld [vmem:[#allocation34_spill] sm:$0xff] }
 0x1b8   :  { %v1402_v4 = vld [vmem:[#allocation2 + $0x18] sm:$0xf] }
 0x1bd   :  { %v5468_v2 = vpop.eup %5467 }
 0x1be   :  { %v771_v5 = vmul.f32 %v5468_v2, %v770_v47  ;;  %v8611_v2 = vld [vmem:[#allocation41_spill] sm:$0xff] }
 0x1c0   :  { %v6644_v7 = vadd.f32 %v772_v6, %v771_v5  ;;  %v8612_v6 = vld [vmem:[#allocation36_spill] sm:$0xff] }
 0x1c2   :  { %v1298_v8 = vpack.c.bf16 %v6644_v7, %v6644_v7 }
 0x1c4   :  { %1332 = vmatmul.mubr.bf16.vlgmr.msra.gmra.mrb[8].mxu0 %v1298_v8  ;;  %4609 = vmatmul.mubr.bf16.vlgmr.msra.gmra.mrb[20].mxu1 %v1298_v8  ;;  %v8613_v8 = vld [vmem:[#allocation37_spill] sm:$0xff] }
 0x1c5   :  { %1404 = vmatpush1.bf16.msra.mxu0 %v6362_v50  ;;  %4613 = vmatpush3.bf16.msra.mxu1 %v6388_v57  ;;  %v6663_v50 = vld [vmem:[%s8191_s7] sm:$0x7] }
 0x1c6   :  { %1405 = vmatprep.subr.bf16.mxu0 %v6369_v52  ;;  %4614 = vmatprep.subr.bf16.mxu1 %v8350_v0  ;;  %v8594_v52 = vld [vmem:[#allocation20_spill] sm:$0xff]  ;;  %v305_v57 = vrot.slane %v6663_v50, %v6612_v9  ;;  %v309_v14 = vrot.slane %v6663_v50, %v6620_v12  ;;  %v8601_v12 = vld [vmem:[#allocation25_spill] sm:$0xff] }
 0x1c7   :  { %1435 = vmatprep.mubr.bf16.mxu0 %v8581_v1  ;;  %4628 = vmatprep.mubr.msk.bf16.mxu1 %vm6018_vm0, %v8350_v0 }
 0x1c8   :  { %v6677_v16 = vadd.f32 %v322_v10, %v305_v57  ;;  %v6681_v21 = vadd.f32 %v326_v15, %v309_v14  ;;  %v8615_v57 = vld [vmem:[#allocation39_spill] sm:$0xff]  ;;  %v6708_v10 = vrot.slane %v317_v3, %v6632_v34  ;;  %v8619_v15 = vld [vmem:[#allocation42_spill] sm:$0xff] }
 0x1c9   :  { %1406 = vmatpush1.bf16.msra.mxu0 %v6373_v53  ;;  %4615 = vmatpush3.bf16.msra.mxu1 %v6401_v61  ;;  %v8597_v53 = vld [vmem:[#allocation22_spill] sm:$0xff]  ;;  %v8618_v14 = vld [vmem:[#allocation47_spill] sm:$0xff] }
 0x1ca   :  { %1407 = vmatprep.subr.bf16.mxu0 %v8594_v52  ;;  %4616 = vmatprep.subr.bf16.mxu1 %v8350_v0  ;;  %v8614_v52 = vld [vmem:[#allocation44_spill] sm:$0xff]  ;;  %8616 = vst [vmem:[#allocation20_spill] sm:$0xff] %v6708_v10 }
 0x1cd   :  { %1408 = vmatpush1.bf16.msra.mxu0 %v8595_v11  ;;  %4617 = vmatpush3.bf16.msra.mxu1 %v8596_v13 }
 0x1ce   :  { %1409 = vmatprep.subr.bf16.mxu0 %v8597_v53  ;;  %4618 = vmatprep.subr.bf16.mxu1 %v8350_v0  ;;  %v8617_v53 = vld [vmem:[#allocation40_spill] sm:$0xff] }
 0x1d1   :  { %1410 = vmatpush1.bf16.msra.mxu0 %v8598_v18  ;;  %4619 = vmatpush3.bf16.msra.mxu1 %v8599_v20  ;;  %v6719_v18 = vrot.slane %v6663_v50, %v6632_v34  ;;  %v8623_v34 = vld [vmem:[#allocation46_spill] sm:$0xff]  ;;  %v8624_v50 = vld [vmem:[#allocation48_spill] sm:$0xff] }
 0x1d2   :  { %v1147_v9 = vpop.f32.mrb[4].mxu0  ;;  %1411 = vmatprep.subr.bf16.mxu0 %v8600_v22  ;;  %4620 = vmatprep.subr.bf16.mxu1 %v8350_v0  ;;  %v8620_v22 = vld [vmem:[#allocation43_spill] sm:$0xff] }
 0x1d3   :  { %v5177_v23 = vadd.f32 %v6677_v16, %v1147_v9  ;;  %v1149_v24 = vpop.f32.mrb[5].mxu0 }
 0x1d4   :  { %v1151_v26 = vpop.f32.mrb[6].mxu0  ;;  %v5179_v30 = vadd.f32 %v6681_v21, %v1149_v24  ;;  %v1188_v39 = vpop.f32.mrb[12].mxu1 }
 0x1d5   :  { %v4139_v27 = vmul.f32 -1.442695, %v5177_v23  ;;  %v1152_v28 = vpop.f32.mrb[7].mxu0  ;;  %1412 = vmatpush1.bf16.msra.mxu0 %v8601_v12  ;;  %4621 = vmatpush3.bf16.msra.mxu1 %v8602_v29  ;;  %v4570_v40 = vpop.f32.mrb[13].mxu1  ;;  %v1189_v9 = vadd.f32 %v1188_v39, %v6708_v10  ;;  %v8621_v23 = vld [vmem:[#allocation50_spill] sm:$0xff]  ;;  %v8622_v26 = vld [vmem:[#allocation45_spill] sm:$0xff] }
 0x1d6   :  { %1413 = vmatprep.subr.bf16.mxu0 %v8603_v31  ;;  %4622 = vmatprep.subr.bf16.mxu1 %v8350_v0  ;;  %v4140_v36 = vmul.f32 -1.442695, %v5179_v30  ;;  %v1191_v41 = vpop.f32.mrb[14].mxu1  ;;  %v8625_v30 = vld [vmem:[#allocation49_spill] sm:$0xff]  ;;  %v8626_v31 = vld [vmem:[#allocation51_spill] sm:$0xff] }
 0x1d7   :  { %5469 = vpow2.f32 %v4139_v27  ;;  %v4571_v44 = vpop.f32.mrb[15].mxu1  ;;  %v980_v27 = vadd.f32 %v6642_v45, %v6719_v18 }
 0x1d8   :  { %5471 = vpow2.f32 %v4140_v36  ;;  %v8627_v36 = vld [vmem:[#allocation52_spill] sm:$0xff] }
 0x1d9   :  { %1414 = vmatpush1.bf16.msra.mxu0 %v8604_v32  ;;  %4623 = vmatpush3.bf16.msra.mxu1 %v8605_v33 }
 0x1da   :  { %1415 = vmatprep.subr.bf16.mxu0 %v8606_v38  ;;  %4624 = vmatprep.subr.bf16.mxu1 %v8350_v0 }
 0x1dd   :  { %1416 = vmatpush1.bf16.msra.mxu0 %v8607_v42  ;;  %4625 = vmatpush3.bf16.msra.mxu1 %v8608_v43 }
 0x1de   :  { %1417 = vmatprep.subr.bf16.mxu0 %v8609_v46  ;;  %4626 = vmatprep.subr.bf16.mxu1 %v8350_v0 }
 0x1e1   :  { %v5470_v47 = vpop.eup %5469  ;;  %1418 = vmatpush1.bf16.msra.mxu0 %v8610_v49  ;;  %4627 = vmatpush3.bf16.msra.mxu1 %v8611_v2 }
 0x1e2   :  { %v1198_v5 = vadd.f32 1.0, %v5470_v47  ;;  %1485 = vmatprep.subr.bf16.mxu0 %v8612_v6  ;;  %4632 = vmatprep.subr.bf16.mxu1 %v8350_v0  ;;  %v5472_v11 = vpop.eup %5471 }
 0x1e3   :  { %v1205_v3 = vadd.f32 1.0, %v5472_v11 }
 0x1e4   :  { %5473 = vrcp.f32 %v1198_v5  ;;  %1436 = vmatmul.mubr.bf16.vlgmr.msra.gmra.mrb[12].mxu0 %v1402_v4  ;;  %4629 = vmatmul.mubr.bf16.vlgmr.msra.gmra.mrb[24].mxu1 %v1402_v4  ;;  %v8628_v4 = vld [vmem:[#allocation53_spill] sm:$0xff] }
 0x1e5   :  { %1486 = vmatpush1.bf16.msra.mxu0 %v8613_v8  ;;  %4633 = vmatpush3.bf16.msra.mxu1 %v8614_v52  ;;  %5475 = vrcp.f32 %v1205_v3 }
 0x1e6   :  { %1487 = vmatprep.subr.bf16.mxu0 %v8615_v57  ;;  %4634 = vmatprep.subr.bf16.mxu1 %v8350_v0 }
 0x1e7   :  { %1517 = vmatprep.mubr.bf16.mxu0 %v8581_v1  ;;  %4648 = vmatprep.mubr.msk.bf16.mxu1 %vm6018_vm0, %v8350_v0 }
 0x1e9   :  { %1488 = vmatpush1.bf16.msra.mxu0 %v8617_v53  ;;  %4635 = vmatpush3.bf16.msra.mxu1 %v8618_v14 }
 0x1ea   :  { %1489 = vmatprep.subr.bf16.mxu0 %v8619_v15  ;;  %4636 = vmatprep.subr.bf16.mxu1 %v8350_v0 }
 0x1ed   :  { %1490 = vmatpush1.bf16.msra.mxu0 %v8620_v22  ;;  %4637 = vmatpush3.bf16.msra.mxu1 %v8621_v23 }
 0x1ee   :  { %v5474_v24 = vpop.eup %5473  ;;  %1491 = vmatprep.subr.bf16.mxu0 %v8622_v26  ;;  %4638 = vmatprep.subr.bf16.mxu1 %v8350_v0 }
 0x1ef   :  { %v1208_v28 = vmul.f32 %v5474_v24, %v1189_v9  ;;  %v5476_v45 = vpop.eup %5475 }
 0x1f0   :  { %v1211_v41 = vsub.f32 1.0, %v5476_v45  ;;  %v1213_v3 = vmul.f32 0.0, %v5476_v45  ;;  %v6762_v45 = vld [vmem:[#allocation5 + $0x1c] ss:$12 sps:$4 sm:$0xff]  }
 0x1f1   :  { %v1209_v12 = vadd.f32 %v1208_v28, %v980_v27  ;;  %1492 = vmatpush1.bf16.msra.mxu0 %v8623_v34  ;;  %4639 = vmatpush3.bf16.msra.mxu1 %v6504_v58  ;;  %v6752_v27 = vld [vmem:[#allocation5 + $0x4] ss:$12 sps:$4 sm:$0xff]   ;;  %v6756_v28 = vld [vmem:[#allocation5] ss:$12 sps:$4 sm:$0xff]   ;;  %8632 = vst [vmem:[#allocation23_spill] sm:$0xff] %v6762_v45 }
 0x1f2   :  { %1493 = vmatprep.subr.bf16.mxu0 %v8624_v50  ;;  %4640 = vmatprep.subr.bf16.mxu1 %v8350_v0  ;;  %8629 = vst [vmem:[#allocation21_spill] sm:$0xff] %v6752_v27  ;;  %8630 = vst [vmem:[#allocation26_spill] sm:$0xff] %v6756_v28 }
 0x1f3   :  { %5477 = vtanh.f32 %v1209_v12  ;;  %v6759_v12 = vld [vmem:[#allocation5 + $0x8] ss:$12 sps:$4 sm:$0xff]  }
 0x1f4   :  { %v6740_v39 = vpop.f32.mrb[16].mxu1  ;;  %8631 = vst [vmem:[#allocation22_spill] sm:$0xff] %v6759_v12 }
 0x1f5   :  { %1494 = vmatpush1.bf16.msra.mxu0 %v8625_v30  ;;  %4641 = vmatpush3.bf16.msra.mxu1 %v6514_v55  ;;  %v4590_v40 = vpop.f32.mrb[17].mxu1 }
 0x1f6   :  { %1495 = vmatprep.subr.bf16.mxu0 %v8626_v31  ;;  %4642 = vmatprep.subr.bf16.mxu1 %v8350_v0  ;;  %v1295_v44 = vpop.f32.mrb[18].mxu1  ;;  %v6769_v40 = vld [vmem:[#allocation5 + $0x18] ss:$12 sps:$4 sm:$0xff]  }
 0x1f7   :  { %v4591_v5 = vpop.f32.mrb[19].mxu1  ;;  %8633 = vst [vmem:[#allocation29_spill] sm:$0xff] %v6769_v40  ;;  %v6775_v44 = vld [vmem:[#allocation5 + $0x34] ss:$12 sps:$4 sm:$0xff]  }
 0x1f8   :  { %8635 = vst [vmem:[#allocation25_spill] sm:$0xff] %v6775_v44  ;;  %v6782_v5 = vld [vmem:[#allocation5 + $0x38] ss:$12 sps:$4 sm:$0xff]  }
 0x1f9   :  { %1496 = vmatpush1.bf16.msra.mxu0 %v6501_v59  ;;  %4643 = vmatpush3.bf16.msra.mxu1 %v6524_v63  ;;  %8637 = vst [vmem:[#allocation27_spill] sm:$0xff] %v6782_v5 }
 0x1fa   :  { %1497 = vmatprep.subr.bf16.mxu0 %v8627_v36  ;;  %4644 = vmatprep.subr.bf16.mxu1 %v8350_v0 }
 0x1fd   :  { %v5478_v47 = vpop.eup %5477  ;;  %1498 = vmatpush1.bf16.msra.mxu0 %v8628_v4  ;;  %4645 = vmatpush3.bf16.msra.mxu1 %v6530_v60 }
 0x1fe   :  { %1499 = vmatprep.subr.bf16.mxu0 %v6517_v56  ;;  %4646 = vmatprep.subr.bf16.mxu1 %v8350_v0  ;;  %v1212_v11 = vmul.f32 %v5478_v47, %v1211_v41  ;;  %v6772_v41 = vld [vmem:[#allocation5 + $0x20] ss:$12 sps:$4 sm:$0xff]   ;;  %v6779_v47 = vld [vmem:[#allocation5 + $0x30] ss:$12 sps:$4 sm:$0xff]  }
 0x1ff   :  { %8634 = vst [vmem:[#allocation24_spill] sm:$0xff] %v6772_v41  ;;  %8636 = vst [vmem:[#allocation32_spill] sm:$0xff] %v6779_v47 }
 0x200   :  { %v6746_v9 = vadd.f32 %v1213_v3, %v1212_v11  ;;  %v6785_v11 = vld [vmem:[#allocation5 + $0x4c] ss:$12 sps:$4 sm:$0xff]   ;;  %v6789_v3 = vld [vmem:[#allocation5 + $0x48] ss:$12 sps:$4 sm:$0xff]  }
 0x201   :  { %1500 = vmatpush1.bf16.msra.mxu0 %v6521_v25  ;;  %4647 = vmatpush3.bf16.msra.mxu1 %v6536_v62  ;;  %8638 = vst [vmem:[#allocation28_spill] sm:$0xff] %v6785_v11  ;;  %8639 = vst [vmem:[#allocation35_spill] sm:$0xff] %v6789_v3 }
 0x202   :  { %v1484_v24 = vpack.c.bf16 %v6746_v9, %v6746_v9  ;;  %1589 = vmatprep.subr.bf16.mxu0 %v6752_v27  ;;  %4652 = vmatprep.subr.bf16.mxu1 %v8350_v0 }
 0x204   :  { %1518 = vmatmul.mubr.bf16.vlgmr.msra.gmra.mrb[12].mxu0 %v1484_v24  ;;  %4649 = vmatmul.mubr.bf16.vlgmr.msra.gmra.mrb[28].mxu1 %v1484_v24  ;;  %v6792_v24 = vld [vmem:[#allocation5 + $0x50] ss:$12 sps:$4 sm:$0xff]  }
 0x205   :  { %1590 = vmatpush1.bf16.msra.mxu0 %v6756_v28  ;;  %4653 = vmatpush3.bf16.msra.mxu1 %v6759_v12  ;;  %8640 = vst [vmem:[#allocation30_spill] sm:$0xff] %v6792_v24 }
 0x206   :  { %1591 = vmatprep.subr.bf16.mxu0 %v6762_v45  ;;  %4654 = vmatprep.subr.bf16.mxu1 %v8350_v0 }
 0x207   :  { %1621 = vmatprep.mubr.bf16.mxu0 %v8581_v1  ;;  %4668 = vmatprep.mubr.msk.bf16.mxu1 %vm6018_vm0, %v8350_v0 }
 0x209   :  { %1592 = vmatpush1.bf16.msra.mxu0 %v6769_v40  ;;  %4655 = vmatpush3.bf16.msra.mxu1 %v6772_v41 }
 0x20a   :  { %1593 = vmatprep.subr.bf16.mxu0 %v6775_v44  ;;  %4656 = vmatprep.subr.bf16.mxu1 %v8350_v0  ;;  %v6795_v44 = vld [vmem:[#allocation5 + $0x64] ss:$12 sps:$4 sm:$0xff]  }
 0x20b   :  { %8641 = vst [vmem:[#allocation31_spill] sm:$0xff] %v6795_v44 }
 0x20d   :  { %1594 = vmatpush1.bf16.msra.mxu0 %v6779_v47  ;;  %4657 = vmatpush3.bf16.msra.mxu1 %v6782_v5  ;;  %v6799_v5 = vld [vmem:[#allocation5 + $0x60] ss:$12 sps:$4 sm:$0xff]   ;;  %v6805_v47 = vld [vmem:[#allocation5 + $0x7c] ss:$12 sps:$4 sm:$0xff]  }
 0x20e   :  { %1595 = vmatprep.subr.bf16.mxu0 %v6785_v11  ;;  %4658 = vmatprep.subr.bf16.mxu1 %v8350_v0  ;;  %8642 = vst [vmem:[#allocation38_spill] sm:$0xff] %v6799_v5  ;;  %v6802_v11 = vld [vmem:[#allocation5 + $0x68] ss:$12 sps:$4 sm:$0xff]   ;;  %8644 = vst [vmem:[#allocation34_spill] sm:$0xff] %v6805_v47 }
 0x20f   :  { %8643 = vst [vmem:[#allocation33_spill] sm:$0xff] %v6802_v11 }
 0x211   :  { %1596 = vmatpush1.bf16.msra.mxu0 %v6789_v3  ;;  %4659 = vmatpush3.bf16.msra.mxu1 %v6792_v24  ;;  %v6809_v24 = vld [vmem:[#allocation5 + $0x78] ss:$12 sps:$4 sm:$0xff]   ;;  %v6815_v3 = vld [vmem:[#allocation5 + $0x94] ss:$12 sps:$4 sm:$0xff]  }
 0x212   :  { %1597 = vmatprep.subr.bf16.mxu0 %v6795_v44  ;;  %4660 = vmatprep.subr.bf16.mxu1 %v8350_v0  ;;  %8645 = vst [vmem:[#allocation41_spill] sm:$0xff] %v6809_v24  ;;  %v6812_v44 = vld [vmem:[#allocation5 + $0x80] ss:$12 sps:$4 sm:$0xff]   ;;  %8647 = vst [vmem:[#allocation37_spill] sm:$0xff] %v6815_v3 }
 0x213   :  { %8646 = vst [vmem:[#allocation36_spill] sm:$0xff] %v6812_v44 }
 0x215   :  { %1598 = vmatpush1.bf16.msra.mxu0 %v6799_v5  ;;  %4661 = vmatpush3.bf16.msra.mxu1 %v6802_v11  ;;  %v6819_v11 = vld [vmem:[#allocation5 + $0x90] ss:$12 sps:$4 sm:$0xff]   ;;  %v6825_v5 = vld [vmem:[#allocation5 + $0xac] ss:$12 sps:$4 sm:$0xff]  }
 0x216   :  { %1599 = vmatprep.subr.bf16.mxu0 %v6805_v47  ;;  %4662 = vmatprep.subr.bf16.mxu1 %v8350_v0  ;;  %8648 = vst [vmem:[#allocation44_spill] sm:$0xff] %v6819_v11  ;;  %v6822_v47 = vld [vmem:[#allocation5 + $0x98] ss:$12 sps:$4 sm:$0xff]   ;;  %8650 = vst [vmem:[#allocation40_spill] sm:$0xff] %v6825_v5 }
 0x217   :  { %8649 = vst [vmem:[#allocation39_spill] sm:$0xff] %v6822_v47 }
 0x219   :  { %1600 = vmatpush1.bf16.msra.mxu0 %v6809_v24  ;;  %4663 = vmatpush3.bf16.msra.mxu1 %v6812_v44  ;;  %v6829_v44 = vld [vmem:[#allocation5 + $0xa8] ss:$12 sps:$4 sm:$0xff]   ;;  %v6835_v24 = vld [vmem:[#allocation7 + $0x4] ss:$12 sps:$4 sm:$0xff]  }
 0x21a   :  { %1601 = vmatprep.subr.bf16.mxu0 %v6815_v3  ;;  %4664 = vmatprep.subr.bf16.mxu1 %v8350_v0  ;;  %8651 = vst [vmem:[#allocation47_spill] sm:$0xff] %v6829_v44  ;;  %v6832_v3 = vld [vmem:[#allocation5 + $0xb0] ss:$12 sps:$4 sm:$0xff]   ;;  %8653 = vst [vmem:[#allocation43_spill] sm:$0xff] %v6835_v24 }
 0x21b   :  { %8652 = vst [vmem:[#allocation42_spill] sm:$0xff] %v6832_v3 }
 0x21d   :  { %1602 = vmatpush1.bf16.msra.mxu0 %v6819_v11  ;;  %4665 = vmatpush3.bf16.msra.mxu1 %v6822_v47  ;;  %v1588_v47 = vld [vmem:[#allocation2 + $0x8] sm:$0xf] }
 0x21e   :  { %1603 = vmatprep.subr.bf16.mxu0 %v6825_v5  ;;  %4666 = vmatprep.subr.bf16.mxu1 %v8350_v0  ;;  %v6839_v5 = vld [vmem:[#allocation7] ss:$12 sps:$4 sm:$0xff]   ;;  %v6842_v11 = vld [vmem:[#allocation7 + $0x8] ss:$12 sps:$4 sm:$0xff]  }
 0x21f   :  { %8654 = vst [vmem:[#allocation50_spill] sm:$0xff] %v6839_v5  ;;  %8655 = vst [vmem:[#allocation45_spill] sm:$0xff] %v6842_v11 }
 0x221   :  { %1604 = vmatpush1.bf16.msra.mxu0 %v6829_v44  ;;  %4667 = vmatpush3.bf16.msra.mxu1 %v6832_v3  ;;  %v6845_v44 = vld [vmem:[#allocation7 + $0x1c] ss:$12 sps:$4 sm:$0xff]   ;;  %v6868_v3 = vld [vmem:[#allocation7 + $0x4c] ss:$12 sps:$4 sm:$0xff]  }
 0x222   :  { %1671 = vmatprep.subr.bf16.mxu0 %v6835_v24  ;;  %4672 = vmatprep.subr.bf16.mxu1 %v8350_v0  ;;  %8656 = vst [vmem:[#allocation46_spill] sm:$0xff] %v6845_v44  ;;  %v6865_v24 = vld [vmem:[#allocation7 + $0x38] ss:$12 sps:$4 sm:$0xff]   ;;  %8662 = vst [vmem:[#allocation55_spill] sm:$0xff] %v6868_v3 }
 0x223   :  { %8661 = vst [vmem:[#allocation53_spill] sm:$0xff] %v6865_v24 }
 0x224   :  { %1622 = vmatmul.mubr.bf16.vlgmr.msra.gmra.mrb[16].mxu0 %v1588_v47  ;;  %4669 = vmatmul.mubr.bf16.vlgmr.msra.gmra.mrb[32].mxu1 %v1588_v47  ;;  %v6852_v47 = vld [vmem:[#allocation7 + $0x18] ss:$12 sps:$4 sm:$0xff]  }
 0x225   :  { %1672 = vmatpush1.bf16.msra.mxu0 %v6839_v5  ;;  %4673 = vmatpush3.bf16.msra.mxu1 %v6842_v11  ;;  %8657 = vst [vmem:[#allocation48_spill] sm:$0xff] %v6852_v47  ;;  %v6855_v5 = vld [vmem:[#allocation7 + $0x20] ss:$12 sps:$4 sm:$0xff]  }
 0x226   :  { %1673 = vmatprep.subr.bf16.mxu0 %v6845_v44  ;;  %4674 = vmatprep.subr.bf16.mxu1 %v8350_v0  ;;  %8658 = vst [vmem:[#allocation49_spill] sm:$0xff] %v6855_v5  ;;  %v6858_v11 = vld [vmem:[#allocation7 + $0x34] ss:$12 sps:$4 sm:$0xff]   ;;  %v6862_v44 = vld [vmem:[#allocation7 + $0x30] ss:$12 sps:$4 sm:$0xff]  }
 0x227   :  { %1703 = vmatprep.mubr.bf16.mxu0 %v8581_v1  ;;  %4688 = vmatprep.mubr.msk.bf16.mxu1 %vm6018_vm0, %v8350_v0  ;;  %8659 = vst [vmem:[#allocation51_spill] sm:$0xff] %v6858_v11  ;;  %8660 = vst [vmem:[#allocation52_spill] sm:$0xff] %v6862_v44 }
 0x229   :  { %1674 = vmatpush1.bf16.msra.mxu0 %v6852_v47  ;;  %4675 = vmatpush3.bf16.msra.mxu1 %v6855_v5  ;;  %v6872_v5 = vld [vmem:[#allocation7 + $0x48] ss:$12 sps:$4 sm:$0xff]   ;;  %v6878_v47 = vld [vmem:[#allocation7 + $0x64] ss:$12 sps:$4 sm:$0xff]  }
 0x22a   :  { %1675 = vmatprep.subr.bf16.mxu0 %v6858_v11  ;;  %4676 = vmatprep.subr.bf16.mxu1 %v8350_v0  ;;  %8663 = vst [vmem:[#allocation56_spill] sm:$0xff] %v6872_v5  ;;  %v6875_v11 = vld [vmem:[#allocation7 + $0x50] ss:$12 sps:$4 sm:$0xff]   ;;  %8665 = vst [vmem:[#allocation58_spill] sm:$0xff] %v6878_v47 }
 0x22b   :  { %8664 = vst [vmem:[#allocation57_spill] sm:$0xff] %v6875_v11 }
 0x22d   :  { %1676 = vmatpush1.bf16.msra.mxu0 %v6862_v44  ;;  %4677 = vmatpush3.bf16.msra.mxu1 %v6865_v24  ;;  %v6882_v24 = vld [vmem:[#allocation7 + $0x60] ss:$12 sps:$4 sm:$0xff]   ;;  %v6888_v44 = vld [vmem:[#allocation7 + $0x7c] ss:$12 sps:$4 sm:$0xff]  }
 0x22e   :  { %1677 = vmatprep.subr.bf16.mxu0 %v6868_v3  ;;  %4678 = vmatprep.subr.bf16.mxu1 %v8350_v0  ;;  %8666 = vst [vmem:[#allocation59_spill] sm:$0xff] %v6882_v24  ;;  %v6885_v3 = vld [vmem:[#allocation7 + $0x68] ss:$12 sps:$4 sm:$0xff]   ;;  %8668 = vst [vmem:[#allocation61_spill] sm:$0xff] %v6888_v44 }
 0x22f   :  { %8667 = vst [vmem:[#allocation60_spill] sm:$0xff] %v6885_v3 }
 0x231   :  { %1678 = vmatpush1.bf16.msra.mxu0 %v6872_v5  ;;  %4679 = vmatpush3.bf16.msra.mxu1 %v6875_v11  ;;  %v6892_v11 = vld [vmem:[#allocation7 + $0x78] ss:$12 sps:$4 sm:$0xff]  }
 0x232   :  { %1679 = vmatprep.subr.bf16.mxu0 %v6878_v47  ;;  %4680 = vmatprep.subr.bf16.mxu1 %v8350_v0  ;;  %8669 = vst [vmem:[#allocation62_spill] sm:$0xff] %v6892_v11  ;;  %v6896_v47 = vld [vmem:[#allocation7 + $0x94] ss:$12 sps:$4 sm:$0xff]  }
 0x233   :  { %8670 = vst [vmem:[#allocation63_spill] sm:$0xff] %v6896_v47 }
 0x235   :  { %1680 = vmatpush1.bf16.msra.mxu0 %v6882_v24  ;;  %4681 = vmatpush3.bf16.msra.mxu1 %v6885_v3  ;;  %v6900_v24 = vld [vmem:[#allocation7 + $0x90] ss:$12 sps:$4 sm:$0xff]  }
 0x236   :  { %1681 = vmatprep.subr.bf16.mxu0 %v6888_v44  ;;  %4682 = vmatprep.subr.bf16.mxu1 %v8350_v0  ;;  %8671 = vst [vmem:[#allocation64_spill] sm:$0xff] %v6900_v24  ;;  %v6904_v44 = vld [vmem:[#allocation7 + $0xac] ss:$12 sps:$4 sm:$0xff]  }
 0x237   :  { %8672 = vst [vmem:[#allocation65_spill] sm:$0xff] %v6904_v44 }
 0x239   :  { %1682 = vmatpush1.bf16.msra.mxu0 %v6892_v11  ;;  %4683 = vmatpush3.bf16.msra.mxu1 %v6356_v48  ;;  %v6908_v11 = vld [vmem:[#allocation7 + $0xa8] ss:$12 sps:$4 sm:$0xff]   ;;  %v6912_v48 = vld [vmem:[#allocation8 + $0x4] ss:$12 sps:$4 sm:$0xff]  }
 0x23a   :  { %1683 = vmatprep.subr.bf16.mxu0 %v6896_v47  ;;  %4684 = vmatprep.subr.bf16.mxu1 %v8350_v0  ;;  %8673 = vst [vmem:[#allocation66_spill] sm:$0xff] %v6908_v11  ;;  %8674 = vst [vmem:[#allocation67_spill] sm:$0xff] %v6912_v48 }
 0x23d   :  { %1684 = vmatpush1.bf16.msra.mxu0 %v6900_v24  ;;  %4685 = vmatpush3.bf16.msra.mxu1 %v6366_v51 }
 0x23e   :  { %1685 = vmatprep.subr.bf16.mxu0 %v6904_v44  ;;  %4686 = vmatprep.subr.bf16.mxu1 %v8350_v0 }
 0x241   :  { %1686 = vmatpush1.bf16.msra.mxu0 %v6908_v11  ;;  %4687 = vmatpush3.bf16.msra.mxu1 %v6377_v54 }
 0x242   :  { %1775 = vmatprep.subr.bf16.mxu0 %v6912_v48  ;;  %4692 = vmatprep.subr.bf16.mxu1 %v8350_v0 }
 0x297   :  { %v1333_v24 = vpop.f32.mrb[8].mxu0  ;;  %v1374_v51 = vpop.f32.mrb[20].mxu1 }
 0x298   :  { %v5181_v47 = vadd.f32 %v6626_v17, %v1333_v24  ;;  %v1335_v3 = vpop.f32.mrb[9].mxu0  ;;  %v4610_v44 = vpop.f32.mrb[21].mxu1  ;;  %v1375_v62 = vadd.f32 %v1374_v51, %v6635_v35 }
 0x299   :  { %v1337_v5 = vpop.f32.mrb[10].mxu0  ;;  %v1377_v41 = vpop.f32.mrb[22].mxu1  ;;  %v5183_v11 = vadd.f32 %v6628_v19, %v1335_v3  ;;  %v1293_v44 = vadd.f32 %v6740_v39, %v6638_v37 }
 0x29a   :  { %v4141_v40 = vmul.f32 -1.442695, %v5181_v47  ;;  %v1338_v45 = vpop.f32.mrb[11].mxu0  ;;  %v4611_v12 = vpop.f32.mrb[23].mxu1 }
 0x29b   :  { %v4142_v54 = vmul.f32 -1.442695, %v5183_v11 }
 0x29c   :  { %5479 = vpow2.f32 %v4141_v40 }
 0x29d   :  { %5481 = vpow2.f32 %v4142_v54  ;;  %v6934_v54 = vld [vmem:[#allocation8 + $0x1c] ss:$12 sps:$4 sm:$0xff]  }
 0x2a6   :  { %v5480_v28 = vpop.eup %5479 }
 0x2a7   :  { %v1384_v48 = vadd.f32 1.0, %v5480_v28  ;;  %v5482_v0 = vpop.eup %5481 }
 0x2a8   :  { %v1391_v27 = vadd.f32 1.0, %v5482_v0 }
 0x2a9   :  { %5483 = vrcp.f32 %v1384_v48 }
 0x2aa   :  { %5485 = vrcp.f32 %v1391_v27  ;;  %v6931_v27 = vld [vmem:[#allocation8 + $0x8] ss:$12 sps:$4 sm:$0xff]  }
 0x2b3   :  { %v5484_v24 = vpop.eup %5483 }
 0x2b4   :  { %v1394_v41 = vmul.f32 %v5484_v24, %v1375_v62  ;;  %v5486_v3 = vpop.eup %5485  ;;  %v6928_v62 = vld [vmem:[#allocation8] ss:$12 sps:$4 sm:$0xff]   ;;  %v6941_v24 = vld [vmem:[#allocation8 + $0x18] ss:$12 sps:$4 sm:$0xff]  }
 0x2b5   :  { %v1397_v28 = vsub.f32 1.0, %v5486_v3  ;;  %v1399_v0 = vmul.f32 %v5486_v3, %v6644_v7  ;;  %v8675_v7 = vmov 0.0  }
 0x2b6   :  { %v1395_v45 = vadd.f32 %v1394_v41, %v1293_v44  ;;  %v6945_v44 = vld [vmem:[#allocation8 + $0x34] ss:$12 sps:$4 sm:$0xff]   ;;  %v6949_v41 = vld [vmem:[#allocation8 + $0x30] ss:$12 sps:$4 sm:$0xff]  }
 0x2b7   :  { %v6921_v12 = vpop.f32.mrb[24].mxu1 }
 0x2b8   :  { %5487 = vtanh.f32 %v1395_v45  ;;  %v4630_v40 = vpop.f32.mrb[25].mxu1  ;;  %v6953_v45 = vld [vmem:[#allocation8 + $0x4c] ss:$12 sps:$4 sm:$0xff]  }
 0x2b9   :  { %v1481_v5 = vpop.f32.mrb[26].mxu1  ;;  %8676 = vst [vmem:[#allocation68_spill] sm:$0xff] %v6953_v45  ;;  %v6957_v40 = vld [vmem:[#allocation8 + $0x48] ss:$12 sps:$4 sm:$0xff]  }
 0x2ba   :  { %v4631_v11 = vpop.f32.mrb[27].mxu1  ;;  %8677 = vst [vmem:[#allocation69_spill] sm:$0xff] %v6957_v40 }
 0x2bb   :  { %v6961_v11 = vld [vmem:[#allocation8 + $0x64] ss:$12 sps:$4 sm:$0xff]  }
 0x2bc   :  { %8678 = vst [vmem:[#allocation70_spill] sm:$0xff] %v6961_v11 }
 0x2c2   :  { %v5488_v47 = vpop.eup %5487 }
 0x2c3   :  { %v1398_v48 = vmul.f32 %v5488_v47, %v1397_v28 }
 0x2c5   :  { %v6924_v51 = vadd.f32 %v1399_v0, %v1398_v48 }
 0x2c7   :  { %v1670_v39 = vpack.c.bf16 %v6924_v51, %v6924_v51 }
 0x2c9   :  { %1704 = vmatmul.mubr.bf16.vlgmr.msra.gmra.mrb[16].mxu0 %v1670_v39  ;;  %4689 = vmatmul.mubr.bf16.vlgmr.msra.gmra.mrb[36].mxu1 %v1670_v39 }
 0x2ca   :  { %1776 = vmatpush1.bf16.msra.mxu0 %v6928_v62  ;;  %4693 = vmatpush3.bf16.msra.mxu1 %v6931_v27 }
 0x2cb   :  { %1777 = vmatprep.subr.bf16.mxu0 %v6934_v54  ;;  %4694 = vmatprep.subr.bf16.mxu1 %v8675_v7 }
 0x2cc   :  { %1807 = vmatprep.mubr.bf16.mxu0 %v8581_v1  ;;  %4708 = vmatprep.mubr.msk.bf16.mxu1 %vm6018_vm0, %v8675_v7 }
 0x2ce   :  { %1778 = vmatpush1.bf16.msra.mxu0 %v6941_v24  ;;  %4695 = vmatpush3.bf16.msra.mxu1 %v6401_v61 }
 0x2cf   :  { %1779 = vmatprep.subr.bf16.mxu0 %v6945_v44  ;;  %4696 = vmatprep.subr.bf16.mxu1 %v8675_v7 }
 0x2d2   :  { %1780 = vmatpush1.bf16.msra.mxu0 %v6949_v41  ;;  %4697 = vmatpush3.bf16.msra.mxu1 %v8596_v13 }
 0x2d3   :  { %1781 = vmatprep.subr.bf16.mxu0 %v6953_v45  ;;  %4698 = vmatprep.subr.bf16.mxu1 %v8675_v7 }
 0x2d6   :  { %1782 = vmatpush1.bf16.msra.mxu0 %v6957_v40  ;;  %4699 = vmatpush3.bf16.msra.mxu1 %v8599_v20  ;;  %v6966_v40 = vld [vmem:[#allocation8 + $0x60] ss:$12 sps:$4 sm:$0xff]  }
 0x2d7   :  { %v1519_v61 = vpop.f32.mrb[12].mxu0  ;;  %v1560_v5 = vpop.f32.mrb[28].mxu1  ;;  %1783 = vmatprep.subr.bf16.mxu0 %v6961_v11  ;;  %4700 = vmatprep.subr.bf16.mxu1 %v8675_v7  ;;  %v6971_v11 = vld [vmem:[#allocation8 + $0x7c] ss:$12 sps:$4 sm:$0xff]  }
 0x2d8   :  { %v5185_v13 = vadd.f32 %v6677_v16, %v1519_v61  ;;  %v1521_v3 = vpop.f32.mrb[13].mxu0  ;;  %v4650_v28 = vpop.f32.mrb[29].mxu1  ;;  %v8692_v61 = vld [vmem:[#allocation31_spill] sm:$0xff] }
 0x2d9   :  { %v1523_v47 = vpop.f32.mrb[14].mxu0  ;;  %v1563_v48 = vpop.f32.mrb[30].mxu1  ;;  %v5187_v20 = vadd.f32 %v6681_v21, %v1521_v3  ;;  %v8695_v3 = vld [vmem:[#allocation34_spill] sm:$0xff]  ;;  %v8696_v28 = vld [vmem:[#allocation41_spill] sm:$0xff] }
 0x2da   :  { %v4143_v0 = vmul.f32 -1.442695, %v5185_v13  ;;  %v1524_v39 = vpop.f32.mrb[15].mxu0  ;;  %v4651_v45 = vpop.f32.mrb[31].mxu1  ;;  %1784 = vmatpush1.bf16.msra.mxu0 %v6966_v40  ;;  %4701 = vmatpush3.bf16.msra.mxu1 %v8602_v29  ;;  %v8694_v13 = vld [vmem:[#allocation33_spill] sm:$0xff]  ;;  %v8697_v47 = vld [vmem:[#allocation36_spill] sm:$0xff] }
 0x2db   :  { %1785 = vmatprep.subr.bf16.mxu0 %v6971_v11  ;;  %4702 = vmatprep.subr.bf16.mxu1 %v8675_v7  ;;  %v4144_v45 = vmul.f32 -1.442695, %v5187_v20  ;;  %v8698_v48 = vld [vmem:[#allocation37_spill] sm:$0xff]  ;;  %v8700_v39 = vld [vmem:[#allocation39_spill] sm:$0xff]  ;;  %v8701_v20 = vld [vmem:[#allocation40_spill] sm:$0xff] }
 0x2dc   :  { %5489 = vpow2.f32 %v4143_v0  ;;  %v8699_v0 = vld [vmem:[#allocation44_spill] sm:$0xff] }
 0x2dd   :  { %5491 = vpow2.f32 %v4144_v45  ;;  %v8702_v45 = vld [vmem:[#allocation47_spill] sm:$0xff] }
 0x2de   :  { %1786 = vmatpush1.bf16.msra.mxu0 %v8604_v32  ;;  %4703 = vmatpush3.bf16.msra.mxu1 %v8605_v33  ;;  %v1774_v32 = vld [vmem:[#allocation2 + $0x14] sm:$0xf] }
 0x2df   :  { %1787 = vmatprep.subr.bf16.mxu0 %v8606_v38  ;;  %4704 = vmatprep.subr.bf16.mxu1 %v8675_v7 }
 0x2e2   :  { %1788 = vmatpush1.bf16.msra.mxu0 %v8607_v42  ;;  %4705 = vmatpush3.bf16.msra.mxu1 %v8608_v43  ;;  %v1561_v43 = vadd.f32 %v1560_v5, %v6708_v10  ;;  %v8693_v5 = vld [vmem:[#allocation38_spill] sm:$0xff] }
 0x2e3   :  { %1789 = vmatprep.subr.bf16.mxu0 %v8609_v46  ;;  %4706 = vmatprep.subr.bf16.mxu1 %v8675_v7 }
 0x2e6   :  { %v5490_v29 = vpop.eup %5489  ;;  %1790 = vmatpush1.bf16.msra.mxu0 %v8610_v49  ;;  %4707 = vmatpush3.bf16.msra.mxu1 %v8611_v2  ;;  %v1479_v49 = vadd.f32 %v6921_v12, %v6719_v18  ;;  %v8691_v12 = vld [vmem:[#allocation30_spill] sm:$0xff] }
 0x2e7   :  { %v1570_v33 = vadd.f32 1.0, %v5490_v29  ;;  %1857 = vmatprep.subr.bf16.mxu0 %v8612_v6  ;;  %4712 = vmatprep.subr.bf16.mxu1 %v8675_v7  ;;  %v5492_v38 = vpop.eup %5491  ;;  %v8703_v29 = vld [vmem:[#allocation42_spill] sm:$0xff] }
 0x2e8   :  { %v1577_v42 = vadd.f32 1.0, %v5492_v38  ;;  %v8706_v38 = vld [vmem:[#allocation50_spill] sm:$0xff] }
 0x2e9   :  { %5493 = vrcp.f32 %v1570_v33  ;;  %1808 = vmatmul.mubr.bf16.vlgmr.msra.gmra.mrb[20].mxu0 %v1774_v32  ;;  %4709 = vmatmul.mubr.bf16.vlgmr.msra.gmra.mrb[40].mxu1 %v1774_v32  ;;  %v8704_v32 = vld [vmem:[#allocation43_spill] sm:$0xff]  ;;  %v7067_v33 = vld [vmem:[#allocation2 + $0xc] sm:$0xf] }
 0x2ea   :  { %1858 = vmatpush1.bf16.msra.mxu0 %v8613_v8  ;;  %4713 = vmatpush3.bf16.msra.mxu1 %v8614_v52  ;;  %5495 = vrcp.f32 %v1577_v42  ;;  %v8707_v42 = vld [vmem:[#allocation45_spill] sm:$0xff] }
 0x2eb   :  { %1859 = vmatprep.subr.bf16.mxu0 %v8615_v57  ;;  %4714 = vmatprep.subr.bf16.mxu1 %v8675_v7 }
 0x2ec   :  { %1889 = vmatprep.mubr.bf16.mxu0 %v8581_v1  ;;  %4728 = vmatprep.mubr.msk.bf16.mxu1 %vm6018_vm0, %v8675_v7 }
 0x2ee   :  { %1860 = vmatpush1.bf16.msra.mxu0 %v8617_v53  ;;  %4715 = vmatpush3.bf16.msra.mxu1 %v8618_v14 }
 0x2ef   :  { %1861 = vmatprep.subr.bf16.mxu0 %v8619_v15  ;;  %4716 = vmatprep.subr.bf16.mxu1 %v8675_v7 }
 0x2f2   :  { %1862 = vmatpush1.bf16.msra.mxu0 %v8620_v22  ;;  %4717 = vmatpush3.bf16.msra.mxu1 %v8621_v23  ;;  %v8679_v22 = vld [vmem:[#allocation54_spill] sm:$0xff] }
 0x2f3   :  { %v5494_v46 = vpop.eup %5493  ;;  %1863 = vmatprep.subr.bf16.mxu0 %v8622_v26  ;;  %4718 = vmatprep.subr.bf16.mxu1 %v8675_v7  ;;  %v8680_v26 = vld [vmem:[#allocation21_spill] sm:$0xff]  ;;  %8705 = vst [vmem:[#allocation54_spill] sm:$0xff] %v7067_v33 }
 0x2f4   :  { %v1580_v2 = vmul.f32 %v5494_v46, %v1561_v43  ;;  %v5496_v52 = vpop.eup %5495  ;;  %v8708_v43 = vld [vmem:[#allocation46_spill] sm:$0xff]  ;;  %v8709_v46 = vld [vmem:[#allocation48_spill] sm:$0xff] }
 0x2f5   :  { %v1583_v14 = vsub.f32 1.0, %v5496_v52 }
 0x2f6   :  { %v1581_v6 = vadd.f32 %v1580_v2, %v1479_v49  ;;  %1864 = vmatpush1.bf16.msra.mxu0 %v8623_v34  ;;  %4719 = vmatpush3.bf16.msra.mxu1 %v6504_v58  ;;  %v8683_v34 = vld [vmem:[#allocation23_spill] sm:$0xff]  ;;  %v8710_v49 = vld [vmem:[#allocation49_spill] sm:$0xff] }
 0x2f7   :  { %1865 = vmatprep.subr.bf16.mxu0 %v8624_v50  ;;  %4720 = vmatprep.subr.bf16.mxu1 %v8675_v7  ;;  %v7013_v8 = vpop.f32.mrb[32].mxu1  ;;  %v8685_v50 = vld [vmem:[#allocation24_spill] sm:$0xff]  ;;  %v8711_v2 = vld [vmem:[#allocation51_spill] sm:$0xff] }
 0x2f8   :  { %5497 = vtanh.f32 %v1581_v6  ;;  %v4670_v58 = vpop.f32.mrb[33].mxu1  ;;  %v8712_v6 = vld [vmem:[#allocation52_spill] sm:$0xff] }
 0x2f9   :  { %v1667_v57 = vpop.f32.mrb[34].mxu1  ;;  %v8714_v58 = vld [vmem:[#allocation55_spill] sm:$0xff] }
 0x2fa   :  { %1866 = vmatpush1.bf16.msra.mxu0 %v8625_v30  ;;  %4721 = vmatpush3.bf16.msra.mxu1 %v6514_v55  ;;  %v4671_v53 = vpop.f32.mrb[35].mxu1  ;;  %v8686_v30 = vld [vmem:[#allocation25_spill] sm:$0xff]  ;;  %v8715_v57 = vld [vmem:[#allocation56_spill] sm:$0xff] }
 0x2fb   :  { %1867 = vmatprep.subr.bf16.mxu0 %v8626_v31  ;;  %4722 = vmatprep.subr.bf16.mxu1 %v8675_v7  ;;  %v8687_v31 = vld [vmem:[#allocation32_spill] sm:$0xff]  ;;  %v8716_v53 = vld [vmem:[#allocation57_spill] sm:$0xff] }
 0x2fe   :  { %1868 = vmatpush1.bf16.msra.mxu0 %v6501_v59  ;;  %4723 = vmatpush3.bf16.msra.mxu1 %v6524_v63  ;;  %v1585_v63 = vmul.f32 %v5496_v52, %v6746_v9  ;;  %v8690_v9 = vld [vmem:[#allocation35_spill] sm:$0xff]  ;;  %v8713_v52 = vld [vmem:[#allocation53_spill] sm:$0xff] }
 0x2ff   :  { %1869 = vmatprep.subr.bf16.mxu0 %v8627_v36  ;;  %4724 = vmatprep.subr.bf16.mxu1 %v8675_v7  ;;  %v8688_v36 = vld [vmem:[#allocation27_spill] sm:$0xff] }
 0x302   :  { %v5498_v55 = vpop.eup %5497  ;;  %1870 = vmatpush1.bf16.msra.mxu0 %v8628_v4  ;;  %4725 = vmatpush3.bf16.msra.mxu1 %v6530_v60  ;;  %v8681_v60 = vld [vmem:[#allocation26_spill] sm:$0xff]  ;;  %v8689_v4 = vld [vmem:[#allocation28_spill] sm:$0xff] }
 0x303   :  { %1871 = vmatprep.subr.bf16.mxu0 %v6517_v56  ;;  %4726 = vmatprep.subr.bf16.mxu1 %v8675_v7  ;;  %v1584_v59 = vmul.f32 %v5498_v55, %v1583_v14  ;;  %v8682_v56 = vld [vmem:[#allocation22_spill] sm:$0xff]  ;;  %v8718_v55 = vld [vmem:[#allocation59_spill] sm:$0xff] }
 0x304   :  { %v8717_v14 = vld [vmem:[#allocation58_spill] sm:$0xff] }
 0x305   :  { %v7024_v15 = vadd.f32 %v1585_v63, %v1584_v59  ;;  %v8719_v59 = vld [vmem:[#allocation60_spill] sm:$0xff]  ;;  %v8720_v63 = vld [vmem:[#allocation61_spill] sm:$0xff] }
 0x306   :  { %1872 = vmatpush1.bf16.msra.mxu0 %v6521_v25  ;;  %4727 = vmatpush3.bf16.msra.mxu1 %v8679_v22  ;;  %v8684_v25 = vld [vmem:[#allocation29_spill] sm:$0xff]  ;;  %v8721_v22 = vld [vmem:[#allocation62_spill] sm:$0xff] }
 0x307   :  { %v1856_v23 = vpack.c.bf16 %v7024_v15, %v7024_v15  ;;  %1961 = vmatprep.subr.bf16.mxu0 %v8680_v26  ;;  %4732 = vmatprep.subr.bf16.mxu1 %v8675_v7 }
 0x309   :  { %1890 = vmatmul.mubr.bf16.vlgmr.msra.gmra.mrb[20].mxu0 %v1856_v23  ;;  %4729 = vmatmul.mubr.bf16.vlgmr.msra.gmra.mrb[44].mxu1 %v1856_v23  ;;  %v7095_v23 = vld [vmem:[#allocation7 + $0x80] ss:$12 sps:$4 sm:$0xff]  }
 0x30a   :  { %1962 = vmatpush1.bf16.msra.mxu0 %v8681_v60  ;;  %4733 = vmatpush3.bf16.msra.mxu1 %v8682_v56  ;;  %8722 = vst [vmem:[#allocation21_spill] sm:$0xff] %v7095_v23 }
 0x30b   :  { %1963 = vmatprep.subr.bf16.mxu0 %v8683_v34  ;;  %4734 = vmatprep.subr.bf16.mxu1 %v8675_v7 }
 0x30c   :  { %1993 = vmatprep.mubr.bf16.mxu0 %v8581_v1  ;;  %4748 = vmatprep.mubr.msk.bf16.mxu1 %vm6018_vm0, %v8675_v7 }
 0x30e   :  { %1964 = vmatpush1.bf16.msra.mxu0 %v8684_v25  ;;  %4735 = vmatpush3.bf16.msra.mxu1 %v8685_v50 }
 0x30f   :  { %1965 = vmatprep.subr.bf16.mxu0 %v8686_v30  ;;  %4736 = vmatprep.subr.bf16.mxu1 %v8675_v7 }
 0x312   :  { %1966 = vmatpush1.bf16.msra.mxu0 %v8687_v31  ;;  %4737 = vmatpush3.bf16.msra.mxu1 %v8688_v36 }
 0x313   :  { %1967 = vmatprep.subr.bf16.mxu0 %v8689_v4  ;;  %4738 = vmatprep.subr.bf16.mxu1 %v8675_v7 }
 0x316   :  { %1968 = vmatpush1.bf16.msra.mxu0 %v8690_v9  ;;  %4739 = vmatpush3.bf16.msra.mxu1 %v8691_v12 }
 0x317   :  { %1969 = vmatprep.subr.bf16.mxu0 %v8692_v61  ;;  %4740 = vmatprep.subr.bf16.mxu1 %v8675_v7 }
 0x31a   :  { %1970 = vmatpush1.bf16.msra.mxu0 %v8693_v5  ;;  %4741 = vmatpush3.bf16.msra.mxu1 %v8694_v13 }
 0x31b   :  { %1971 = vmatprep.subr.bf16.mxu0 %v8695_v3  ;;  %4742 = vmatprep.subr.bf16.mxu1 %v8675_v7 }
 0x31e   :  { %1972 = vmatpush1.bf16.msra.mxu0 %v8696_v28  ;;  %4743 = vmatpush3.bf16.msra.mxu1 %v8697_v47 }
 0x31f   :  { %1973 = vmatprep.subr.bf16.mxu0 %v8698_v48  ;;  %4744 = vmatprep.subr.bf16.mxu1 %v8675_v7 }
 0x322   :  { %1974 = vmatpush1.bf16.msra.mxu0 %v8699_v0  ;;  %4745 = vmatpush3.bf16.msra.mxu1 %v8700_v39 }
 0x323   :  { %1975 = vmatprep.subr.bf16.mxu0 %v8701_v20  ;;  %4746 = vmatprep.subr.bf16.mxu1 %v8675_v7 }
 0x326   :  { %1976 = vmatpush1.bf16.msra.mxu0 %v8702_v45  ;;  %4747 = vmatpush3.bf16.msra.mxu1 %v8703_v29 }
 0x327   :  { %2043 = vmatprep.subr.bf16.mxu0 %v8704_v32  ;;  %4752 = vmatprep.subr.bf16.mxu1 %v8675_v7 }
 0x329   :  { %1994 = vmatmul.mubr.bf16.vlgmr.msra.gmra.mrb[24].mxu0 %v7067_v33  ;;  %4749 = vmatmul.mubr.bf16.vlgmr.msra.gmra.mrb[48].mxu1 %v7067_v33  ;;  %v8723_v33 = vld [vmem:[#allocation63_spill] sm:$0xff] }
 0x32a   :  { %2044 = vmatpush1.bf16.msra.mxu0 %v8706_v38  ;;  %4753 = vmatpush3.bf16.msra.mxu1 %v8707_v42 }
 0x32b   :  { %2045 = vmatprep.subr.bf16.mxu0 %v8708_v43  ;;  %4754 = vmatprep.subr.bf16.mxu1 %v8675_v7 }
 0x32c   :  { %2075 = vmatprep.mubr.bf16.mxu0 %v8581_v1  ;;  %4768 = vmatprep.mubr.msk.bf16.mxu1 %vm6018_vm0, %v8675_v7 }
 0x32e   :  { %2046 = vmatpush1.bf16.msra.mxu0 %v8709_v46  ;;  %4755 = vmatpush3.bf16.msra.mxu1 %v8710_v49 }
 0x32f   :  { %2047 = vmatprep.subr.bf16.mxu0 %v8711_v2  ;;  %4756 = vmatprep.subr.bf16.mxu1 %v8675_v7 }
 0x332   :  { %2048 = vmatpush1.bf16.msra.mxu0 %v8712_v6  ;;  %4757 = vmatpush3.bf16.msra.mxu1 %v8713_v52 }
 0x333   :  { %2049 = vmatprep.subr.bf16.mxu0 %v8714_v58  ;;  %4758 = vmatprep.subr.bf16.mxu1 %v8675_v7 }
 0x336   :  { %2050 = vmatpush1.bf16.msra.mxu0 %v8715_v57  ;;  %4759 = vmatpush3.bf16.msra.mxu1 %v8716_v53  ;;  %v7101_v53 = vld [vmem:[#allocation7 + $0x98] ss:$12 sps:$4 sm:$0xff]  }
 0x337   :  { %2051 = vmatprep.subr.bf16.mxu0 %v8717_v14  ;;  %4760 = vmatprep.subr.bf16.mxu1 %v8675_v7  ;;  %v8724_v14 = vld [vmem:[#allocation64_spill] sm:$0xff]  ;;  %8725 = vst [vmem:[#allocation26_spill] sm:$0xff] %v7101_v53 }
 0x33a   :  { %2052 = vmatpush1.bf16.msra.mxu0 %v8718_v55  ;;  %4761 = vmatpush3.bf16.msra.mxu1 %v8719_v59  ;;  %v8726_v59 = vld [vmem:[#allocation65_spill] sm:$0xff] }
 0x33b   :  { %2053 = vmatprep.subr.bf16.mxu0 %v8720_v63  ;;  %4762 = vmatprep.subr.bf16.mxu1 %v8675_v7  ;;  %v8727_v63 = vld [vmem:[#allocation66_spill] sm:$0xff] }
 0x33e   :  { %2054 = vmatpush1.bf16.msra.mxu0 %v8721_v22  ;;  %4763 = vmatpush3.bf16.msra.mxu1 %v7095_v23  ;;  %v7107_v22 = vld [vmem:[#allocation7 + $0xb0] ss:$12 sps:$4 sm:$0xff]   ;;  %v8729_v23 = vld [vmem:[#allocation67_spill] sm:$0xff] }
 0x33f   :  { %2055 = vmatprep.subr.bf16.mxu0 %v8723_v33  ;;  %4764 = vmatprep.subr.bf16.mxu1 %v8675_v7  ;;  %8728 = vst [vmem:[#allocation22_spill] sm:$0xff] %v7107_v22 }
 0x342   :  { %2056 = vmatpush1.bf16.msra.mxu0 %v8724_v14  ;;  %4765 = vmatpush3.bf16.msra.mxu1 %v7101_v53 }
 0x343   :  { %2057 = vmatprep.subr.bf16.mxu0 %v8726_v59  ;;  %4766 = vmatprep.subr.bf16.mxu1 %v8675_v7 }
 0x346   :  { %2058 = vmatpush1.bf16.msra.mxu0 %v8727_v63  ;;  %4767 = vmatpush3.bf16.msra.mxu1 %v7107_v22 }
 0x347   :  { %2147 = vmatprep.subr.bf16.mxu0 %v8729_v23  ;;  %4772 = vmatprep.subr.bf16.mxu1 %v8675_v7 }
 0x39c   :  { %v1705_v33 = vpop.f32.mrb[16].mxu0  ;;  %v1746_v14 = vpop.f32.mrb[36].mxu1 }
 0x39d   :  { %v5189_v55 = vadd.f32 %v6626_v17, %v1705_v33  ;;  %v1707_v57 = vpop.f32.mrb[17].mxu0  ;;  %v4690_v53 = vpop.f32.mrb[37].mxu1  ;;  %v1747_v42 = vadd.f32 %v1746_v14, %v6635_v35 }
 0x39e   :  { %v1709_v58 = vpop.f32.mrb[18].mxu0  ;;  %v1749_v59 = vpop.f32.mrb[38].mxu1  ;;  %v5191_v63 = vadd.f32 %v6628_v19, %v1707_v57 }
 0x39f   :  { %v4145_v52 = vmul.f32 -1.442695, %v5189_v55  ;;  %v1710_v6 = vpop.f32.mrb[19].mxu0  ;;  %v4691_v2 = vpop.f32.mrb[39].mxu1  ;;  %v1665_v58 = vadd.f32 %v7013_v8, %v6638_v37 }
 0x3a0   :  { %v4146_v49 = vmul.f32 -1.442695, %v5191_v63 }
 0x3a1   :  { %5499 = vpow2.f32 %v4145_v52 }
 0x3a2   :  { %5501 = vpow2.f32 %v4146_v49 }
 0x3ab   :  { %v5500_v22 = vpop.eup %5499 }
 0x3ac   :  { %v1756_v23 = vadd.f32 1.0, %v5500_v22  ;;  %v5502_v46 = vpop.eup %5501 }
 0x3ad   :  { %v1763_v43 = vadd.f32 1.0, %v5502_v46 }
 0x3ae   :  { %5503 = vrcp.f32 %v1756_v23  ;;  %v8731_v23 = vld [vmem:[#allocation69_spill] sm:$0xff] }
 0x3af   :  { %5505 = vrcp.f32 %v1763_v43  ;;  %v8730_v43 = vld [vmem:[#allocation68_spill] sm:$0xff] }
 0x3b8   :  { %v5504_v33 = vpop.eup %5503 }
 0x3b9   :  { %v1766_v53 = vmul.f32 %v5504_v33, %v1747_v42  ;;  %v5506_v55 = vpop.eup %5505  ;;  %v7138_v42 = vld [vmem:[#allocation8 + $0x38] ss:$12 sps:$4 sm:$0xff]   ;;  %v7144_v33 = vld [vmem:[#allocation8 + $0x50] ss:$12 sps:$4 sm:$0xff]  }
 0x3ba   :  { %v1769_v59 = vsub.f32 1.0, %v5506_v55  ;;  %v1771_v46 = vmul.f32 %v5506_v55, %v6924_v51  ;;  %v7132_v51 = vld [vmem:[#allocation8 + $0x20] ss:$12 sps:$4 sm:$0xff]   ;;  %8732 = vst [vmem:[#allocation23_spill] sm:$0xff] %v7144_v33 }
 0x3bb   :  { %v1767_v6 = vadd.f32 %v1766_v53, %v1665_v58 }
 0x3bc   :  { %v7117_v2 = vpop.f32.mrb[40].mxu1 }
 0x3bd   :  { %5507 = vtanh.f32 %v1767_v6  ;;  %v4710_v52 = vpop.f32.mrb[41].mxu1  ;;  %v8733_v6 = vld [vmem:[#allocation70_spill] sm:$0xff] }
 0x3be   :  { %v1853_v57 = vpop.f32.mrb[42].mxu1 }
 0x3bf   :  { %v4711_v49 = vpop.f32.mrb[43].mxu1 }
 0x3c7   :  { %v5508_v63 = vpop.eup %5507 }
 0x3c8   :  { %v1770_v22 = vmul.f32 %v5508_v63, %v1769_v59 }
 0x3ca   :  { %v7120_v14 = vadd.f32 %v1771_v46, %v1770_v22 }
 0x3cc   :  { %v2042_v8 = vpack.c.bf16 %v7120_v14, %v7120_v14 }
 0x3ce   :  { %2076 = vmatmul.mubr.bf16.vlgmr.msra.gmra.mrb[24].mxu0 %v2042_v8  ;;  %4769 = vmatmul.mubr.bf16.vlgmr.msra.gmra.mrb[52].mxu1 %v2042_v8  ;;  %v7153_v8 = vld [vmem:[#allocation8 + $0x68] ss:$12 sps:$4 sm:$0xff]  }
 0x3cf   :  { %2148 = vmatpush1.bf16.msra.mxu0 %v6928_v62  ;;  %4773 = vmatpush3.bf16.msra.mxu1 %v6931_v27 }
 0x3d0   :  { %2149 = vmatprep.subr.bf16.mxu0 %v6934_v54  ;;  %4774 = vmatprep.subr.bf16.mxu1 %v8675_v7 }
 0x3d1   :  { %2179 = vmatprep.mubr.bf16.mxu0 %v8581_v1  ;;  %4788 = vmatprep.mubr.msk.bf16.mxu1 %vm6018_vm0, %v8675_v7 }
 0x3d3   :  { %2150 = vmatpush1.bf16.msra.mxu0 %v6941_v24  ;;  %4775 = vmatpush3.bf16.msra.mxu1 %v7132_v51 }
 0x3d4   :  { %2151 = vmatprep.subr.bf16.mxu0 %v6945_v44  ;;  %4776 = vmatprep.subr.bf16.mxu1 %v8675_v7 }
 0x3d7   :  { %2152 = vmatpush1.bf16.msra.mxu0 %v6949_v41  ;;  %4777 = vmatpush3.bf16.msra.mxu1 %v7138_v42 }
 0x3d8   :  { %2153 = vmatprep.subr.bf16.mxu0 %v8730_v43  ;;  %4778 = vmatprep.subr.bf16.mxu1 %v8675_v7 }
 0x3db   :  { %2154 = vmatpush1.bf16.msra.mxu0 %v8731_v23  ;;  %4779 = vmatpush3.bf16.msra.mxu1 %v7144_v33 }
 0x3dc   :  { %v1891_v58 = vpop.f32.mrb[20].mxu0  ;;  %v7147_v53 = vpop.f32.mrb[44].mxu1  ;;  %2155 = vmatprep.subr.bf16.mxu0 %v8733_v6  ;;  %4780 = vmatprep.subr.bf16.mxu1 %v8675_v7 }
 0x3dd   :  { %v5193_v52 = vadd.f32 %v6677_v16, %v1891_v58  ;;  %v1893_v57 = vpop.f32.mrb[21].mxu0  ;;  %v4730_v49 = vpop.f32.mrb[45].mxu1  ;;  %v7159_v58 = vld [vmem:[#allocation8 + $0x78] ss:$12 sps:$4 sm:$0xff]  }
 0x3de   :  { %v1895_v55 = vpop.f32.mrb[22].mxu0  ;;  %v1935_v59 = vpop.f32.mrb[46].mxu1  ;;  %v5195_v33 = vadd.f32 %v6681_v21, %v1893_v57  ;;  %v7169_v57 = vld [vmem:[#allocation8 + $0x90] ss:$12 sps:$4 sm:$0xff]  }
 0x3df   :  { %v4147_v63 = vmul.f32 -1.442695, %v5193_v52  ;;  %v1896_v22 = vpop.f32.mrb[23].mxu0  ;;  %v4731_v46 = vpop.f32.mrb[47].mxu1  ;;  %2156 = vmatpush1.bf16.msra.mxu0 %v6966_v40  ;;  %4781 = vmatpush3.bf16.msra.mxu1 %v7153_v8  ;;  %v7162_v52 = vld [vmem:[#allocation8 + $0x80] ss:$12 sps:$4 sm:$0xff]  }
 0x3e0   :  { %2157 = vmatprep.subr.bf16.mxu0 %v6971_v11  ;;  %4782 = vmatprep.subr.bf16.mxu1 %v8675_v7  ;;  %8734 = vst [vmem:[#allocation29_spill] sm:$0xff] %v7162_v52  ;;  %v4148_v49 = vmul.f32 -1.442695, %v5195_v33  ;;  %v7165_v55 = vld [vmem:[#allocation8 + $0x94] ss:$12 sps:$4 sm:$0xff]   ;;  %8736 = vst [vmem:[#allocation25_spill] sm:$0xff] %v7169_v57 }
 0x3e1   :  { %5509 = vpow2.f32 %v4147_v63  ;;  %8735 = vst [vmem:[#allocation24_spill] sm:$0xff] %v7165_v55  ;;  %v7172_v59 = vld [vmem:[#allocation8 + $0x98] ss:$12 sps:$4 sm:$0xff]   ;;  %v7179_v22 = vld [vmem:[#allocation8 + $0xa8] ss:$12 sps:$4 sm:$0xff]  }
 0x3e2   :  { %8737 = vst [vmem:[#allocation32_spill] sm:$0xff] %v7172_v59  ;;  %5511 = vpow2.f32 %v4148_v49  ;;  %v7175_v63 = vld [vmem:[#allocation8 + $0xac] ss:$12 sps:$4 sm:$0xff]   ;;  %8739 = vst [vmem:[#allocation28_spill] sm:$0xff] %v7179_v22  ;;  %v7182_v46 = vld [vmem:[#allocation8 + $0xb0] ss:$12 sps:$4 sm:$0xff]  }
 0x3e3   :  { %2158 = vmatpush1.bf16.msra.mxu0 %v7159_v58  ;;  %4783 = vmatpush3.bf16.msra.mxu1 %v7162_v52  ;;  %8738 = vst [vmem:[#allocation27_spill] sm:$0xff] %v7175_v63  ;;  %8740 = vst [vmem:[#allocation35_spill] sm:$0xff] %v7182_v46  ;;  %v7193_v49 = vld [vmem:[#allocation10] ss:$12 sps:$4 sm:$0xff]   ;;  %v7221_v52 = vld [vmem:[#allocation10 + $0x38] ss:$12 sps:$4 sm:$0xff]  }
 0x3e4   :  { %2159 = vmatprep.subr.bf16.mxu0 %v7165_v55  ;;  %4784 = vmatprep.subr.bf16.mxu1 %v8675_v7  ;;  %8742 = vst [vmem:[#allocation31_spill] sm:$0xff] %v7193_v49  ;;  %8749 = vst [vmem:[#allocation44_spill] sm:$0xff] %v7221_v52 }
 0x3e7   :  { %2160 = vmatpush1.bf16.msra.mxu0 %v7169_v57  ;;  %4785 = vmatpush3.bf16.msra.mxu1 %v7172_v59  ;;  %v7185_v57 = vld [vmem:[#allocation2 + $0x10] sm:$0xf] }
 0x3e8   :  { %2161 = vmatprep.subr.bf16.mxu0 %v7175_v63  ;;  %4786 = vmatprep.subr.bf16.mxu1 %v8675_v7  ;;  %v7187_v59 = vld [vmem:[#allocation10 + $0x4] ss:$12 sps:$4 sm:$0xff]  }
 0x3e9   :  { %8741 = vst [vmem:[#allocation30_spill] sm:$0xff] %v7187_v59  ;;  %v7218_v63 = vld [vmem:[#allocation10 + $0x30] ss:$12 sps:$4 sm:$0xff]  }
 0x3ea   :  { %8748 = vst [vmem:[#allocation37_spill] sm:$0xff] %v7218_v63 }
 0x3eb   :  { %v5510_v33 = vpop.eup %5509  ;;  %2162 = vmatpush1.bf16.msra.mxu0 %v7179_v22  ;;  %4787 = vmatpush3.bf16.msra.mxu1 %v7182_v46  ;;  %v7196_v22 = vld [vmem:[#allocation10 + $0x8] ss:$12 sps:$4 sm:$0xff]   ;;  %v1933_v46 = vadd.f32 %v7147_v53, %v6708_v10 }
 0x3ec   :  { %v1942_v55 = vadd.f32 1.0, %v5510_v33  ;;  %2229 = vmatprep.subr.bf16.mxu0 %v7187_v59  ;;  %4792 = vmatprep.subr.bf16.mxu1 %v8675_v7  ;;  %8743 = vst [vmem:[#allocation38_spill] sm:$0xff] %v7196_v22  ;;  %v7199_v33 = vld [vmem:[#allocation10 + $0x1c] ss:$12 sps:$4 sm:$0xff]   ;;  %v7206_v59 = vld [vmem:[#allocation10 + $0x18] ss:$12 sps:$4 sm:$0xff]  }
 0x3ed   :  { %8744 = vst [vmem:[#allocation33_spill] sm:$0xff] %v7199_v33  ;;  %8745 = vst [vmem:[#allocation34_spill] sm:$0xff] %v7206_v59  ;;  %v7230_v10 = vld [vmem:[#allocation10 + $0x48] ss:$12 sps:$4 sm:$0xff]  }
 0x3ee   :  { %5513 = vrcp.f32 %v1942_v55  ;;  %2180 = vmatmul.mubr.bf16.vlgmr.msra.gmra.mrb[28].mxu0 %v7185_v57  ;;  %4789 = vmatmul.mubr.bf16.vlgmr.msra.gmra.mrb[56].mxu1 %v7185_v57  ;;  %v5512_v55 = vpop.eup %5511  ;;  %8751 = vst [vmem:[#allocation40_spill] sm:$0xff] %v7230_v10 }
 0x3ef   :  { %2230 = vmatpush1.bf16.msra.mxu0 %v7193_v49  ;;  %4793 = vmatpush3.bf16.msra.mxu1 %v7196_v22  ;;  %v7209_v49 = vld [vmem:[#allocation10 + $0x20] ss:$12 sps:$4 sm:$0xff]  }
 0x3f0   :  { %2231 = vmatprep.subr.bf16.mxu0 %v7199_v33  ;;  %4794 = vmatprep.subr.bf16.mxu1 %v8675_v7  ;;  %8746 = vst [vmem:[#allocation41_spill] sm:$0xff] %v7209_v49  ;;  %v7212_v22 = vld [vmem:[#allocation10 + $0x34] ss:$12 sps:$4 sm:$0xff]   ;;  %v1949_v33 = vadd.f32 1.0, %v5512_v55  ;;  %v1851_v55 = vadd.f32 %v7117_v2, %v6719_v18 }
 0x3f1   :  { %2261 = vmatprep.mubr.bf16.mxu0 %v8581_v1  ;;  %4808 = vmatprep.mubr.msk.bf16.mxu1 %vm6018_vm0, %v8675_v7  ;;  %8747 = vst [vmem:[#allocation36_spill] sm:$0xff] %v7212_v22  ;;  %v7243_v2 = vld [vmem:[#allocation10 + $0x68] ss:$12 sps:$4 sm:$0xff]  }
 0x3f2   :  { %5515 = vrcp.f32 %v1949_v33  ;;  %8755 = vst [vmem:[#allocation50_spill] sm:$0xff] %v7243_v2  ;;  %v7252_v33 = vld [vmem:[#allocation10 + $0x78] ss:$12 sps:$4 sm:$0xff]  }
 0x3f3   :  { %2232 = vmatpush1.bf16.msra.mxu0 %v7206_v59  ;;  %4795 = vmatpush3.bf16.msra.mxu1 %v7209_v49  ;;  %v7224_v49 = vld [vmem:[#allocation10 + $0x4c] ss:$12 sps:$4 sm:$0xff]   ;;  %8757 = vst [vmem:[#allocation69_spill] sm:$0xff] %v7252_v33 }
 0x3f4   :  { %2233 = vmatprep.subr.bf16.mxu0 %v7212_v22  ;;  %4796 = vmatprep.subr.bf16.mxu1 %v8675_v7  ;;  %8750 = vst [vmem:[#allocation39_spill] sm:$0xff] %v7224_v49 }
 0x3f7   :  { %2234 = vmatpush1.bf16.msra.mxu0 %v7218_v63  ;;  %4797 = vmatpush3.bf16.msra.mxu1 %v7221_v52  ;;  %v7233_v63 = vld [vmem:[#allocation10 + $0x50] ss:$12 sps:$4 sm:$0xff]  }
 0x3f8   :  { %v5514_v59 = vpop.eup %5513  ;;  %2235 = vmatprep.subr.bf16.mxu0 %v7224_v49  ;;  %4798 = vmatprep.subr.bf16.mxu1 %v8675_v7  ;;  %8752 = vst [vmem:[#allocation47_spill] sm:$0xff] %v7233_v63  ;;  %v7236_v52 = vld [vmem:[#allocation10 + $0x64] ss:$12 sps:$4 sm:$0xff]   ;;  %v7240_v49 = vld [vmem:[#allocation10 + $0x60] ss:$12 sps:$4 sm:$0xff]  }
 0x3f9   :  { %v1952_v22 = vmul.f32 %v5514_v59, %v1933_v46  ;;  %8753 = vst [vmem:[#allocation42_spill] sm:$0xff] %v7236_v52  ;;  %8754 = vst [vmem:[#allocation43_spill] sm:$0xff] %v7240_v49  ;;  %v7246_v59 = vld [vmem:[#allocation10 + $0x7c] ss:$12 sps:$4 sm:$0xff]  }
 0x3fa   :  { %8756 = vst [vmem:[#allocation68_spill] sm:$0xff] %v7246_v59 }
 0x3fb   :  { %v1953_v53 = vadd.f32 %v1952_v22, %v1851_v55  ;;  %2236 = vmatpush1.bf16.msra.mxu0 %v7230_v10  ;;  %4799 = vmatpush3.bf16.msra.mxu1 %v7233_v63  ;;  %v7255_v55 = vld [vmem:[#allocation10 + $0x80] ss:$12 sps:$4 sm:$0xff]   ;;  %v7262_v10 = vld [vmem:[#allocation10 + $0x90] ss:$12 sps:$4 sm:$0xff]  }
 0x3fc   :  { %2237 = vmatprep.subr.bf16.mxu0 %v7236_v52  ;;  %4800 = vmatprep.subr.bf16.mxu1 %v8675_v7  ;;  %v7250_v22 = vpop.f32.mrb[48].mxu1  ;;  %v5516_v46 = vpop.eup %5515  ;;  %8758 = vst [vmem:[#allocation70_spill] sm:$0xff] %v7255_v55  ;;  %8760 = vst [vmem:[#allocation72_spill] sm:$0xff] %v7262_v10 }
 0x3fd   :  { %5517 = vtanh.f32 %v1953_v53  ;;  %v4750_v53 = vpop.f32.mrb[49].mxu1  ;;  %v1955_v52 = vsub.f32 1.0, %v5516_v46 }
 0x3ff   :  { %2238 = vmatpush1.bf16.msra.mxu0 %v7240_v49  ;;  %4801 = vmatpush3.bf16.msra.mxu1 %v7243_v2  ;;  %v7258_v49 = vld [vmem:[#allocation10 + $0x94] ss:$12 sps:$4 sm:$0xff]  }
 0x400   :  { %2239 = vmatprep.subr.bf16.mxu0 %v7246_v59  ;;  %4802 = vmatprep.subr.bf16.mxu1 %v8675_v7  ;;  %8759 = vst [vmem:[#allocation71_spill] sm:$0xff] %v7258_v49  ;;  %v2039_v59 = vpop.f32.mrb[50].mxu1 }
 0x401   :  { %v4751_v2 = vpop.f32.mrb[51].mxu1  ;;  %v1957_v59 = vmul.f32 %v5516_v46, %v7024_v15  ;;  %v8764_v15 = vld [vmem:[#allocation45_spill] sm:$0xff] }
 0x403   :  { %2240 = vmatpush1.bf16.msra.mxu0 %v7252_v33  ;;  %4803 = vmatpush3.bf16.msra.mxu1 %v7255_v55  ;;  %v7265_v33 = vld [vmem:[#allocation10 + $0x98] ss:$12 sps:$4 sm:$0xff]  }
 0x404   :  { %2241 = vmatprep.subr.bf16.mxu0 %v7258_v49  ;;  %4804 = vmatprep.subr.bf16.mxu1 %v8675_v7  ;;  %8761 = vst [vmem:[#allocation73_spill] sm:$0xff] %v7265_v33  ;;  %v7268_v55 = vld [vmem:[#allocation10 + $0xac] ss:$12 sps:$4 sm:$0xff]   ;;  %v7275_v49 = vld [vmem:[#allocation10 + $0xa8] ss:$12 sps:$4 sm:$0xff]  }
 0x405   :  { %8762 = vst [vmem:[#allocation74_spill] sm:$0xff] %v7275_v49 }
 0x407   :  { %v5518_v63 = vpop.eup %5517  ;;  %2242 = vmatpush1.bf16.msra.mxu0 %v7262_v10  ;;  %4805 = vmatpush3.bf16.msra.mxu1 %v7265_v33  ;;  %v7278_v10 = vld [vmem:[#allocation10 + $0xb0] ss:$12 sps:$4 sm:$0xff]  }
 0x408   :  { %2243 = vmatprep.subr.bf16.mxu0 %v7268_v55  ;;  %4806 = vmatprep.subr.bf16.mxu1 %v8675_v7  ;;  %v1956_v53 = vmul.f32 %v5518_v63, %v1955_v52  ;;  %8763 = vst [vmem:[#allocation75_spill] sm:$0xff] %v7278_v10 }
 0x40a   :  { %v7273_v2 = vadd.f32 %v1957_v59, %v1956_v53 }
 0x40b   :  { %2244 = vmatpush1.bf16.msra.mxu0 %v7275_v49  ;;  %4807 = vmatpush3.bf16.msra.mxu1 %v7278_v10 }
 0x40c   :  { %v2228_v33 = vpack.c.bf16 %v7273_v2, %v7273_v2  ;;  %2331 = vmatprep.subr.bf16.mxu0 %v8680_v26  ;;  %4812 = vmatprep.subr.bf16.mxu1 %v8675_v7  ;;  %v8765_v26 = vld [vmem:[#allocation46_spill] sm:$0xff] }
 0x40e   :  { %2262 = vmatmul.mubr.bf16.vlgmr.msra.gmra.mrb[28].mxu0 %v2228_v33  ;;  %4809 = vmatmul.mubr.bf16.vlgmr.msra.gmra.mrb[60].mxu1 %v2228_v33 }
 0x40f   :  { %2332 = vmatpush1.bf16.msra.mxu0 %v8681_v60  ;;  %4813 = vmatpush3.bf16.msra.mxu1 %v8682_v56  ;;  %v8766_v60 = vld [vmem:[#allocation48_spill] sm:$0xff]  ;;  %v8767_v56 = vld [vmem:[#allocation49_spill] sm:$0xff] }
 0x410   :  { %2333 = vmatprep.subr.bf16.mxu0 %v8683_v34  ;;  %4814 = vmatprep.subr.bf16.mxu1 %v8675_v7  ;;  %v8768_v34 = vld [vmem:[#allocation51_spill] sm:$0xff] }
 0x411   :  { %2363 = vmatprep.mubr.bf16.mxu0 %v8581_v1  ;;  %4828 = vmatprep.mubr.msk.bf16.mxu1 %vm6018_vm0, %v8675_v7 }
 0x413   :  { %2334 = vmatpush1.bf16.msra.mxu0 %v8684_v25  ;;  %4815 = vmatpush3.bf16.msra.mxu1 %v8685_v50  ;;  %v8769_v25 = vld [vmem:[#allocation52_spill] sm:$0xff]  ;;  %v8770_v50 = vld [vmem:[#allocation53_spill] sm:$0xff] }
 0x414   :  { %2335 = vmatprep.subr.bf16.mxu0 %v8686_v30  ;;  %4816 = vmatprep.subr.bf16.mxu1 %v8675_v7  ;;  %v8771_v30 = vld [vmem:[#allocation55_spill] sm:$0xff] }
 0x417   :  { %2336 = vmatpush1.bf16.msra.mxu0 %v8687_v31  ;;  %4817 = vmatpush3.bf16.msra.mxu1 %v8688_v36  ;;  %v8772_v31 = vld [vmem:[#allocation56_spill] sm:$0xff]  ;;  %v8773_v36 = vld [vmem:[#allocation57_spill] sm:$0xff] }
 0x418   :  { %2337 = vmatprep.subr.bf16.mxu0 %v8689_v4  ;;  %4818 = vmatprep.subr.bf16.mxu1 %v8675_v7  ;;  %v8774_v4 = vld [vmem:[#allocation58_spill] sm:$0xff] }
 0x41b   :  { %2338 = vmatpush1.bf16.msra.mxu0 %v8690_v9  ;;  %4819 = vmatpush3.bf16.msra.mxu1 %v8691_v12  ;;  %v8775_v9 = vld [vmem:[#allocation59_spill] sm:$0xff]  ;;  %v8776_v12 = vld [vmem:[#allocation60_spill] sm:$0xff] }
 0x41c   :  { %2339 = vmatprep.subr.bf16.mxu0 %v8692_v61  ;;  %4820 = vmatprep.subr.bf16.mxu1 %v8675_v7  ;;  %v8777_v61 = vld [vmem:[#allocation61_spill] sm:$0xff] }
 0x41f   :  { %2340 = vmatpush1.bf16.msra.mxu0 %v8693_v5  ;;  %4821 = vmatpush3.bf16.msra.mxu1 %v8694_v13  ;;  %v8778_v5 = vld [vmem:[#allocation62_spill] sm:$0xff]  ;;  %v8779_v13 = vld [vmem:[#allocation21_spill] sm:$0xff] }
 0x420   :  { %2341 = vmatprep.subr.bf16.mxu0 %v8695_v3  ;;  %4822 = vmatprep.subr.bf16.mxu1 %v8675_v7  ;;  %v8780_v3 = vld [vmem:[#allocation63_spill] sm:$0xff] }
 0x423   :  { %2342 = vmatpush1.bf16.msra.mxu0 %v8696_v28  ;;  %4823 = vmatpush3.bf16.msra.mxu1 %v8697_v47  ;;  %v8781_v28 = vld [vmem:[#allocation64_spill] sm:$0xff]  ;;  %v8782_v47 = vld [vmem:[#allocation26_spill] sm:$0xff] }
 0x424   :  { %2343 = vmatprep.subr.bf16.mxu0 %v8698_v48  ;;  %4824 = vmatprep.subr.bf16.mxu1 %v8675_v7  ;;  %v8783_v48 = vld [vmem:[#allocation65_spill] sm:$0xff] }
 0x427   :  { %2344 = vmatpush1.bf16.msra.mxu0 %v8699_v0  ;;  %4825 = vmatpush3.bf16.msra.mxu1 %v8700_v39  ;;  %v8784_v0 = vld [vmem:[#allocation66_spill] sm:$0xff] }
 0x428   :  { %2345 = vmatprep.subr.bf16.mxu0 %v8701_v20  ;;  %4826 = vmatprep.subr.bf16.mxu1 %v8675_v7  ;;  %v8785_v39 = vld [vmem:[#allocation22_spill] sm:$0xff]  ;;  %v8786_v20 = vld [vmem:[#allocation67_spill] sm:$0xff] }
 0x42b   :  { %2346 = vmatpush1.bf16.msra.mxu0 %v8702_v45  ;;  %4827 = vmatpush3.bf16.msra.mxu1 %v8703_v29 }
 0x42c   :  { %2413 = vmatprep.subr.bf16.mxu0 %v8704_v32  ;;  %4832 = vmatprep.subr.bf16.mxu1 %v8675_v7 }
 0x42e   :  { %2364 = vmatmul.mubr.bf16.vlgmr.msra.gmra.mrb[32].mxu0 %v7185_v57  ;;  %4829 = vmatmul.mubr.bf16.vlgmr.msra.gmra.mrb[64].mxu1 %v7185_v57 }
 0x42f   :  { %2414 = vmatpush1.bf16.msra.mxu0 %v8706_v38  ;;  %4833 = vmatpush3.bf16.msra.mxu1 %v8764_v15 }
 0x430   :  { %2415 = vmatprep.subr.bf16.mxu0 %v8765_v26  ;;  %4834 = vmatprep.subr.bf16.mxu1 %v8675_v7 }
 0x431   :  { %2445 = vmatprep.mubr.bf16.mxu0 %v8581_v1  ;;  %4848 = vmatprep.mubr.msk.bf16.mxu1 %vm6018_vm0, %v8675_v7 }
 0x433   :  { %2416 = vmatpush1.bf16.msra.mxu0 %v8766_v60  ;;  %4835 = vmatpush3.bf16.msra.mxu1 %v8767_v56 }
 0x434   :  { %2417 = vmatprep.subr.bf16.mxu0 %v8768_v34  ;;  %4836 = vmatprep.subr.bf16.mxu1 %v8675_v7 }
 0x437   :  { %2418 = vmatpush1.bf16.msra.mxu0 %v8769_v25  ;;  %4837 = vmatpush3.bf16.msra.mxu1 %v8770_v50 }
 0x438   :  { %2419 = vmatprep.subr.bf16.mxu0 %v8771_v30  ;;  %4838 = vmatprep.subr.bf16.mxu1 %v8675_v7  ;;  %v2037_v30 = vadd.f32 %v7250_v22, %v6638_v37 }
 0x43b   :  { %2420 = vmatpush1.bf16.msra.mxu0 %v8772_v31  ;;  %4839 = vmatpush3.bf16.msra.mxu1 %v8773_v36 }
 0x43c   :  { %2421 = vmatprep.subr.bf16.mxu0 %v8774_v4  ;;  %4840 = vmatprep.subr.bf16.mxu1 %v8675_v7 }
 0x43f   :  { %2422 = vmatpush1.bf16.msra.mxu0 %v8775_v9  ;;  %4841 = vmatpush3.bf16.msra.mxu1 %v8776_v12 }
 0x440   :  { %2423 = vmatprep.subr.bf16.mxu0 %v8777_v61  ;;  %4842 = vmatprep.subr.bf16.mxu1 %v8675_v7 }
 0x443   :  { %2424 = vmatpush1.bf16.msra.mxu0 %v8778_v5  ;;  %4843 = vmatpush3.bf16.msra.mxu1 %v8779_v13 }
 0x444   :  { %2425 = vmatprep.subr.bf16.mxu0 %v8780_v3  ;;  %4844 = vmatprep.subr.bf16.mxu1 %v8675_v7 }
 0x447   :  { %2426 = vmatpush1.bf16.msra.mxu0 %v8781_v28  ;;  %4845 = vmatpush3.bf16.msra.mxu1 %v8782_v47 }
 0x448   :  { %2427 = vmatprep.subr.bf16.mxu0 %v8783_v48  ;;  %4846 = vmatprep.subr.bf16.mxu1 %v8675_v7 }
 0x44b   :  { %2428 = vmatpush1.bf16.msra.mxu0 %v8784_v0  ;;  %4847 = vmatpush3.bf16.msra.mxu1 %v8785_v39 }
 0x44c   :  { %2515 = vmatprep.subr.bf16.mxu0 %v8786_v20  ;;  %4852 = vmatprep.subr.bf16.mxu1 %v8675_v7 }
 0x4a1   :  { %v2077_v45 = vpop.f32.mrb[24].mxu0  ;;  %v2118_v29 = vpop.f32.mrb[52].mxu1 }
 0x4a2   :  { %v5197_v32 = vadd.f32 %v6626_v17, %v2077_v45  ;;  %v2079_v38 = vpop.f32.mrb[25].mxu0  ;;  %v4770_v52 = vpop.f32.mrb[53].mxu1  ;;  %v2119_v25 = vadd.f32 %v2118_v29, %v6635_v35 }
 0x4a3   :  { %v2081_v57 = vpop.f32.mrb[26].mxu0  ;;  %v2121_v63 = vpop.f32.mrb[54].mxu1  ;;  %v5199_v59 = vadd.f32 %v6628_v19, %v2079_v38  ;;  %v8789_v52 = vld [vmem:[#allocation24_spill] sm:$0xff] }
 0x4a4   :  { %v4149_v46 = vmul.f32 -1.442695, %v5197_v32  ;;  %v2082_v33 = vpop.f32.mrb[27].mxu0  ;;  %v4771_v53 = vpop.f32.mrb[55].mxu1  ;;  %v8790_v57 = vld [vmem:[#allocation25_spill] sm:$0xff]  ;;  %v8792_v63 = vld [vmem:[#allocation27_spill] sm:$0xff] }
 0x4a5   :  { %v4150_v15 = vmul.f32 -1.442695, %v5199_v59  ;;  %v8794_v33 = vld [vmem:[#allocation35_spill] sm:$0xff]  ;;  %v8795_v59 = vld [vmem:[#allocation30_spill] sm:$0xff] }
 0x4a6   :  { %5519 = vpow2.f32 %v4149_v46  ;;  %v8793_v46 = vld [vmem:[#allocation28_spill] sm:$0xff] }
 0x4a7   :  { %5521 = vpow2.f32 %v4150_v15  ;;  %v8796_v15 = vld [vmem:[#allocation54_spill] sm:$0xff] }
 0x4b0   :  { %v5520_v26 = vpop.eup %5519 }
 0x4b1   :  { %v2128_v60 = vadd.f32 1.0, %v5520_v26  ;;  %v5522_v56 = vpop.eup %5521  ;;  %v8797_v26 = vld [vmem:[#allocation31_spill] sm:$0xff] }
 0x4b2   :  { %v2135_v34 = vadd.f32 1.0, %v5522_v56  ;;  %v8799_v56 = vld [vmem:[#allocation33_spill] sm:$0xff] }
 0x4b3   :  { %5523 = vrcp.f32 %v2128_v60  ;;  %v8798_v60 = vld [vmem:[#allocation38_spill] sm:$0xff] }
 0x4b4   :  { %5525 = vrcp.f32 %v2135_v34 }
 0x4bd   :  { %v5524_v50 = vpop.eup %5523 }
 0x4be   :  { %v2138_v31 = vmul.f32 %v5524_v50, %v2119_v25  ;;  %v5526_v5 = vpop.eup %5525  ;;  %v8800_v25 = vld [vmem:[#allocation34_spill] sm:$0xff]  ;;  %v8801_v50 = vld [vmem:[#allocation41_spill] sm:$0xff] }
 0x4bf   :  { %v2141_v3 = vsub.f32 1.0, %v5526_v5  ;;  %v2143_v0 = vmul.f32 %v5526_v5, %v7120_v14 }
 0x4c0   :  { %v2139_v36 = vadd.f32 %v2138_v31, %v2037_v30  ;;  %v8802_v30 = vld [vmem:[#allocation36_spill] sm:$0xff] }
 0x4c1   :  { %v7362_v4 = vpop.f32.mrb[56].mxu1 }
 0x4c2   :  { %5527 = vtanh.f32 %v2139_v36  ;;  %v4790_v9 = vpop.f32.mrb[57].mxu1  ;;  %v8803_v36 = vld [vmem:[#allocation20_spill] sm:$0xff] }
 0x4c3   :  { %v2225_v12 = vpop.f32.mrb[58].mxu1 }
 0x4c4   :  { %v4791_v61 = vpop.f32.mrb[59].mxu1  ;;  %v8804_v12 = vld [vmem:[#allocation37_spill] sm:$0xff] }
 0x4c5   :  { %v8805_v61 = vld [vmem:[#allocation44_spill] sm:$0xff] }
 0x4cc   :  { %v5528_v28 = vpop.eup %5527 }
 0x4cd   :  { %v2142_v48 = vmul.f32 %v5528_v28, %v2141_v3  ;;  %v8806_v3 = vld [vmem:[#allocation39_spill] sm:$0xff]  ;;  %v2223_v28 = vadd.f32 %v7362_v4, %v6719_v18 }
 0x4cf   :  { %v7365_v20 = vadd.f32 %v2143_v0, %v2142_v48 }
 0x4d1   :  { %v2412_v22 = vpack.c.bf16 %v7365_v20, %v7365_v20 }
 0x4d3   :  { %2446 = vmatmul.mubr.bf16.vlgmr.msra.gmra.mrb[32].mxu0 %v2412_v22  ;;  %4849 = vmatmul.mubr.bf16.vlgmr.msra.gmra.mrb[68].mxu1 %v2412_v22  ;;  %v8807_v22 = vld [vmem:[#allocation40_spill] sm:$0xff] }
 0x4d4   :  { %2516 = vmatpush1.bf16.msra.mxu0 %v6928_v62  ;;  %4853 = vmatpush3.bf16.msra.mxu1 %v6931_v27  ;;  %v8787_v62 = vld [vmem:[#allocation23_spill] sm:$0xff] }
 0x4d5   :  { %2517 = vmatprep.subr.bf16.mxu0 %v6934_v54  ;;  %4854 = vmatprep.subr.bf16.mxu1 %v8675_v7 }
 0x4d6   :  { %2547 = vmatprep.mubr.bf16.mxu0 %v8581_v1  ;;  %4868 = vmatprep.mubr.msk.bf16.mxu1 %vm6018_vm0, %v8675_v7 }
 0x4d8   :  { %2518 = vmatpush1.bf16.msra.mxu0 %v6941_v24  ;;  %4855 = vmatpush3.bf16.msra.mxu1 %v7132_v51 }
 0x4d9   :  { %2519 = vmatprep.subr.bf16.mxu0 %v6945_v44  ;;  %4856 = vmatprep.subr.bf16.mxu1 %v8675_v7 }
 0x4dc   :  { %2520 = vmatpush1.bf16.msra.mxu0 %v6949_v41  ;;  %4857 = vmatpush3.bf16.msra.mxu1 %v7138_v42 }
 0x4dd   :  { %2521 = vmatprep.subr.bf16.mxu0 %v8730_v43  ;;  %4858 = vmatprep.subr.bf16.mxu1 %v8675_v7 }
 0x4e0   :  { %2522 = vmatpush1.bf16.msra.mxu0 %v8731_v23  ;;  %4859 = vmatpush3.bf16.msra.mxu1 %v8787_v62 }
 0x4e1   :  { %v2263_v27 = vpop.f32.mrb[28].mxu0  ;;  %v2304_v54 = vpop.f32.mrb[60].mxu1  ;;  %2523 = vmatprep.subr.bf16.mxu0 %v8733_v6  ;;  %4860 = vmatprep.subr.bf16.mxu1 %v8675_v7  ;;  %v8788_v6 = vld [vmem:[#allocation29_spill] sm:$0xff] }
 0x4e2   :  { %v5201_v24 = vadd.f32 %v6677_v16, %v2263_v27  ;;  %v2265_v44 = vpop.f32.mrb[29].mxu0  ;;  %v4810_v41 = vpop.f32.mrb[61].mxu1  ;;  %v2305_v9 = vadd.f32 %v2304_v54, %v8803_v36  ;;  %v8808_v27 = vld [vmem:[#allocation47_spill] sm:$0xff]  ;;  %v8809_v54 = vld [vmem:[#allocation42_spill] sm:$0xff] }
 0x4e3   :  { %v2267_v14 = vpop.f32.mrb[30].mxu0  ;;  %v2307_v45 = vpop.f32.mrb[62].mxu1  ;;  %v5203_v23 = vadd.f32 %v6681_v21, %v2265_v44 }
 0x4e4   :  { %v4151_v29 = vmul.f32 -1.442695, %v5201_v24  ;;  %v2268_v43 = vpop.f32.mrb[31].mxu0  ;;  %v4811_v32 = vpop.f32.mrb[63].mxu1  ;;  %2524 = vmatpush1.bf16.msra.mxu0 %v6966_v40  ;;  %4861 = vmatpush3.bf16.msra.mxu1 %v7153_v8  ;;  %v8791_v40 = vld [vmem:[#allocation32_spill] sm:$0xff]  ;;  %v8810_v14 = vld [vmem:[#allocation43_spill] sm:$0xff] }
 0x4e5   :  { %2525 = vmatprep.subr.bf16.mxu0 %v6971_v11  ;;  %4862 = vmatprep.subr.bf16.mxu1 %v8675_v7  ;;  %v4152_v38 = vmul.f32 -1.442695, %v5203_v23  ;;  %v8811_v45 = vld [vmem:[#allocation50_spill] sm:$0xff]  ;;  %v8813_v32 = vld [vmem:[#allocation69_spill] sm:$0xff] }
 0x4e6   :  { %5529 = vpow2.f32 %v4151_v29  ;;  %v8812_v29 = vld [vmem:[#allocation68_spill] sm:$0xff]  ;;  %v8814_v23 = vld [vmem:[#allocation70_spill] sm:$0xff] }
 0x4e7   :  { %5531 = vpow2.f32 %v4152_v38  ;;  %v8815_v38 = vld [vmem:[#allocation71_spill] sm:$0xff] }
 0x4e8   :  { %2526 = vmatpush1.bf16.msra.mxu0 %v7159_v58  ;;  %4863 = vmatpush3.bf16.msra.mxu1 %v8788_v6 }
 0x4e9   :  { %2527 = vmatprep.subr.bf16.mxu0 %v8789_v52  ;;  %4864 = vmatprep.subr.bf16.mxu1 %v8675_v7 }
 0x4ec   :  { %2528 = vmatpush1.bf16.msra.mxu0 %v8790_v57  ;;  %4865 = vmatpush3.bf16.msra.mxu1 %v8791_v40 }
 0x4ed   :  { %2529 = vmatprep.subr.bf16.mxu0 %v8792_v63  ;;  %4866 = vmatprep.subr.bf16.mxu1 %v8675_v7 }
 0x4f0   :  { %v5530_v11 = vpop.eup %5529  ;;  %2530 = vmatpush1.bf16.msra.mxu0 %v8793_v46  ;;  %4867 = vmatpush3.bf16.msra.mxu1 %v8794_v33 }
 0x4f1   :  { %v2314_v53 = vadd.f32 1.0, %v5530_v11  ;;  %2597 = vmatprep.subr.bf16.mxu0 %v8795_v59  ;;  %4872 = vmatprep.subr.bf16.mxu1 %v8675_v7  ;;  %v5532_v34 = vpop.eup %5531 }
 0x4f2   :  { %v2321_v31 = vadd.f32 1.0, %v5532_v34  ;;  %v8817_v34 = vld [vmem:[#allocation73_spill] sm:$0xff] }
 0x4f3   :  { %5533 = vrcp.f32 %v2314_v53  ;;  %2548 = vmatmul.mubr.bf16.vlgmr.msra.gmra.mrb[36].mxu0 %v8796_v15  ;;  %4869 = vmatmul.mubr.bf16.vlgmr.msra.gmra.mrb[72].mxu1 %v8796_v15  ;;  %v8816_v15 = vld [vmem:[#allocation72_spill] sm:$0xff] }
 0x4f4   :  { %2598 = vmatpush1.bf16.msra.mxu0 %v8797_v26  ;;  %4873 = vmatpush3.bf16.msra.mxu1 %v8798_v60  ;;  %5535 = vrcp.f32 %v2321_v31 }
 0x4f5   :  { %2599 = vmatprep.subr.bf16.mxu0 %v8799_v56  ;;  %4874 = vmatprep.subr.bf16.mxu1 %v8675_v7 }
 0x4f6   :  { %2629 = vmatprep.mubr.bf16.mxu0 %v8581_v1  ;;  %4888 = vmatprep.mubr.msk.bf16.mxu1 %vm6018_vm0, %v8675_v7 }
 0x4f8   :  { %2600 = vmatpush1.bf16.msra.mxu0 %v8800_v25  ;;  %4875 = vmatpush3.bf16.msra.mxu1 %v8801_v50 }
 0x4f9   :  { %2601 = vmatprep.subr.bf16.mxu0 %v8802_v30  ;;  %4876 = vmatprep.subr.bf16.mxu1 %v8675_v7 }
 0x4fc   :  { %2602 = vmatpush1.bf16.msra.mxu0 %v8804_v12  ;;  %4877 = vmatpush3.bf16.msra.mxu1 %v8805_v61 }
 0x4fd   :  { %v5534_v5 = vpop.eup %5533  ;;  %2603 = vmatprep.subr.bf16.mxu0 %v8806_v3  ;;  %4878 = vmatprep.subr.bf16.mxu1 %v8675_v7 }
 0x4fe   :  { %v2324_v48 = vmul.f32 %v5534_v5, %v2305_v9  ;;  %v5536_v43 = vpop.eup %5535 }
 0x4ff   :  { %v2327_v11 = vsub.f32 1.0, %v5536_v43  ;;  %v2329_v9 = vmul.f32 %v5536_v43, %v7273_v2  ;;  %v7458_v2 = vld [vmem:[#allocation5 + $0x8] ss:$12 sps:$4 sm:$0xff]  }
 0x500   :  { %v2325_v0 = vadd.f32 %v2324_v48, %v2223_v28  ;;  %2604 = vmatpush1.bf16.msra.mxu0 %v8807_v22  ;;  %4879 = vmatpush3.bf16.msra.mxu1 %v8808_v27  ;;  %v7451_v48 = vld [vmem:[#allocation5 + $0x4] ss:$12 sps:$4 sm:$0xff]   ;;  %8820 = vst [vmem:[#allocation48_spill] sm:$0xff] %v7458_v2  ;;  %v7474_v43 = vld [vmem:[#allocation5 + $0x34] ss:$12 sps:$4 sm:$0xff]  }
 0x501   :  { %2605 = vmatprep.subr.bf16.mxu0 %v8809_v54  ;;  %4880 = vmatprep.subr.bf16.mxu1 %v8675_v7  ;;  %v7430_v24 = vpop.f32.mrb[64].mxu1  ;;  %8818 = vst [vmem:[#allocation45_spill] sm:$0xff] %v7451_v48  ;;  %8824 = vst [vmem:[#allocation53_spill] sm:$0xff] %v7474_v43 }
 0x502   :  { %5537 = vtanh.f32 %v2325_v0  ;;  %v4830_v44 = vpop.f32.mrb[65].mxu1  ;;  %v7455_v0 = vld [vmem:[#allocation5] ss:$12 sps:$4 sm:$0xff]  }
 0x503   :  { %v2409_v41 = vpop.f32.mrb[66].mxu1  ;;  %8819 = vst [vmem:[#allocation46_spill] sm:$0xff] %v7455_v0  ;;  %v7461_v44 = vld [vmem:[#allocation5 + $0x1c] ss:$12 sps:$4 sm:$0xff]  }
 0x504   :  { %2606 = vmatpush1.bf16.msra.mxu0 %v8810_v14  ;;  %4881 = vmatpush3.bf16.msra.mxu1 %v8811_v45  ;;  %v4831_v4 = vpop.f32.mrb[67].mxu1  ;;  %8821 = vst [vmem:[#allocation49_spill] sm:$0xff] %v7461_v44  ;;  %v7468_v41 = vld [vmem:[#allocation5 + $0x18] ss:$12 sps:$4 sm:$0xff]  }
 0x505   :  { %2607 = vmatprep.subr.bf16.mxu0 %v8812_v29  ;;  %4882 = vmatprep.subr.bf16.mxu1 %v8675_v7  ;;  %8822 = vst [vmem:[#allocation51_spill] sm:$0xff] %v7468_v41  ;;  %v7471_v4 = vld [vmem:[#allocation5 + $0x20] ss:$12 sps:$4 sm:$0xff]  }
 0x506   :  { %8823 = vst [vmem:[#allocation52_spill] sm:$0xff] %v7471_v4 }
 0x508   :  { %2608 = vmatpush1.bf16.msra.mxu0 %v8813_v32  ;;  %4883 = vmatpush3.bf16.msra.mxu1 %v8814_v23 }
 0x509   :  { %2609 = vmatprep.subr.bf16.mxu0 %v8815_v38  ;;  %4884 = vmatprep.subr.bf16.mxu1 %v8675_v7 }
 0x50c   :  { %v5538_v53 = vpop.eup %5537  ;;  %2610 = vmatpush1.bf16.msra.mxu0 %v8816_v15  ;;  %4885 = vmatpush3.bf16.msra.mxu1 %v8817_v34 }
 0x50d   :  { %2611 = vmatprep.subr.bf16.mxu0 %v7268_v55  ;;  %4886 = vmatprep.subr.bf16.mxu1 %v8675_v7  ;;  %v2328_v31 = vmul.f32 %v5538_v53, %v2327_v11  ;;  %v7478_v11 = vld [vmem:[#allocation5 + $0x30] ss:$12 sps:$4 sm:$0xff]   ;;  %v7481_v53 = vld [vmem:[#allocation5 + $0x38] ss:$12 sps:$4 sm:$0xff]  }
 0x50e   :  { %8825 = vst [vmem:[#allocation55_spill] sm:$0xff] %v7478_v11  ;;  %8826 = vst [vmem:[#allocation56_spill] sm:$0xff] %v7481_v53 }
 0x50f   :  { %v7445_v5 = vadd.f32 %v2329_v9, %v2328_v31  ;;  %v7484_v31 = vld [vmem:[#allocation5 + $0x4c] ss:$12 sps:$4 sm:$0xff]   ;;  %v7488_v9 = vld [vmem:[#allocation5 + $0x48] ss:$12 sps:$4 sm:$0xff]  }
 0x510   :  { %2612 = vmatpush1.bf16.msra.mxu0 %v7275_v49  ;;  %4887 = vmatpush3.bf16.msra.mxu1 %v7278_v10  ;;  %8827 = vst [vmem:[#allocation57_spill] sm:$0xff] %v7484_v31  ;;  %8828 = vst [vmem:[#allocation58_spill] sm:$0xff] %v7488_v9 }
 0x511   :  { %v2596_v28 = vpack.c.bf16 %v7445_v5, %v7445_v5  ;;  %2699 = vmatprep.subr.bf16.mxu0 %v7451_v48  ;;  %4892 = vmatprep.subr.bf16.mxu1 %v8675_v7 }
 0x513   :  { %2630 = vmatmul.mubr.bf16.vlgmr.msra.gmra.mrb[36].mxu0 %v2596_v28  ;;  %4889 = vmatmul.mubr.bf16.vlgmr.msra.gmra.mrb[76].mxu1 %v2596_v28  ;;  %v7491_v28 = vld [vmem:[#allocation5 + $0x50] ss:$12 sps:$4 sm:$0xff]  }
 0x514   :  { %2700 = vmatpush1.bf16.msra.mxu0 %v7455_v0  ;;  %4893 = vmatpush3.bf16.msra.mxu1 %v7458_v2  ;;  %8829 = vst [vmem:[#allocation59_spill] sm:$0xff] %v7491_v28 }
 0x515   :  { %2701 = vmatprep.subr.bf16.mxu0 %v7461_v44  ;;  %4894 = vmatprep.subr.bf16.mxu1 %v8675_v7 }
 0x516   :  { %2731 = vmatprep.mubr.bf16.mxu0 %v8581_v1  ;;  %4908 = vmatprep.mubr.msk.bf16.mxu1 %vm6018_vm0, %v8675_v7 }
 0x518   :  { %2702 = vmatpush1.bf16.msra.mxu0 %v7468_v41  ;;  %4895 = vmatpush3.bf16.msra.mxu1 %v7471_v4 }
 0x519   :  { %2703 = vmatprep.subr.bf16.mxu0 %v7474_v43  ;;  %4896 = vmatprep.subr.bf16.mxu1 %v8675_v7  ;;  %v7494_v43 = vld [vmem:[#allocation5 + $0x64] ss:$12 sps:$4 sm:$0xff]  }
 0x51a   :  { %8830 = vst [vmem:[#allocation60_spill] sm:$0xff] %v7494_v43 }
 0x51c   :  { %2704 = vmatpush1.bf16.msra.mxu0 %v7478_v11  ;;  %4897 = vmatpush3.bf16.msra.mxu1 %v7481_v53  ;;  %v7498_v53 = vld [vmem:[#allocation5 + $0x60] ss:$12 sps:$4 sm:$0xff]   ;;  %v7504_v11 = vld [vmem:[#allocation5 + $0x7c] ss:$12 sps:$4 sm:$0xff]  }
 0x51d   :  { %2705 = vmatprep.subr.bf16.mxu0 %v7484_v31  ;;  %4898 = vmatprep.subr.bf16.mxu1 %v8675_v7  ;;  %8831 = vst [vmem:[#allocation61_spill] sm:$0xff] %v7498_v53  ;;  %v7501_v31 = vld [vmem:[#allocation5 + $0x68] ss:$12 sps:$4 sm:$0xff]   ;;  %8833 = vst [vmem:[#allocation21_spill] sm:$0xff] %v7504_v11 }
 0x51e   :  { %8832 = vst [vmem:[#allocation62_spill] sm:$0xff] %v7501_v31 }
 0x520   :  { %2706 = vmatpush1.bf16.msra.mxu0 %v7488_v9  ;;  %4899 = vmatpush3.bf16.msra.mxu1 %v7491_v28  ;;  %v7508_v28 = vld [vmem:[#allocation5 + $0x78] ss:$12 sps:$4 sm:$0xff]   ;;  %v7514_v9 = vld [vmem:[#allocation5 + $0x94] ss:$12 sps:$4 sm:$0xff]  }
 0x521   :  { %2707 = vmatprep.subr.bf16.mxu0 %v7494_v43  ;;  %4900 = vmatprep.subr.bf16.mxu1 %v8675_v7  ;;  %8834 = vst [vmem:[#allocation63_spill] sm:$0xff] %v7508_v28  ;;  %v7511_v43 = vld [vmem:[#allocation5 + $0x80] ss:$12 sps:$4 sm:$0xff]   ;;  %8836 = vst [vmem:[#allocation26_spill] sm:$0xff] %v7514_v9 }
 0x522   :  { %8835 = vst [vmem:[#allocation64_spill] sm:$0xff] %v7511_v43 }
 0x524   :  { %2708 = vmatpush1.bf16.msra.mxu0 %v7498_v53  ;;  %4901 = vmatpush3.bf16.msra.mxu1 %v7501_v31  ;;  %v7518_v31 = vld [vmem:[#allocation5 + $0x90] ss:$12 sps:$4 sm:$0xff]   ;;  %v7524_v53 = vld [vmem:[#allocation5 + $0xac] ss:$12 sps:$4 sm:$0xff]  }
 0x525   :  { %2709 = vmatprep.subr.bf16.mxu0 %v7504_v11  ;;  %4902 = vmatprep.subr.bf16.mxu1 %v8675_v7  ;;  %8837 = vst [vmem:[#allocation65_spill] sm:$0xff] %v7518_v31  ;;  %v7521_v11 = vld [vmem:[#allocation5 + $0x98] ss:$12 sps:$4 sm:$0xff]   ;;  %8839 = vst [vmem:[#allocation22_spill] sm:$0xff] %v7524_v53 }
 0x526   :  { %8838 = vst [vmem:[#allocation66_spill] sm:$0xff] %v7521_v11 }
 0x528   :  { %2710 = vmatpush1.bf16.msra.mxu0 %v7508_v28  ;;  %4903 = vmatpush3.bf16.msra.mxu1 %v7511_v43  ;;  %v7528_v43 = vld [vmem:[#allocation5 + $0xa8] ss:$12 sps:$4 sm:$0xff]   ;;  %v7534_v28 = vld [vmem:[#allocation7 + $0x4] ss:$12 sps:$4 sm:$0xff]  }
 0x529   :  { %2711 = vmatprep.subr.bf16.mxu0 %v7514_v9  ;;  %4904 = vmatprep.subr.bf16.mxu1 %v8675_v7  ;;  %8840 = vst [vmem:[#allocation67_spill] sm:$0xff] %v7528_v43  ;;  %v7531_v9 = vld [vmem:[#allocation5 + $0xb0] ss:$12 sps:$4 sm:$0xff]   ;;  %8842 = vst [vmem:[#allocation29_spill] sm:$0xff] %v7534_v28 }
 0x52a   :  { %8841 = vst [vmem:[#allocation23_spill] sm:$0xff] %v7531_v9 }
 0x52c   :  { %2712 = vmatpush1.bf16.msra.mxu0 %v7518_v31  ;;  %4905 = vmatpush3.bf16.msra.mxu1 %v7521_v11  ;;  %v5742_v11 = vld [vmem:[#allocation2 + $0x14] sm:$0xf] }
 0x52d   :  { %2713 = vmatprep.subr.bf16.mxu0 %v7524_v53  ;;  %4906 = vmatprep.subr.bf16.mxu1 %v8675_v7  ;;  %v7538_v53 = vld [vmem:[#allocation7] ss:$12 sps:$4 sm:$0xff]   ;;  %v7541_v31 = vld [vmem:[#allocation7 + $0x8] ss:$12 sps:$4 sm:$0xff]  }
 0x52e   :  { %8843 = vst [vmem:[#allocation24_spill] sm:$0xff] %v7538_v53  ;;  %8844 = vst [vmem:[#allocation25_spill] sm:$0xff] %v7541_v31 }
 0x530   :  { %2714 = vmatpush1.bf16.msra.mxu0 %v7528_v43  ;;  %4907 = vmatpush3.bf16.msra.mxu1 %v7531_v9  ;;  %v7544_v43 = vld [vmem:[#allocation7 + $0x1c] ss:$12 sps:$4 sm:$0xff]   ;;  %v7567_v9 = vld [vmem:[#allocation7 + $0x4c] ss:$12 sps:$4 sm:$0xff]  }
 0x531   :  { %2781 = vmatprep.subr.bf16.mxu0 %v7534_v28  ;;  %4912 = vmatprep.subr.bf16.mxu1 %v8675_v7  ;;  %8845 = vst [vmem:[#allocation32_spill] sm:$0xff] %v7544_v43  ;;  %v7564_v28 = vld [vmem:[#allocation7 + $0x38] ss:$12 sps:$4 sm:$0xff]   ;;  %8851 = vst [vmem:[#allocation31_spill] sm:$0xff] %v7567_v9 }
 0x532   :  { %8850 = vst [vmem:[#allocation54_spill] sm:$0xff] %v7564_v28 }
 0x533   :  { %2732 = vmatmul.mubr.bf16.vlgmr.msra.gmra.mrb[40].mxu0 %v5742_v11  ;;  %4909 = vmatmul.mubr.bf16.vlgmr.msra.gmra.mrb[80].mxu1 %v5742_v11  ;;  %v7551_v11 = vld [vmem:[#allocation7 + $0x18] ss:$12 sps:$4 sm:$0xff]  }
 0x534   :  { %2782 = vmatpush1.bf16.msra.mxu0 %v7538_v53  ;;  %4913 = vmatpush3.bf16.msra.mxu1 %v7541_v31  ;;  %8846 = vst [vmem:[#allocation27_spill] sm:$0xff] %v7551_v11  ;;  %v7554_v53 = vld [vmem:[#allocation7 + $0x20] ss:$12 sps:$4 sm:$0xff]  }
 0x535   :  { %2783 = vmatprep.subr.bf16.mxu0 %v7544_v43  ;;  %4914 = vmatprep.subr.bf16.mxu1 %v8675_v7  ;;  %8847 = vst [vmem:[#allocation28_spill] sm:$0xff] %v7554_v53  ;;  %v7557_v31 = vld [vmem:[#allocation7 + $0x34] ss:$12 sps:$4 sm:$0xff]   ;;  %v7561_v43 = vld [vmem:[#allocation7 + $0x30] ss:$12 sps:$4 sm:$0xff]  }
 0x536   :  { %2813 = vmatprep.mubr.bf16.mxu0 %v8581_v1  ;;  %4928 = vmatprep.mubr.msk.bf16.mxu1 %vm6018_vm0, %v8675_v7  ;;  %8848 = vst [vmem:[#allocation35_spill] sm:$0xff] %v7557_v31  ;;  %8849 = vst [vmem:[#allocation30_spill] sm:$0xff] %v7561_v43 }
 0x538   :  { %2784 = vmatpush1.bf16.msra.mxu0 %v7551_v11  ;;  %4915 = vmatpush3.bf16.msra.mxu1 %v7554_v53  ;;  %v7571_v53 = vld [vmem:[#allocation7 + $0x48] ss:$12 sps:$4 sm:$0xff]   ;;  %v7577_v11 = vld [vmem:[#allocation7 + $0x64] ss:$12 sps:$4 sm:$0xff]  }
 0x539   :  { %2785 = vmatprep.subr.bf16.mxu0 %v7557_v31  ;;  %4916 = vmatprep.subr.bf16.mxu1 %v8675_v7  ;;  %8852 = vst [vmem:[#allocation38_spill] sm:$0xff] %v7571_v53  ;;  %v7574_v31 = vld [vmem:[#allocation7 + $0x50] ss:$12 sps:$4 sm:$0xff]   ;;  %8854 = vst [vmem:[#allocation34_spill] sm:$0xff] %v7577_v11 }
 0x53a   :  { %8853 = vst [vmem:[#allocation33_spill] sm:$0xff] %v7574_v31 }
 0x53c   :  { %2786 = vmatpush1.bf16.msra.mxu0 %v7561_v43  ;;  %4917 = vmatpush3.bf16.msra.mxu1 %v7564_v28  ;;  %v7581_v28 = vld [vmem:[#allocation7 + $0x60] ss:$12 sps:$4 sm:$0xff]   ;;  %v7587_v43 = vld [vmem:[#allocation7 + $0x7c] ss:$12 sps:$4 sm:$0xff]  }
 0x53d   :  { %2787 = vmatprep.subr.bf16.mxu0 %v7567_v9  ;;  %4918 = vmatprep.subr.bf16.mxu1 %v8675_v7  ;;  %8855 = vst [vmem:[#allocation41_spill] sm:$0xff] %v7581_v28  ;;  %v7584_v9 = vld [vmem:[#allocation7 + $0x68] ss:$12 sps:$4 sm:$0xff]   ;;  %8857 = vst [vmem:[#allocation37_spill] sm:$0xff] %v7587_v43 }
 0x53e   :  { %8856 = vst [vmem:[#allocation36_spill] sm:$0xff] %v7584_v9 }
 0x540   :  { %2788 = vmatpush1.bf16.msra.mxu0 %v7571_v53  ;;  %4919 = vmatpush3.bf16.msra.mxu1 %v7574_v31  ;;  %v7591_v31 = vld [vmem:[#allocation7 + $0x78] ss:$12 sps:$4 sm:$0xff]  }
 0x541   :  { %2789 = vmatprep.subr.bf16.mxu0 %v7577_v11  ;;  %4920 = vmatprep.subr.bf16.mxu1 %v8675_v7  ;;  %8858 = vst [vmem:[#allocation44_spill] sm:$0xff] %v7591_v31  ;;  %v7595_v11 = vld [vmem:[#allocation7 + $0x94] ss:$12 sps:$4 sm:$0xff]  }
 0x542   :  { %8859 = vst [vmem:[#allocation39_spill] sm:$0xff] %v7595_v11 }
 0x544   :  { %2790 = vmatpush1.bf16.msra.mxu0 %v7581_v28  ;;  %4921 = vmatpush3.bf16.msra.mxu1 %v7584_v9  ;;  %v7599_v28 = vld [vmem:[#allocation7 + $0x90] ss:$12 sps:$4 sm:$0xff]  }
 0x545   :  { %2791 = vmatprep.subr.bf16.mxu0 %v7587_v43  ;;  %4922 = vmatprep.subr.bf16.mxu1 %v8675_v7  ;;  %8860 = vst [vmem:[#allocation40_spill] sm:$0xff] %v7599_v28  ;;  %v7603_v43 = vld [vmem:[#allocation7 + $0xac] ss:$12 sps:$4 sm:$0xff]  }
 0x546   :  { %8861 = vst [vmem:[#allocation47_spill] sm:$0xff] %v7603_v43 }
 0x548   :  { %2792 = vmatpush1.bf16.msra.mxu0 %v7591_v31  ;;  %4923 = vmatpush3.bf16.msra.mxu1 %v8779_v13  ;;  %v7607_v31 = vld [vmem:[#allocation7 + $0xa8] ss:$12 sps:$4 sm:$0xff]   ;;  %v7611_v13 = vld [vmem:[#allocation8 + $0x4] ss:$12 sps:$4 sm:$0xff]  }
 0x549   :  { %2793 = vmatprep.subr.bf16.mxu0 %v7595_v11  ;;  %4924 = vmatprep.subr.bf16.mxu1 %v8675_v7  ;;  %8862 = vst [vmem:[#allocation42_spill] sm:$0xff] %v7607_v31  ;;  %8863 = vst [vmem:[#allocation43_spill] sm:$0xff] %v7611_v13 }
 0x54c   :  { %2794 = vmatpush1.bf16.msra.mxu0 %v7599_v28  ;;  %4925 = vmatpush3.bf16.msra.mxu1 %v8782_v47 }
 0x54d   :  { %2795 = vmatprep.subr.bf16.mxu0 %v7603_v43  ;;  %4926 = vmatprep.subr.bf16.mxu1 %v8675_v7 }
 0x550   :  { %2796 = vmatpush1.bf16.msra.mxu0 %v7607_v31  ;;  %4927 = vmatpush3.bf16.msra.mxu1 %v8785_v39 }
 0x551   :  { %2883 = vmatprep.subr.bf16.mxu0 %v7611_v13  ;;  %4932 = vmatprep.subr.bf16.mxu1 %v8675_v7 }
 0x5a6   :  { %v2447_v28 = vpop.f32.mrb[32].mxu0  ;;  %v2488_v47 = vpop.f32.mrb[68].mxu1 }
 0x5a7   :  { %v5205_v11 = vadd.f32 %v6626_v17, %v2447_v28  ;;  %v2449_v9 = vpop.f32.mrb[33].mxu0  ;;  %v4850_v43 = vpop.f32.mrb[69].mxu1  ;;  %v2489_v49 = vadd.f32 %v2488_v47, %v6635_v35 }
 0x5a8   :  { %v2451_v53 = vpop.f32.mrb[34].mxu0  ;;  %v2491_v4 = vpop.f32.mrb[70].mxu1  ;;  %v5207_v31 = vadd.f32 %v6628_v19, %v2449_v9  ;;  %v2407_v43 = vadd.f32 %v7430_v24, %v6638_v37 }
 0x5a9   :  { %v4153_v41 = vmul.f32 -1.442695, %v5205_v11  ;;  %v2452_v44 = vpop.f32.mrb[35].mxu0  ;;  %v4851_v2 = vpop.f32.mrb[71].mxu1 }
 0x5aa   :  { %v4154_v39 = vmul.f32 -1.442695, %v5207_v31 }
 0x5ab   :  { %5539 = vpow2.f32 %v4153_v41 }
 0x5ac   :  { %5541 = vpow2.f32 %v4154_v39  ;;  %v7633_v39 = vld [vmem:[#allocation8 + $0x1c] ss:$12 sps:$4 sm:$0xff]  }
 0x5b5   :  { %v5540_v0 = vpop.eup %5539 }
 0x5b6   :  { %v2498_v13 = vadd.f32 1.0, %v5540_v0  ;;  %v5542_v48 = vpop.eup %5541 }
 0x5b7   :  { %v2505_v10 = vadd.f32 1.0, %v5542_v48 }
 0x5b8   :  { %5543 = vrcp.f32 %v2498_v13 }
 0x5b9   :  { %5545 = vrcp.f32 %v2505_v10  ;;  %v7627_v10 = vld [vmem:[#allocation8] ss:$12 sps:$4 sm:$0xff]  }
 0x5c2   :  { %v5544_v28 = vpop.eup %5543 }
 0x5c3   :  { %v2508_v4 = vmul.f32 %v5544_v28, %v2489_v49  ;;  %v5546_v9 = vpop.eup %5545  ;;  %v7630_v49 = vld [vmem:[#allocation8 + $0x8] ss:$12 sps:$4 sm:$0xff]  }
 0x5c4   :  { %v2511_v0 = vsub.f32 1.0, %v5546_v9  ;;  %v2513_v48 = vmul.f32 %v5546_v9, %v7365_v20  ;;  %v7640_v20 = vld [vmem:[#allocation8 + $0x18] ss:$12 sps:$4 sm:$0xff]   ;;  %v7644_v28 = vld [vmem:[#allocation8 + $0x34] ss:$12 sps:$4 sm:$0xff]  }
 0x5c5   :  { %v2509_v44 = vadd.f32 %v2508_v4, %v2407_v43  ;;  %v7648_v43 = vld [vmem:[#allocation8 + $0x30] ss:$12 sps:$4 sm:$0xff]   ;;  %v7652_v4 = vld [vmem:[#allocation8 + $0x4c] ss:$12 sps:$4 sm:$0xff]  }
 0x5c6   :  { %v7620_v2 = vpop.f32.mrb[72].mxu1 }
 0x5c7   :  { %5547 = vtanh.f32 %v2509_v44  ;;  %v4870_v41 = vpop.f32.mrb[73].mxu1  ;;  %v7656_v44 = vld [vmem:[#allocation8 + $0x48] ss:$12 sps:$4 sm:$0xff]  }
 0x5c8   :  { %v2593_v53 = vpop.f32.mrb[74].mxu1  ;;  %8864 = vst [vmem:[#allocation50_spill] sm:$0xff] %v7656_v44 }
 0x5c9   :  { %v4871_v31 = vpop.f32.mrb[75].mxu1  ;;  %v7660_v53 = vld [vmem:[#allocation8 + $0x64] ss:$12 sps:$4 sm:$0xff]  }
 0x5ca   :  { %8865 = vst [vmem:[#allocation68_spill] sm:$0xff] %v7660_v53 }
 0x5d1   :  { %v5548_v11 = vpop.eup %5547 }
 0x5d2   :  { %v2512_v13 = vmul.f32 %v5548_v11, %v2511_v0 }
 0x5d4   :  { %v7623_v47 = vadd.f32 %v2513_v48, %v2512_v13 }
 0x5d6   :  { %v2780_v24 = vpack.c.bf16 %v7623_v47, %v7623_v47 }
 0x5d8   :  { %2814 = vmatmul.mubr.bf16.vlgmr.msra.gmra.mrb[40].mxu0 %v2780_v24  ;;  %4929 = vmatmul.mubr.bf16.vlgmr.msra.gmra.mrb[84].mxu1 %v2780_v24 }
 0x5d9   :  { %2884 = vmatpush1.bf16.msra.mxu0 %v7627_v10  ;;  %4933 = vmatpush3.bf16.msra.mxu1 %v7630_v49 }
 0x5da   :  { %2885 = vmatprep.subr.bf16.mxu0 %v7633_v39  ;;  %4934 = vmatprep.subr.bf16.mxu1 %v8675_v7 }
 0x5db   :  { %2915 = vmatprep.mubr.bf16.mxu0 %v8581_v1  ;;  %4948 = vmatprep.mubr.msk.bf16.mxu1 %vm6018_vm0, %v8675_v7 }
 0x5dd   :  { %2886 = vmatpush1.bf16.msra.mxu0 %v7640_v20  ;;  %4935 = vmatpush3.bf16.msra.mxu1 %v7132_v51 }
 0x5de   :  { %2887 = vmatprep.subr.bf16.mxu0 %v7644_v28  ;;  %4936 = vmatprep.subr.bf16.mxu1 %v8675_v7 }
 0x5e1   :  { %2888 = vmatpush1.bf16.msra.mxu0 %v7648_v43  ;;  %4937 = vmatpush3.bf16.msra.mxu1 %v7138_v42 }
 0x5e2   :  { %2889 = vmatprep.subr.bf16.mxu0 %v7652_v4  ;;  %4938 = vmatprep.subr.bf16.mxu1 %v8675_v7 }
 0x5e5   :  { %2890 = vmatpush1.bf16.msra.mxu0 %v7656_v44  ;;  %4939 = vmatpush3.bf16.msra.mxu1 %v8787_v62  ;;  %v7665_v44 = vld [vmem:[#allocation8 + $0x60] ss:$12 sps:$4 sm:$0xff]  }
 0x5e6   :  { %v2631_v51 = vpop.f32.mrb[36].mxu0  ;;  %v2672_v41 = vpop.f32.mrb[76].mxu1  ;;  %2891 = vmatprep.subr.bf16.mxu0 %v7660_v53  ;;  %4940 = vmatprep.subr.bf16.mxu1 %v8675_v7  ;;  %v7670_v53 = vld [vmem:[#allocation8 + $0x7c] ss:$12 sps:$4 sm:$0xff]  }
 0x5e7   :  { %v5209_v42 = vadd.f32 %v6677_v16, %v2631_v51  ;;  %v2633_v31 = vpop.f32.mrb[37].mxu0  ;;  %v4890_v9 = vpop.f32.mrb[77].mxu1 }
 0x5e8   :  { %v2635_v0 = vpop.f32.mrb[38].mxu0  ;;  %v2675_v11 = vpop.f32.mrb[78].mxu1  ;;  %v5211_v62 = vadd.f32 %v6681_v21, %v2633_v31  ;;  %v8880_v31 = vld [vmem:[#allocation60_spill] sm:$0xff]  ;;  %v8881_v9 = vld [vmem:[#allocation61_spill] sm:$0xff] }
 0x5e9   :  { %v4155_v13 = vmul.f32 -1.442695, %v5209_v42  ;;  %v2636_v48 = vpop.f32.mrb[39].mxu0  ;;  %v4891_v24 = vpop.f32.mrb[79].mxu1  ;;  %2892 = vmatpush1.bf16.msra.mxu0 %v7665_v44  ;;  %4941 = vmatpush3.bf16.msra.mxu1 %v7153_v8  ;;  %v8879_v42 = vld [vmem:[#allocation59_spill] sm:$0xff]  ;;  %v8882_v0 = vld [vmem:[#allocation62_spill] sm:$0xff] }
 0x5ea   :  { %2893 = vmatprep.subr.bf16.mxu0 %v7670_v53  ;;  %4942 = vmatprep.subr.bf16.mxu1 %v8675_v7  ;;  %v4156_v51 = vmul.f32 -1.442695, %v5211_v62  ;;  %v8883_v11 = vld [vmem:[#allocation21_spill] sm:$0xff]  ;;  %v8885_v48 = vld [vmem:[#allocation64_spill] sm:$0xff]  ;;  %v8886_v24 = vld [vmem:[#allocation26_spill] sm:$0xff] }
 0x5eb   :  { %5549 = vpow2.f32 %v4155_v13  ;;  %v8884_v13 = vld [vmem:[#allocation63_spill] sm:$0xff]  ;;  %v8887_v62 = vld [vmem:[#allocation65_spill] sm:$0xff] }
 0x5ec   :  { %5551 = vpow2.f32 %v4156_v51  ;;  %v8888_v51 = vld [vmem:[#allocation66_spill] sm:$0xff] }
 0x5ed   :  { %2894 = vmatpush1.bf16.msra.mxu0 %v7159_v58  ;;  %4943 = vmatpush3.bf16.msra.mxu1 %v8788_v6  ;;  %v5775_v6 = vld [vmem:[#allocation2 + $0x8] sm:$0xf] }
 0x5ee   :  { %2895 = vmatprep.subr.bf16.mxu0 %v8789_v52  ;;  %4944 = vmatprep.subr.bf16.mxu1 %v8675_v7 }
 0x5f1   :  { %2896 = vmatpush1.bf16.msra.mxu0 %v8790_v57  ;;  %4945 = vmatpush3.bf16.msra.mxu1 %v8791_v40  ;;  %v2673_v40 = vadd.f32 %v2672_v41, %v8803_v36  ;;  %v8878_v41 = vld [vmem:[#allocation58_spill] sm:$0xff] }
 0x5f2   :  { %2897 = vmatprep.subr.bf16.mxu0 %v8792_v63  ;;  %4946 = vmatprep.subr.bf16.mxu1 %v8675_v7 }
 0x5f5   :  { %v5550_v8 = vpop.eup %5549  ;;  %2898 = vmatpush1.bf16.msra.mxu0 %v8793_v46  ;;  %4947 = vmatpush3.bf16.msra.mxu1 %v8794_v33  ;;  %v2591_v46 = vadd.f32 %v7620_v2, %v6719_v18  ;;  %v8877_v2 = vld [vmem:[#allocation57_spill] sm:$0xff] }
 0x5f6   :  { %v2682_v58 = vadd.f32 1.0, %v5550_v8  ;;  %2965 = vmatprep.subr.bf16.mxu0 %v8795_v59  ;;  %4952 = vmatprep.subr.bf16.mxu1 %v8675_v7  ;;  %v5552_v52 = vpop.eup %5551  ;;  %v8889_v8 = vld [vmem:[#allocation22_spill] sm:$0xff] }
 0x5f7   :  { %v2689_v57 = vadd.f32 1.0, %v5552_v52  ;;  %v8892_v52 = vld [vmem:[#allocation29_spill] sm:$0xff] }
 0x5f8   :  { %5553 = vrcp.f32 %v2682_v58  ;;  %2916 = vmatmul.mubr.bf16.vlgmr.msra.gmra.mrb[44].mxu0 %v5775_v6  ;;  %4949 = vmatmul.mubr.bf16.vlgmr.msra.gmra.mrb[88].mxu1 %v5775_v6  ;;  %v8890_v58 = vld [vmem:[#allocation67_spill] sm:$0xff] }
 0x5f9   :  { %2966 = vmatpush1.bf16.msra.mxu0 %v8797_v26  ;;  %4953 = vmatpush3.bf16.msra.mxu1 %v8798_v60  ;;  %5555 = vrcp.f32 %v2689_v57  ;;  %v8891_v6 = vld [vmem:[#allocation23_spill] sm:$0xff]  ;;  %v5776_v57 = vld [vmem:[#allocation2 + $0x18] sm:$0xf] }
 0x5fa   :  { %2967 = vmatprep.subr.bf16.mxu0 %v8799_v56  ;;  %4954 = vmatprep.subr.bf16.mxu1 %v8675_v7 }
 0x5fb   :  { %2997 = vmatprep.mubr.bf16.mxu0 %v8581_v1  ;;  %4968 = vmatprep.mubr.msk.bf16.mxu1 %vm6018_vm0, %v8675_v7 }
 0x5fd   :  { %2968 = vmatpush1.bf16.msra.mxu0 %v8800_v25  ;;  %4955 = vmatpush3.bf16.msra.mxu1 %v8801_v50 }
 0x5fe   :  { %2969 = vmatprep.subr.bf16.mxu0 %v8802_v30  ;;  %4956 = vmatprep.subr.bf16.mxu1 %v8675_v7 }
 0x601   :  { %2970 = vmatpush1.bf16.msra.mxu0 %v8804_v12  ;;  %4957 = vmatpush3.bf16.msra.mxu1 %v8805_v61 }
 0x602   :  { %v5554_v63 = vpop.eup %5553  ;;  %2971 = vmatprep.subr.bf16.mxu0 %v8806_v3  ;;  %4958 = vmatprep.subr.bf16.mxu1 %v8675_v7 }
 0x603   :  { %v2692_v33 = vmul.f32 %v5554_v63, %v2673_v40  ;;  %v5556_v50 = vpop.eup %5555  ;;  %v8893_v40 = vld [vmem:[#allocation24_spill] sm:$0xff]  ;;  %v8894_v63 = vld [vmem:[#allocation25_spill] sm:$0xff] }
 0x604   :  { %v2695_v30 = vsub.f32 1.0, %v5556_v50  ;;  %v2697_v3 = vmul.f32 %v5556_v50, %v7445_v5  ;;  %v8876_v5 = vld [vmem:[#allocation56_spill] sm:$0xff]  ;;  %v8901_v50 = vld [vmem:[#allocation31_spill] sm:$0xff] }
 0x605   :  { %v2693_v59 = vadd.f32 %v2692_v33, %v2591_v46  ;;  %2972 = vmatpush1.bf16.msra.mxu0 %v8807_v22  ;;  %4959 = vmatpush3.bf16.msra.mxu1 %v8808_v27  ;;  %v8866_v27 = vld [vmem:[#allocation74_spill] sm:$0xff]  ;;  %v8895_v46 = vld [vmem:[#allocation32_spill] sm:$0xff]  ;;  %v8896_v33 = vld [vmem:[#allocation27_spill] sm:$0xff] }
 0x606   :  { %2973 = vmatprep.subr.bf16.mxu0 %v8809_v54  ;;  %4960 = vmatprep.subr.bf16.mxu1 %v8675_v7  ;;  %v7708_v26 = vpop.f32.mrb[80].mxu1  ;;  %v8867_v54 = vld [vmem:[#allocation75_spill] sm:$0xff] }
 0x607   :  { %5557 = vtanh.f32 %v2693_v59  ;;  %v4910_v60 = vpop.f32.mrb[81].mxu1  ;;  %v8897_v59 = vld [vmem:[#allocation28_spill] sm:$0xff] }
 0x608   :  { %v2777_v56 = vpop.f32.mrb[82].mxu1  ;;  %v8898_v60 = vld [vmem:[#allocation35_spill] sm:$0xff] }
 0x609   :  { %2974 = vmatpush1.bf16.msra.mxu0 %v8810_v14  ;;  %4961 = vmatpush3.bf16.msra.mxu1 %v8811_v45  ;;  %v4911_v25 = vpop.f32.mrb[83].mxu1  ;;  %v8868_v45 = vld [vmem:[#allocation45_spill] sm:$0xff]  ;;  %v8899_v56 = vld [vmem:[#allocation30_spill] sm:$0xff] }
 0x60a   :  { %2975 = vmatprep.subr.bf16.mxu0 %v8812_v29  ;;  %4962 = vmatprep.subr.bf16.mxu1 %v8675_v7  ;;  %v8870_v29 = vld [vmem:[#allocation48_spill] sm:$0xff]  ;;  %v8900_v25 = vld [vmem:[#allocation54_spill] sm:$0xff] }
 0x60d   :  { %2976 = vmatpush1.bf16.msra.mxu0 %v8813_v32  ;;  %4963 = vmatpush3.bf16.msra.mxu1 %v8814_v23  ;;  %v8871_v32 = vld [vmem:[#allocation49_spill] sm:$0xff]  ;;  %v8872_v23 = vld [vmem:[#allocation51_spill] sm:$0xff] }
 0x60e   :  { %2977 = vmatprep.subr.bf16.mxu0 %v8815_v38  ;;  %4964 = vmatprep.subr.bf16.mxu1 %v8675_v7  ;;  %v8873_v38 = vld [vmem:[#allocation52_spill] sm:$0xff] }
 0x611   :  { %v5558_v12 = vpop.eup %5557  ;;  %2978 = vmatpush1.bf16.msra.mxu0 %v8816_v15  ;;  %4965 = vmatpush3.bf16.msra.mxu1 %v8817_v34  ;;  %v8874_v15 = vld [vmem:[#allocation53_spill] sm:$0xff]  ;;  %v8875_v34 = vld [vmem:[#allocation55_spill] sm:$0xff] }
 0x612   :  { %2979 = vmatprep.subr.bf16.mxu0 %v7268_v55  ;;  %4966 = vmatprep.subr.bf16.mxu1 %v8675_v7  ;;  %v2696_v61 = vmul.f32 %v5558_v12, %v2695_v30  ;;  %v8869_v55 = vld [vmem:[#allocation46_spill] sm:$0xff]  ;;  %v8903_v12 = vld [vmem:[#allocation33_spill] sm:$0xff] }
 0x613   :  { %v8902_v30 = vld [vmem:[#allocation38_spill] sm:$0xff] }
 0x614   :  { %v7723_v22 = vadd.f32 %v2697_v3, %v2696_v61  ;;  %v8904_v61 = vld [vmem:[#allocation34_spill] sm:$0xff]  ;;  %v8905_v3 = vld [vmem:[#allocation41_spill] sm:$0xff] }
 0x615   :  { %2980 = vmatpush1.bf16.msra.mxu0 %v8866_v27  ;;  %4967 = vmatpush3.bf16.msra.mxu1 %v8867_v54  ;;  %v8906_v27 = vld [vmem:[#allocation36_spill] sm:$0xff]  ;;  %v8907_v54 = vld [vmem:[#allocation37_spill] sm:$0xff] }
 0x616   :  { %v2964_v14 = vpack.c.bf16 %v7723_v22, %v7723_v22  ;;  %3067 = vmatprep.subr.bf16.mxu0 %v8868_v45  ;;  %4972 = vmatprep.subr.bf16.mxu1 %v8675_v7 }
 0x618   :  { %2998 = vmatmul.mubr.bf16.vlgmr.msra.gmra.mrb[44].mxu0 %v2964_v14  ;;  %4969 = vmatmul.mubr.bf16.vlgmr.msra.gmra.mrb[92].mxu1 %v2964_v14  ;;  %v8908_v14 = vld [vmem:[#allocation44_spill] sm:$0xff] }
 0x619   :  { %3068 = vmatpush1.bf16.msra.mxu0 %v8869_v55  ;;  %4973 = vmatpush3.bf16.msra.mxu1 %v8870_v29 }
 0x61a   :  { %3069 = vmatprep.subr.bf16.mxu0 %v8871_v32  ;;  %4974 = vmatprep.subr.bf16.mxu1 %v8675_v7 }
 0x61b   :  { %3099 = vmatprep.mubr.bf16.mxu0 %v8581_v1  ;;  %4988 = vmatprep.mubr.msk.bf16.mxu1 %vm6018_vm0, %v8675_v7 }
 0x61d   :  { %3070 = vmatpush1.bf16.msra.mxu0 %v8872_v23  ;;  %4975 = vmatpush3.bf16.msra.mxu1 %v8873_v38 }
 0x61e   :  { %3071 = vmatprep.subr.bf16.mxu0 %v8874_v15  ;;  %4976 = vmatprep.subr.bf16.mxu1 %v8675_v7 }
 0x621   :  { %3072 = vmatpush1.bf16.msra.mxu0 %v8875_v34  ;;  %4977 = vmatpush3.bf16.msra.mxu1 %v8876_v5 }
 0x622   :  { %3073 = vmatprep.subr.bf16.mxu0 %v8877_v2  ;;  %4978 = vmatprep.subr.bf16.mxu1 %v8675_v7 }
 0x625   :  { %3074 = vmatpush1.bf16.msra.mxu0 %v8878_v41  ;;  %4979 = vmatpush3.bf16.msra.mxu1 %v8879_v42 }
 0x626   :  { %3075 = vmatprep.subr.bf16.mxu0 %v8880_v31  ;;  %4980 = vmatprep.subr.bf16.mxu1 %v8675_v7 }
 0x629   :  { %3076 = vmatpush1.bf16.msra.mxu0 %v8881_v9  ;;  %4981 = vmatpush3.bf16.msra.mxu1 %v8882_v0 }
 0x62a   :  { %3077 = vmatprep.subr.bf16.mxu0 %v8883_v11  ;;  %4982 = vmatprep.subr.bf16.mxu1 %v8675_v7 }
 0x62d   :  { %3078 = vmatpush1.bf16.msra.mxu0 %v8884_v13  ;;  %4983 = vmatpush3.bf16.msra.mxu1 %v8885_v48 }
 0x62e   :  { %3079 = vmatprep.subr.bf16.mxu0 %v8886_v24  ;;  %4984 = vmatprep.subr.bf16.mxu1 %v8675_v7 }
 0x631   :  { %3080 = vmatpush1.bf16.msra.mxu0 %v8887_v62  ;;  %4985 = vmatpush3.bf16.msra.mxu1 %v8888_v51 }
 0x632   :  { %3081 = vmatprep.subr.bf16.mxu0 %v8889_v8  ;;  %4986 = vmatprep.subr.bf16.mxu1 %v8675_v7 }
 0x635   :  { %3082 = vmatpush1.bf16.msra.mxu0 %v8890_v58  ;;  %4987 = vmatpush3.bf16.msra.mxu1 %v8891_v6 }
 0x636   :  { %3149 = vmatprep.subr.bf16.mxu0 %v8892_v52  ;;  %4992 = vmatprep.subr.bf16.mxu1 %v8675_v7 }
 0x638   :  { %3100 = vmatmul.mubr.bf16.vlgmr.msra.gmra.mrb[48].mxu0 %v5776_v57  ;;  %4989 = vmatmul.mubr.bf16.vlgmr.msra.gmra.mrb[96].mxu1 %v5776_v57  ;;  %v7790_v57 = vld [vmem:[#allocation7 + $0x80] ss:$12 sps:$4 sm:$0xff]  }
 0x639   :  { %3150 = vmatpush1.bf16.msra.mxu0 %v8893_v40  ;;  %4993 = vmatpush3.bf16.msra.mxu1 %v8894_v63  ;;  %8909 = vst [vmem:[#allocation69_spill] sm:$0xff] %v7790_v57 }
 0x63a   :  { %3151 = vmatprep.subr.bf16.mxu0 %v8895_v46  ;;  %4994 = vmatprep.subr.bf16.mxu1 %v8675_v7 }
 0x63b   :  { %3181 = vmatprep.mubr.bf16.mxu0 %v8581_v1  ;;  %5008 = vmatprep.mubr.msk.bf16.mxu1 %vm6018_vm0, %v8675_v7 }
 0x63d   :  { %3152 = vmatpush1.bf16.msra.mxu0 %v8896_v33  ;;  %4995 = vmatpush3.bf16.msra.mxu1 %v8897_v59 }
 0x63e   :  { %3153 = vmatprep.subr.bf16.mxu0 %v8898_v60  ;;  %4996 = vmatprep.subr.bf16.mxu1 %v8675_v7 }
 0x641   :  { %3154 = vmatpush1.bf16.msra.mxu0 %v8899_v56  ;;  %4997 = vmatpush3.bf16.msra.mxu1 %v8900_v25 }
 0x642   :  { %3155 = vmatprep.subr.bf16.mxu0 %v8901_v50  ;;  %4998 = vmatprep.subr.bf16.mxu1 %v8675_v7 }
 0x645   :  { %3156 = vmatpush1.bf16.msra.mxu0 %v8902_v30  ;;  %4999 = vmatpush3.bf16.msra.mxu1 %v8903_v12  ;;  %v8910_v30 = vld [vmem:[#allocation39_spill] sm:$0xff] }
 0x646   :  { %3157 = vmatprep.subr.bf16.mxu0 %v8904_v61  ;;  %5000 = vmatprep.subr.bf16.mxu1 %v8675_v7  ;;  %v8911_v61 = vld [vmem:[#allocation40_spill] sm:$0xff]  ;;  %v7796_v12 = vld [vmem:[#allocation7 + $0x98] ss:$12 sps:$4 sm:$0xff]  }
 0x647   :  { %8912 = vst [vmem:[#allocation70_spill] sm:$0xff] %v7796_v12 }
 0x649   :  { %3158 = vmatpush1.bf16.msra.mxu0 %v8905_v3  ;;  %5001 = vmatpush3.bf16.msra.mxu1 %v8906_v27  ;;  %v8913_v27 = vld [vmem:[#allocation47_spill] sm:$0xff] }
 0x64a   :  { %3159 = vmatprep.subr.bf16.mxu0 %v8907_v54  ;;  %5002 = vmatprep.subr.bf16.mxu1 %v8675_v7  ;;  %v8914_v54 = vld [vmem:[#allocation42_spill] sm:$0xff] }
 0x64d   :  { %3160 = vmatpush1.bf16.msra.mxu0 %v8908_v14  ;;  %5003 = vmatpush3.bf16.msra.mxu1 %v7790_v57  ;;  %v7802_v14 = vld [vmem:[#allocation7 + $0xb0] ss:$12 sps:$4 sm:$0xff]   ;;  %v8916_v57 = vld [vmem:[#allocation43_spill] sm:$0xff] }
 0x64e   :  { %3161 = vmatprep.subr.bf16.mxu0 %v8910_v30  ;;  %5004 = vmatprep.subr.bf16.mxu1 %v8675_v7  ;;  %8915 = vst [vmem:[#allocation71_spill] sm:$0xff] %v7802_v14 }
 0x651   :  { %3162 = vmatpush1.bf16.msra.mxu0 %v8911_v61  ;;  %5005 = vmatpush3.bf16.msra.mxu1 %v7796_v12 }
 0x652   :  { %3163 = vmatprep.subr.bf16.mxu0 %v8913_v27  ;;  %5006 = vmatprep.subr.bf16.mxu1 %v8675_v7 }
 0x655   :  { %3164 = vmatpush1.bf16.msra.mxu0 %v8914_v54  ;;  %5007 = vmatpush3.bf16.msra.mxu1 %v7802_v14 }
 0x656   :  { %3251 = vmatprep.subr.bf16.mxu0 %v8916_v57  ;;  %5012 = vmatprep.subr.bf16.mxu1 %v8675_v7 }
 0x6ab   :  { %v2815_v30 = vpop.f32.mrb[40].mxu0  ;;  %v2856_v61 = vpop.f32.mrb[84].mxu1 }
 0x6ac   :  { %v5213_v3 = vadd.f32 %v6626_v17, %v2815_v30  ;;  %v2817_v50 = vpop.f32.mrb[41].mxu0  ;;  %v4930_v12 = vpop.f32.mrb[85].mxu1  ;;  %v2857_v40 = vadd.f32 %v2856_v61, %v6635_v35 }
 0x6ad   :  { %v2819_v25 = vpop.f32.mrb[42].mxu0  ;;  %v2859_v27 = vpop.f32.mrb[86].mxu1  ;;  %v5215_v54 = vadd.f32 %v6628_v19, %v2817_v50 }
 0x6ae   :  { %v4157_v56 = vmul.f32 -1.442695, %v5213_v3  ;;  %v2820_v60 = vpop.f32.mrb[43].mxu0  ;;  %v4931_v59 = vpop.f32.mrb[87].mxu1  ;;  %v2775_v25 = vadd.f32 %v7708_v26, %v6638_v37 }
 0x6af   :  { %v4158_v33 = vmul.f32 -1.442695, %v5215_v54 }
 0x6b0   :  { %5559 = vpow2.f32 %v4157_v56 }
 0x6b1   :  { %5561 = vpow2.f32 %v4158_v33 }
 0x6ba   :  { %v5560_v14 = vpop.eup %5559 }
 0x6bb   :  { %v2866_v57 = vadd.f32 1.0, %v5560_v14  ;;  %v5562_v46 = vpop.eup %5561 }
 0x6bc   :  { %v2873_v63 = vadd.f32 1.0, %v5562_v46 }
 0x6bd   :  { %5563 = vrcp.f32 %v2866_v57  ;;  %v7839_v57 = vld [vmem:[#allocation8 + $0x50] ss:$12 sps:$4 sm:$0xff]  }
 0x6be   :  { %5565 = vrcp.f32 %v2873_v63  ;;  %v8917_v63 = vld [vmem:[#allocation50_spill] sm:$0xff] }
 0x6c7   :  { %v5564_v30 = vpop.eup %5563 }
 0x6c8   :  { %v2876_v12 = vmul.f32 %v5564_v30, %v2857_v40  ;;  %v5566_v3 = vpop.eup %5565  ;;  %v7833_v40 = vld [vmem:[#allocation8 + $0x38] ss:$12 sps:$4 sm:$0xff]  }
 0x6c9   :  { %v2879_v27 = vsub.f32 1.0, %v5566_v3  ;;  %v2881_v46 = vmul.f32 %v5566_v3, %v7623_v47  ;;  %v7827_v47 = vld [vmem:[#allocation8 + $0x20] ss:$12 sps:$4 sm:$0xff]  }
 0x6ca   :  { %v2877_v60 = vadd.f32 %v2876_v12, %v2775_v25  ;;  %v8918_v12 = vld [vmem:[#allocation68_spill] sm:$0xff] }
 0x6cb   :  { %v7812_v59 = vpop.f32.mrb[88].mxu1 }
 0x6cc   :  { %5567 = vtanh.f32 %v2877_v60  ;;  %v4950_v56 = vpop.f32.mrb[89].mxu1 }
 0x6cd   :  { %v2961_v50 = vpop.f32.mrb[90].mxu1 }
 0x6ce   :  { %v4951_v33 = vpop.f32.mrb[91].mxu1 }
 0x6d6   :  { %v5568_v54 = vpop.eup %5567 }
 0x6d7   :  { %v2880_v14 = vmul.f32 %v5568_v54, %v2879_v27 }
 0x6d9   :  { %v7815_v61 = vadd.f32 %v2881_v46, %v2880_v14  ;;  %v7848_v46 = vld [vmem:[#allocation8 + $0x68] ss:$12 sps:$4 sm:$0xff]  }
 0x6db   :  { %v3148_v26 = vpack.c.bf16 %v7815_v61, %v7815_v61 }
 0x6dd   :  { %3182 = vmatmul.mubr.bf16.vlgmr.msra.gmra.mrb[48].mxu0 %v3148_v26  ;;  %5009 = vmatmul.mubr.bf16.vlgmr.msra.gmra.mrb[100].mxu1 %v3148_v26 }
 0x6de   :  { %3252 = vmatpush1.bf16.msra.mxu0 %v7627_v10  ;;  %5013 = vmatpush3.bf16.msra.mxu1 %v7630_v49 }
 0x6df   :  { %3253 = vmatprep.subr.bf16.mxu0 %v7633_v39  ;;  %5014 = vmatprep.subr.bf16.mxu1 %v8675_v7 }
 0x6e0   :  { %3283 = vmatprep.mubr.bf16.mxu0 %v8581_v1  ;;  %5028 = vmatprep.mubr.msk.bf16.mxu1 %vm6018_vm0, %v8675_v7 }
 0x6e2   :  { %3254 = vmatpush1.bf16.msra.mxu0 %v7640_v20  ;;  %5015 = vmatpush3.bf16.msra.mxu1 %v7827_v47 }
 0x6e3   :  { %3255 = vmatprep.subr.bf16.mxu0 %v7644_v28  ;;  %5016 = vmatprep.subr.bf16.mxu1 %v8675_v7 }
 0x6e6   :  { %3256 = vmatpush1.bf16.msra.mxu0 %v7648_v43  ;;  %5017 = vmatpush3.bf16.msra.mxu1 %v7833_v40 }
 0x6e7   :  { %3257 = vmatprep.subr.bf16.mxu0 %v7652_v4  ;;  %5018 = vmatprep.subr.bf16.mxu1 %v8675_v7 }
 0x6ea   :  { %3258 = vmatpush1.bf16.msra.mxu0 %v8917_v63  ;;  %5019 = vmatpush3.bf16.msra.mxu1 %v7839_v57 }
 0x6eb   :  { %v2999_v30 = vpop.f32.mrb[44].mxu0  ;;  %v7842_v25 = vpop.f32.mrb[92].mxu1  ;;  %3259 = vmatprep.subr.bf16.mxu0 %v8918_v12  ;;  %5020 = vmatprep.subr.bf16.mxu1 %v8675_v7 }
 0x6ec   :  { %v5217_v60 = vadd.f32 %v6677_v16, %v2999_v30  ;;  %v3001_v56 = vpop.f32.mrb[45].mxu0  ;;  %v4970_v50 = vpop.f32.mrb[93].mxu1  ;;  %v7854_v30 = vld [vmem:[#allocation8 + $0x78] ss:$12 sps:$4 sm:$0xff]  }
 0x6ed   :  { %v3003_v33 = vpop.f32.mrb[46].mxu0  ;;  %v3043_v3 = vpop.f32.mrb[94].mxu1  ;;  %v5219_v26 = vadd.f32 %v6681_v21, %v3001_v56  ;;  %v7864_v56 = vld [vmem:[#allocation8 + $0x90] ss:$12 sps:$4 sm:$0xff]  }
 0x6ee   :  { %v4159_v27 = vmul.f32 -1.442695, %v5217_v60  ;;  %v3004_v54 = vpop.f32.mrb[47].mxu0  ;;  %v4971_v14 = vpop.f32.mrb[95].mxu1  ;;  %3260 = vmatpush1.bf16.msra.mxu0 %v7665_v44  ;;  %5021 = vmatpush3.bf16.msra.mxu1 %v7848_v46  ;;  %v7857_v60 = vld [vmem:[#allocation8 + $0x80] ss:$12 sps:$4 sm:$0xff]  }
 0x6ef   :  { %3261 = vmatprep.subr.bf16.mxu0 %v7670_v53  ;;  %5022 = vmatprep.subr.bf16.mxu1 %v8675_v7  ;;  %v4160_v50 = vmul.f32 -1.442695, %v5219_v26  ;;  %v7860_v33 = vld [vmem:[#allocation8 + $0x94] ss:$12 sps:$4 sm:$0xff]   ;;  %8920 = vst [vmem:[#allocation73_spill] sm:$0xff] %v7864_v56 }
 0x6f0   :  { %5569 = vpow2.f32 %v4159_v27  ;;  %8919 = vst [vmem:[#allocation72_spill] sm:$0xff] %v7860_v33  ;;  %v7867_v3 = vld [vmem:[#allocation8 + $0x98] ss:$12 sps:$4 sm:$0xff]   ;;  %v7874_v14 = vld [vmem:[#allocation8 + $0xa8] ss:$12 sps:$4 sm:$0xff]  }
 0x6f1   :  { %8921 = vst [vmem:[#allocation74_spill] sm:$0xff] %v7867_v3  ;;  %5571 = vpow2.f32 %v4160_v50  ;;  %v7870_v27 = vld [vmem:[#allocation8 + $0xac] ss:$12 sps:$4 sm:$0xff]   ;;  %8923 = vst [vmem:[#allocation45_spill] sm:$0xff] %v7874_v14  ;;  %v7877_v26 = vld [vmem:[#allocation8 + $0xb0] ss:$12 sps:$4 sm:$0xff]  }
 0x6f2   :  { %3262 = vmatpush1.bf16.msra.mxu0 %v7854_v30  ;;  %5023 = vmatpush3.bf16.msra.mxu1 %v7857_v60  ;;  %8922 = vst [vmem:[#allocation75_spill] sm:$0xff] %v7870_v27  ;;  %8924 = vst [vmem:[#allocation46_spill] sm:$0xff] %v7877_v26  ;;  %v5793_v50 = vld [vmem:[#allocation2 + $0x4] sm:$0xf] }
 0x6f3   :  { %3263 = vmatprep.subr.bf16.mxu0 %v7860_v33  ;;  %5024 = vmatprep.subr.bf16.mxu1 %v8675_v7  ;;  %v7880_v33 = vld [vmem:[#allocation10 + $0x4] ss:$12 sps:$4 sm:$0xff]  }
 0x6f4   :  { %8925 = vst [vmem:[#allocation48_spill] sm:$0xff] %v7880_v33 }
 0x6f6   :  { %3264 = vmatpush1.bf16.msra.mxu0 %v7864_v56  ;;  %5025 = vmatpush3.bf16.msra.mxu1 %v7867_v3  ;;  %v7912_v3 = vld [vmem:[#allocation10 + $0x38] ss:$12 sps:$4 sm:$0xff]  }
 0x6f7   :  { %3265 = vmatprep.subr.bf16.mxu0 %v7870_v27  ;;  %5026 = vmatprep.subr.bf16.mxu1 %v8675_v7  ;;  %v7884_v27 = vld [vmem:[#allocation10] ss:$12 sps:$4 sm:$0xff]   ;;  %8933 = vst [vmem:[#allocation58_spill] sm:$0xff] %v7912_v3 }
 0x6f8   :  { %8926 = vst [vmem:[#allocation49_spill] sm:$0xff] %v7884_v27 }
 0x6fa   :  { %v5570_v54 = vpop.eup %5569  ;;  %3266 = vmatpush1.bf16.msra.mxu0 %v7874_v14  ;;  %5027 = vmatpush3.bf16.msra.mxu1 %v7877_v26  ;;  %v7887_v14 = vld [vmem:[#allocation10 + $0x8] ss:$12 sps:$4 sm:$0xff]  }
 0x6fb   :  { %v3050_v56 = vadd.f32 1.0, %v5570_v54  ;;  %3333 = vmatprep.subr.bf16.mxu0 %v7880_v33  ;;  %5032 = vmatprep.subr.bf16.mxu1 %v8675_v7  ;;  %8927 = vst [vmem:[#allocation51_spill] sm:$0xff] %v7887_v14  ;;  %v7890_v26 = vld [vmem:[#allocation10 + $0x1c] ss:$12 sps:$4 sm:$0xff]   ;;  %v7897_v54 = vld [vmem:[#allocation10 + $0x18] ss:$12 sps:$4 sm:$0xff]  }
 0x6fc   :  { %8928 = vst [vmem:[#allocation52_spill] sm:$0xff] %v7890_v26  ;;  %8929 = vst [vmem:[#allocation53_spill] sm:$0xff] %v7897_v54  ;;  %v7909_v33 = vld [vmem:[#allocation10 + $0x30] ss:$12 sps:$4 sm:$0xff]  }
 0x6fd   :  { %5573 = vrcp.f32 %v3050_v56  ;;  %3284 = vmatmul.mubr.bf16.vlgmr.msra.gmra.mrb[52].mxu0 %v5793_v50  ;;  %5029 = vmatmul.mubr.bf16.vlgmr.msra.gmra.mrb[104].mxu1 %v5793_v50  ;;  %v5572_v56 = vpop.eup %5571  ;;  %v7900_v50 = vld [vmem:[#allocation10 + $0x20] ss:$12 sps:$4 sm:$0xff]   ;;  %8932 = vst [vmem:[#allocation57_spill] sm:$0xff] %v7909_v33 }
 0x6fe   :  { %3334 = vmatpush1.bf16.msra.mxu0 %v7884_v27  ;;  %5033 = vmatpush3.bf16.msra.mxu1 %v7887_v14  ;;  %8930 = vst [vmem:[#allocation55_spill] sm:$0xff] %v7900_v50  ;;  %v7903_v14 = vld [vmem:[#allocation10 + $0x34] ss:$12 sps:$4 sm:$0xff]   ;;  %v3041_v27 = vadd.f32 %v7842_v25, %v8803_v36 }
 0x6ff   :  { %3335 = vmatprep.subr.bf16.mxu0 %v7890_v26  ;;  %5034 = vmatprep.subr.bf16.mxu1 %v8675_v7  ;;  %8931 = vst [vmem:[#allocation56_spill] sm:$0xff] %v7903_v14  ;;  %v3057_v26 = vadd.f32 1.0, %v5572_v56  ;;  %v2959_v56 = vadd.f32 %v7812_v59, %v6719_v18  ;;  %v7921_v36 = vld [vmem:[#allocation10 + $0x48] ss:$12 sps:$4 sm:$0xff]  }
 0x700   :  { %3365 = vmatprep.mubr.bf16.mxu0 %v8581_v1  ;;  %5048 = vmatprep.mubr.msk.bf16.mxu1 %vm6018_vm0, %v8675_v7  ;;  %8935 = vst [vmem:[#allocation60_spill] sm:$0xff] %v7921_v36 }
 0x701   :  { %5575 = vrcp.f32 %v3057_v26  ;;  %v7936_v26 = vld [vmem:[#allocation10 + $0x68] ss:$12 sps:$4 sm:$0xff]  }
 0x702   :  { %3336 = vmatpush1.bf16.msra.mxu0 %v7897_v54  ;;  %5035 = vmatpush3.bf16.msra.mxu1 %v7900_v50  ;;  %v7915_v50 = vld [vmem:[#allocation10 + $0x4c] ss:$12 sps:$4 sm:$0xff]   ;;  %8939 = vst [vmem:[#allocation63_spill] sm:$0xff] %v7936_v26 }
 0x703   :  { %3337 = vmatprep.subr.bf16.mxu0 %v7903_v14  ;;  %5036 = vmatprep.subr.bf16.mxu1 %v8675_v7  ;;  %8934 = vst [vmem:[#allocation59_spill] sm:$0xff] %v7915_v50 }
 0x706   :  { %3338 = vmatpush1.bf16.msra.mxu0 %v7909_v33  ;;  %5037 = vmatpush3.bf16.msra.mxu1 %v7912_v3  ;;  %v7924_v33 = vld [vmem:[#allocation10 + $0x50] ss:$12 sps:$4 sm:$0xff]  }
 0x707   :  { %v5574_v54 = vpop.eup %5573  ;;  %3339 = vmatprep.subr.bf16.mxu0 %v7915_v50  ;;  %5038 = vmatprep.subr.bf16.mxu1 %v8675_v7  ;;  %8936 = vst [vmem:[#allocation61_spill] sm:$0xff] %v7924_v33  ;;  %v7927_v3 = vld [vmem:[#allocation10 + $0x64] ss:$12 sps:$4 sm:$0xff]  }
 0x708   :  { %v3060_v14 = vmul.f32 %v5574_v54, %v3041_v27  ;;  %8937 = vst [vmem:[#allocation62_spill] sm:$0xff] %v7927_v3 }
 0x70a   :  { %v3061_v25 = vadd.f32 %v3060_v14, %v2959_v56  ;;  %3340 = vmatpush1.bf16.msra.mxu0 %v7921_v36  ;;  %5039 = vmatpush3.bf16.msra.mxu1 %v7924_v33  ;;  %v7933_v14 = vld [vmem:[#allocation10 + $0x60] ss:$12 sps:$4 sm:$0xff]   ;;  %v7939_v56 = vld [vmem:[#allocation10 + $0x7c] ss:$12 sps:$4 sm:$0xff]   ;;  %v7943_v33 = vld [vmem:[#allocation10 + $0x78] ss:$12 sps:$4 sm:$0xff]  }
 0x70b   :  { %3341 = vmatprep.subr.bf16.mxu0 %v7927_v3  ;;  %5040 = vmatprep.subr.bf16.mxu1 %v8675_v7  ;;  %v7931_v50 = vpop.f32.mrb[96].mxu1  ;;  %8938 = vst [vmem:[#allocation21_spill] sm:$0xff] %v7933_v14  ;;  %8940 = vst [vmem:[#allocation64_spill] sm:$0xff] %v7939_v56  ;;  %v5576_v3 = vpop.eup %5575  ;;  %v7966_v36 = vld [vmem:[#allocation10 + $0xa8] ss:$12 sps:$4 sm:$0xff]  }
 0x70c   :  { %5577 = vtanh.f32 %v3061_v25  ;;  %v4990_v59 = vpop.f32.mrb[97].mxu1  ;;  %8941 = vst [vmem:[#allocation26_spill] sm:$0xff] %v7943_v33  ;;  %v7946_v25 = vld [vmem:[#allocation10 + $0x80] ss:$12 sps:$4 sm:$0xff]  }
 0x70d   :  { %v3145_v27 = vpop.f32.mrb[98].mxu1  ;;  %8942 = vst [vmem:[#allocation65_spill] sm:$0xff] %v7946_v25  ;;  %v7949_v59 = vld [vmem:[#allocation10 + $0x94] ss:$12 sps:$4 sm:$0xff]  }
 0x70e   :  { %3342 = vmatpush1.bf16.msra.mxu0 %v7933_v14  ;;  %5041 = vmatpush3.bf16.msra.mxu1 %v7936_v26  ;;  %v4991_v54 = vpop.f32.mrb[99].mxu1  ;;  %8943 = vst [vmem:[#allocation66_spill] sm:$0xff] %v7949_v59  ;;  %v3063_v27 = vsub.f32 1.0, %v5576_v3  ;;  %v7956_v26 = vld [vmem:[#allocation10 + $0x98] ss:$12 sps:$4 sm:$0xff]  }
 0x70f   :  { %3343 = vmatprep.subr.bf16.mxu0 %v7939_v56  ;;  %5042 = vmatprep.subr.bf16.mxu1 %v8675_v7  ;;  %v7953_v56 = vld [vmem:[#allocation10 + $0x90] ss:$12 sps:$4 sm:$0xff]   ;;  %8945 = vst [vmem:[#allocation67_spill] sm:$0xff] %v7956_v26 }
 0x710   :  { %8944 = vst [vmem:[#allocation22_spill] sm:$0xff] %v7953_v56 }
 0x712   :  { %3344 = vmatpush1.bf16.msra.mxu0 %v7943_v33  ;;  %5043 = vmatpush3.bf16.msra.mxu1 %v7946_v25  ;;  %v7959_v33 = vld [vmem:[#allocation10 + $0xac] ss:$12 sps:$4 sm:$0xff]  }
 0x713   :  { %3345 = vmatprep.subr.bf16.mxu0 %v7949_v59  ;;  %5044 = vmatprep.subr.bf16.mxu1 %v8675_v7  ;;  %v3065_v59 = vmul.f32 %v5576_v3, %v7723_v22  ;;  %v5817_v22 = vld [vmem:[#allocation2 + $0x1c] sm:$0xf] }
 0x716   :  { %v5578_v54 = vpop.eup %5577  ;;  %3346 = vmatpush1.bf16.msra.mxu0 %v7953_v56  ;;  %5045 = vmatpush3.bf16.msra.mxu1 %v7956_v26  ;;  %v7969_v56 = vld [vmem:[#allocation10 + $0xb0] ss:$12 sps:$4 sm:$0xff]  }
 0x717   :  { %3347 = vmatprep.subr.bf16.mxu0 %v7959_v33  ;;  %5046 = vmatprep.subr.bf16.mxu1 %v8675_v7  ;;  %v3064_v25 = vmul.f32 %v5578_v54, %v3063_v27 }
 0x719   :  { %v7964_v14 = vadd.f32 %v3065_v59, %v3064_v25 }
 0x71a   :  { %3348 = vmatpush1.bf16.msra.mxu0 %v7966_v36  ;;  %5047 = vmatpush3.bf16.msra.mxu1 %v7969_v56 }
 0x71b   :  { %v3332_v26 = vpack.c.bf16 %v7964_v14, %v7964_v14  ;;  %3435 = vmatprep.subr.bf16.mxu0 %v8868_v45  ;;  %5052 = vmatprep.subr.bf16.mxu1 %v8675_v7  ;;  %v8946_v45 = vld [vmem:[#allocation24_spill] sm:$0xff] }
 0x71d   :  { %3366 = vmatmul.mubr.bf16.vlgmr.msra.gmra.mrb[52].mxu0 %v3332_v26  ;;  %5049 = vmatmul.mubr.bf16.vlgmr.msra.gmra.mrb[108].mxu1 %v3332_v26 }
 0x71e   :  { %3436 = vmatpush1.bf16.msra.mxu0 %v8869_v55  ;;  %5053 = vmatpush3.bf16.msra.mxu1 %v8870_v29  ;;  %v8947_v55 = vld [vmem:[#allocation25_spill] sm:$0xff]  ;;  %v8948_v29 = vld [vmem:[#allocation32_spill] sm:$0xff] }
 0x71f   :  { %3437 = vmatprep.subr.bf16.mxu0 %v8871_v32  ;;  %5054 = vmatprep.subr.bf16.mxu1 %v8675_v7  ;;  %v8949_v32 = vld [vmem:[#allocation27_spill] sm:$0xff] }
 0x720   :  { %3467 = vmatprep.mubr.bf16.mxu0 %v8581_v1  ;;  %5068 = vmatprep.mubr.msk.bf16.mxu1 %vm6018_vm0, %v8675_v7 }
 0x722   :  { %3438 = vmatpush1.bf16.msra.mxu0 %v8872_v23  ;;  %5055 = vmatpush3.bf16.msra.mxu1 %v8873_v38  ;;  %v8950_v23 = vld [vmem:[#allocation28_spill] sm:$0xff]  ;;  %v8951_v38 = vld [vmem:[#allocation35_spill] sm:$0xff] }
 0x723   :  { %3439 = vmatprep.subr.bf16.mxu0 %v8874_v15  ;;  %5056 = vmatprep.subr.bf16.mxu1 %v8675_v7  ;;  %v8952_v15 = vld [vmem:[#allocation30_spill] sm:$0xff] }
 0x726   :  { %3440 = vmatpush1.bf16.msra.mxu0 %v8875_v34  ;;  %5057 = vmatpush3.bf16.msra.mxu1 %v8876_v5  ;;  %v8953_v34 = vld [vmem:[#allocation54_spill] sm:$0xff]  ;;  %v8954_v5 = vld [vmem:[#allocation31_spill] sm:$0xff] }
 0x727   :  { %3441 = vmatprep.subr.bf16.mxu0 %v8877_v2  ;;  %5058 = vmatprep.subr.bf16.mxu1 %v8675_v7  ;;  %v8955_v2 = vld [vmem:[#allocation38_spill] sm:$0xff] }
 0x72a   :  { %3442 = vmatpush1.bf16.msra.mxu0 %v8878_v41  ;;  %5059 = vmatpush3.bf16.msra.mxu1 %v8879_v42  ;;  %v8956_v41 = vld [vmem:[#allocation33_spill] sm:$0xff]  ;;  %v8957_v42 = vld [vmem:[#allocation34_spill] sm:$0xff] }
 0x72b   :  { %3443 = vmatprep.subr.bf16.mxu0 %v8880_v31  ;;  %5060 = vmatprep.subr.bf16.mxu1 %v8675_v7  ;;  %v8958_v31 = vld [vmem:[#allocation41_spill] sm:$0xff] }
 0x72e   :  { %3444 = vmatpush1.bf16.msra.mxu0 %v8881_v9  ;;  %5061 = vmatpush3.bf16.msra.mxu1 %v8882_v0  ;;  %v8959_v9 = vld [vmem:[#allocation36_spill] sm:$0xff]  ;;  %v8960_v0 = vld [vmem:[#allocation37_spill] sm:$0xff] }
 0x72f   :  { %3445 = vmatprep.subr.bf16.mxu0 %v8883_v11  ;;  %5062 = vmatprep.subr.bf16.mxu1 %v8675_v7  ;;  %v8961_v11 = vld [vmem:[#allocation44_spill] sm:$0xff] }
 0x732   :  { %3446 = vmatpush1.bf16.msra.mxu0 %v8884_v13  ;;  %5063 = vmatpush3.bf16.msra.mxu1 %v8885_v48  ;;  %v8962_v13 = vld [vmem:[#allocation69_spill] sm:$0xff]  ;;  %v8963_v48 = vld [vmem:[#allocation39_spill] sm:$0xff] }
 0x733   :  { %3447 = vmatprep.subr.bf16.mxu0 %v8886_v24  ;;  %5064 = vmatprep.subr.bf16.mxu1 %v8675_v7  ;;  %v8964_v24 = vld [vmem:[#allocation40_spill] sm:$0xff] }
 0x736   :  { %3448 = vmatpush1.bf16.msra.mxu0 %v8887_v62  ;;  %5065 = vmatpush3.bf16.msra.mxu1 %v8888_v51  ;;  %v8965_v62 = vld [vmem:[#allocation70_spill] sm:$0xff]  ;;  %v8966_v51 = vld [vmem:[#allocation47_spill] sm:$0xff] }
 0x737   :  { %3449 = vmatprep.subr.bf16.mxu0 %v8889_v8  ;;  %5066 = vmatprep.subr.bf16.mxu1 %v8675_v7  ;;  %v8967_v8 = vld [vmem:[#allocation42_spill] sm:$0xff] }
 0x73a   :  { %3450 = vmatpush1.bf16.msra.mxu0 %v8890_v58  ;;  %5067 = vmatpush3.bf16.msra.mxu1 %v8891_v6  ;;  %v8968_v58 = vld [vmem:[#allocation71_spill] sm:$0xff] }
 0x73b   :  { %3517 = vmatprep.subr.bf16.mxu0 %v8892_v52  ;;  %5072 = vmatprep.subr.bf16.mxu1 %v8675_v7  ;;  %v8969_v6 = vld [vmem:[#allocation43_spill] sm:$0xff] }
 0x73d   :  { %3468 = vmatmul.mubr.bf16.vlgmr.msra.gmra.mrb[56].mxu0 %v5817_v22  ;;  %5069 = vmatmul.mubr.bf16.vlgmr.msra.gmra.mrb[112].mxu1 %v5817_v22 }
 0x73e   :  { %3518 = vmatpush1.bf16.msra.mxu0 %v8946_v45  ;;  %5073 = vmatpush3.bf16.msra.mxu1 %v8947_v55 }
 0x73f   :  { %3519 = vmatprep.subr.bf16.mxu0 %v8948_v29  ;;  %5074 = vmatprep.subr.bf16.mxu1 %v8675_v7 }
 0x740   :  { %3549 = vmatprep.mubr.bf16.mxu0 %v8581_v1  ;;  %5088 = vmatprep.mubr.msk.bf16.mxu1 %vm6018_vm0, %v8675_v7 }
 0x742   :  { %3520 = vmatpush1.bf16.msra.mxu0 %v8949_v32  ;;  %5075 = vmatpush3.bf16.msra.mxu1 %v8950_v23 }
 0x743   :  { %3521 = vmatprep.subr.bf16.mxu0 %v8951_v38  ;;  %5076 = vmatprep.subr.bf16.mxu1 %v8675_v7 }
 0x746   :  { %3522 = vmatpush1.bf16.msra.mxu0 %v8952_v15  ;;  %5077 = vmatpush3.bf16.msra.mxu1 %v8953_v34 }
 0x747   :  { %3523 = vmatprep.subr.bf16.mxu0 %v8954_v5  ;;  %5078 = vmatprep.subr.bf16.mxu1 %v8675_v7 }
 0x74a   :  { %3524 = vmatpush1.bf16.msra.mxu0 %v8955_v2  ;;  %5079 = vmatpush3.bf16.msra.mxu1 %v8956_v41  ;;  %v3143_v41 = vadd.f32 %v7931_v50, %v6638_v37 }
 0x74b   :  { %3525 = vmatprep.subr.bf16.mxu0 %v8957_v42  ;;  %5080 = vmatprep.subr.bf16.mxu1 %v8675_v7 }
 0x74e   :  { %3526 = vmatpush1.bf16.msra.mxu0 %v8958_v31  ;;  %5081 = vmatpush3.bf16.msra.mxu1 %v8959_v9 }
 0x74f   :  { %3527 = vmatprep.subr.bf16.mxu0 %v8960_v0  ;;  %5082 = vmatprep.subr.bf16.mxu1 %v8675_v7 }
 0x752   :  { %3528 = vmatpush1.bf16.msra.mxu0 %v8961_v11  ;;  %5083 = vmatpush3.bf16.msra.mxu1 %v8962_v13 }
 0x753   :  { %3529 = vmatprep.subr.bf16.mxu0 %v8963_v48  ;;  %5084 = vmatprep.subr.bf16.mxu1 %v8675_v7 }
 0x756   :  { %3530 = vmatpush1.bf16.msra.mxu0 %v8964_v24  ;;  %5085 = vmatpush3.bf16.msra.mxu1 %v8965_v62 }
 0x757   :  { %3531 = vmatprep.subr.bf16.mxu0 %v8966_v51  ;;  %5086 = vmatprep.subr.bf16.mxu1 %v8675_v7 }
 0x75a   :  { %3532 = vmatpush1.bf16.msra.mxu0 %v8967_v8  ;;  %5087 = vmatpush3.bf16.msra.mxu1 %v8968_v58 }
 0x75b   :  { %3619 = vmatprep.subr.bf16.mxu0 %v8969_v6  ;;  %5092 = vmatprep.subr.bf16.mxu1 %v8675_v7  ;;  %v8971_v6 = vld [vmem:[#allocation73_spill] sm:$0xff] }
 0x7b0   :  { %v3183_v52 = vpop.f32.mrb[48].mxu0  ;;  %v3224_v3 = vpop.f32.mrb[100].mxu1 }
 0x7b1   :  { %v5221_v26 = vadd.f32 %v6626_v17, %v3183_v52  ;;  %v3185_v25 = vpop.f32.mrb[49].mxu0  ;;  %v5010_v59 = vpop.f32.mrb[101].mxu1  ;;  %v3225_v5 = vadd.f32 %v3224_v3, %v6635_v35  ;;  %v8974_v52 = vld [vmem:[#allocation45_spill] sm:$0xff]  ;;  %v8976_v3 = vld [vmem:[#allocation48_spill] sm:$0xff] }
 0x7b2   :  { %v3187_v27 = vpop.f32.mrb[50].mxu0  ;;  %v3227_v54 = vpop.f32.mrb[102].mxu1  ;;  %v5223_v29 = vadd.f32 %v6628_v19, %v3185_v25  ;;  %v8977_v25 = vld [vmem:[#allocation49_spill] sm:$0xff]  ;;  %v8978_v59 = vld [vmem:[#allocation51_spill] sm:$0xff] }
 0x7b3   :  { %v4161_v22 = vmul.f32 -1.442695, %v5221_v26  ;;  %v3188_v45 = vpop.f32.mrb[51].mxu0  ;;  %v5011_v55 = vpop.f32.mrb[103].mxu1  ;;  %v5818_v26 = vld [vmem:[#allocation2] sm:$0xf] }
 0x7b4   :  { %v4162_v32 = vmul.f32 -1.442695, %v5223_v29  ;;  %v8979_v27 = vld [vmem:[#allocation52_spill] sm:$0xff]  ;;  %v8981_v45 = vld [vmem:[#allocation55_spill] sm:$0xff] }
 0x7b5   :  { %5579 = vpow2.f32 %v4161_v22  ;;  %v8980_v22 = vld [vmem:[#allocation53_spill] sm:$0xff]  ;;  %v8982_v55 = vld [vmem:[#allocation56_spill] sm:$0xff] }
 0x7b6   :  { %5581 = vpow2.f32 %v4162_v32  ;;  %v8983_v32 = vld [vmem:[#allocation20_spill] sm:$0xff] }
 0x7bf   :  { %v5580_v23 = vpop.eup %5579 }
 0x7c0   :  { %v3234_v38 = vadd.f32 1.0, %v5580_v23  ;;  %v5582_v15 = vpop.eup %5581 }
 0x7c1   :  { %v3241_v34 = vadd.f32 1.0, %v5582_v15  ;;  %v8985_v15 = vld [vmem:[#allocation58_spill] sm:$0xff] }
 0x7c2   :  { %5583 = vrcp.f32 %v3234_v38  ;;  %v8984_v38 = vld [vmem:[#allocation57_spill] sm:$0xff] }
 0x7c3   :  { %5585 = vrcp.f32 %v3241_v34  ;;  %v8986_v34 = vld [vmem:[#allocation59_spill] sm:$0xff] }
 0x7cc   :  { %v5584_v2 = vpop.eup %5583 }
 0x7cd   :  { %v3244_v42 = vmul.f32 %v5584_v2, %v3225_v5  ;;  %v5586_v48 = vpop.eup %5585 }
 0x7ce   :  { %v3247_v24 = vsub.f32 1.0, %v5586_v48  ;;  %v3249_v8 = vmul.f32 %v5586_v48, %v7815_v61 }
 0x7cf   :  { %v3245_v31 = vadd.f32 %v3244_v42, %v3143_v41  ;;  %v8987_v42 = vld [vmem:[#allocation60_spill] sm:$0xff] }
 0x7d0   :  { %v8051_v9 = vpop.f32.mrb[104].mxu1 }
 0x7d1   :  { %5587 = vtanh.f32 %v3245_v31  ;;  %v5030_v0 = vpop.f32.mrb[105].mxu1  ;;  %v3327_v5 = vadd.f32 %v8051_v9, %v6719_v18  ;;  %v8988_v31 = vld [vmem:[#allocation61_spill] sm:$0xff] }
 0x7d2   :  { %v3329_v11 = vpop.f32.mrb[106].mxu1  ;;  %v8989_v0 = vld [vmem:[#allocation62_spill] sm:$0xff] }
 0x7d3   :  { %v5031_v13 = vpop.f32.mrb[107].mxu1 }
 0x7db   :  { %v5588_v62 = vpop.eup %5587 }
 0x7dc   :  { %v3248_v51 = vmul.f32 %v5588_v62, %v3247_v24  ;;  %v8990_v24 = vld [vmem:[#allocation21_spill] sm:$0xff]  ;;  %v8991_v62 = vld [vmem:[#allocation63_spill] sm:$0xff] }
 0x7de   :  { %v8054_v58 = vadd.f32 %v3249_v8, %v3248_v51  ;;  %v8992_v51 = vld [vmem:[#allocation64_spill] sm:$0xff] }
 0x7e0   :  { %v3516_v50 = vpack.c.bf16 %v8054_v58, %v8054_v58 }
 0x7e2   :  { %3550 = vmatmul.mubr.bf16.vlgmr.msra.gmra.mrb[56].mxu0 %v3516_v50  ;;  %5089 = vmatmul.mubr.bf16.vlgmr.msra.gmra.mrb[116].mxu1 %v3516_v50  ;;  %v8993_v50 = vld [vmem:[#allocation26_spill] sm:$0xff] }
 0x7e3   :  { %3620 = vmatpush1.bf16.msra.mxu0 %v7627_v10  ;;  %5093 = vmatpush3.bf16.msra.mxu1 %v7630_v49 }
 0x7e4   :  { %3621 = vmatprep.subr.bf16.mxu0 %v7633_v39  ;;  %5094 = vmatprep.subr.bf16.mxu1 %v8675_v7 }
 0x7e5   :  { %3651 = vmatprep.mubr.bf16.mxu0 %v8581_v1  ;;  %5108 = vmatprep.mubr.msk.bf16.mxu1 %vm6018_vm0, %v8675_v7 }
 0x7e7   :  { %3622 = vmatpush1.bf16.msra.mxu0 %v7640_v20  ;;  %5095 = vmatpush3.bf16.msra.mxu1 %v7827_v47 }
 0x7e8   :  { %3623 = vmatprep.subr.bf16.mxu0 %v7644_v28  ;;  %5096 = vmatprep.subr.bf16.mxu1 %v8675_v7 }
 0x7eb   :  { %3624 = vmatpush1.bf16.msra.mxu0 %v7648_v43  ;;  %5097 = vmatpush3.bf16.msra.mxu1 %v7833_v40 }
 0x7ec   :  { %3625 = vmatprep.subr.bf16.mxu0 %v7652_v4  ;;  %5098 = vmatprep.subr.bf16.mxu1 %v8675_v7 }
 0x7ef   :  { %3626 = vmatpush1.bf16.msra.mxu0 %v8917_v63  ;;  %5099 = vmatpush3.bf16.msra.mxu1 %v7839_v57 }
 0x7f0   :  { %v3367_v10 = vpop.f32.mrb[52].mxu0  ;;  %v3408_v49 = vpop.f32.mrb[108].mxu1  ;;  %3627 = vmatprep.subr.bf16.mxu0 %v8918_v12  ;;  %5100 = vmatprep.subr.bf16.mxu1 %v8675_v7  ;;  %v8970_v12 = vld [vmem:[#allocation72_spill] sm:$0xff] }
 0x7f1   :  { %v5225_v39 = vadd.f32 %v6677_v16, %v3367_v10  ;;  %v3369_v20 = vpop.f32.mrb[53].mxu0  ;;  %v5050_v28 = vpop.f32.mrb[109].mxu1  ;;  %v3409_v23 = vadd.f32 %v3408_v49, %v8983_v32  ;;  %v8994_v10 = vld [vmem:[#allocation65_spill] sm:$0xff]  ;;  %v8995_v49 = vld [vmem:[#allocation66_spill] sm:$0xff] }
 0x7f2   :  { %v3371_v43 = vpop.f32.mrb[54].mxu0  ;;  %v3411_v61 = vpop.f32.mrb[110].mxu1  ;;  %v5227_v63 = vadd.f32 %v6681_v21, %v3369_v20  ;;  %v8996_v28 = vld [vmem:[#allocation22_spill] sm:$0xff] }
 0x7f3   :  { %v4163_v47 = vmul.f32 -1.442695, %v5225_v39  ;;  %v3372_v4 = vpop.f32.mrb[55].mxu0  ;;  %v5051_v40 = vpop.f32.mrb[111].mxu1  ;;  %3628 = vmatpush1.bf16.msra.mxu0 %v7665_v44  ;;  %5101 = vmatpush3.bf16.msra.mxu1 %v7848_v46  ;;  %v8972_v44 = vld [vmem:[#allocation74_spill] sm:$0xff]  ;;  %v8973_v46 = vld [vmem:[#allocation75_spill] sm:$0xff] }
 0x7f4   :  { %3629 = vmatprep.subr.bf16.mxu0 %v7670_v53  ;;  %5102 = vmatprep.subr.bf16.mxu1 %v8675_v7  ;;  %v4164_v57 = vmul.f32 -1.442695, %v5227_v63  ;;  %v8997_v43 = vld [vmem:[#allocation67_spill] sm:$0xff] }
 0x7f5   :  { %5589 = vpow2.f32 %v4163_v47  ;;  %v5447_v63 = vld [vmem:[#allocation11 + $0x20] sm:$0xff]  }
 0x7f6   :  { %5591 = vpow2.f32 %v4164_v57  ;;  %v5448_v57 = vld [vmem:[#allocation11 + $0x28] sm:$0xff]  }
 0x7f7   :  { %3630 = vmatpush1.bf16.msra.mxu0 %v7854_v30  ;;  %5103 = vmatpush3.bf16.msra.mxu1 %v7857_v60  ;;  %v8975_v30 = vld [vmem:[#allocation46_spill] sm:$0xff] }
 0x7f8   :  { %3631 = vmatprep.subr.bf16.mxu0 %v8970_v12  ;;  %5104 = vmatprep.subr.bf16.mxu1 %v8675_v7  ;;  %v5449_v12 = vld [vmem:[#allocation11 + $0x30] sm:$0xff]  }
 0x7fb   :  { %3632 = vmatpush1.bf16.msra.mxu0 %v8971_v6  ;;  %5105 = vmatpush3.bf16.msra.mxu1 %v8972_v44  ;;  %v5450_v6 = vld [vmem:[#allocation11 + $0x38] sm:$0xff]   ;;  %v5451_v44 = vld [vmem:[#allocation13] sm:$0xff]  }
 0x7fc   :  { %3633 = vmatprep.subr.bf16.mxu0 %v8973_v46  ;;  %5106 = vmatprep.subr.bf16.mxu1 %v8675_v7  ;;  %v5452_v46 = vld [vmem:[#allocation13 + $0x8] sm:$0xff]  }
 0x7ff   :  { %v5590_v53 = vpop.eup %5589  ;;  %3634 = vmatpush1.bf16.msra.mxu0 %v8974_v52  ;;  %5107 = vmatpush3.bf16.msra.mxu1 %v8975_v30  ;;  %v5454_v52 = vld [vmem:[#allocation13 + $0x18] sm:$0xff]   ;;  %v5455_v30 = vld [vmem:[#allocation13 + $0x20] sm:$0xff]  }
 0x800   :  { %v3418_v60 = vadd.f32 1.0, %v5590_v53  ;;  %3701 = vmatprep.subr.bf16.mxu0 %v8976_v3  ;;  %5112 = vmatprep.subr.bf16.mxu1 %v8675_v7  ;;  %v5592_v54 = vpop.eup %5591  ;;  %v5453_v53 = vld [vmem:[#allocation13 + $0x10] sm:$0xff]  }
 0x801   :  { %v3425_v29 = vadd.f32 1.0, %v5592_v54  ;;  %v5457_v3 = vld [vmem:[#allocation13 + $0x30] sm:$0xff]  }
 0x802   :  { %5593 = vrcp.f32 %v3418_v60  ;;  %3652 = vmatmul.mubr.bf16.vlgmr.msra.gmra.mrb[60].mxu0 %v5818_v26  ;;  %5109 = vmatmul.mubr.bf16.vlgmr.msra.gmra.mrb[120].mxu1 %v5818_v26  ;;  %v5456_v60 = vld [vmem:[#allocation13 + $0x28] sm:$0xff]   ;;  %v5458_v26 = vld [vmem:[#allocation13 + $0x38] sm:$0xff]  }
 0x803   :  { %3702 = vmatpush1.bf16.msra.mxu0 %v8977_v25  ;;  %5113 = vmatpush3.bf16.msra.mxu1 %v8978_v59  ;;  %5595 = vrcp.f32 %v3425_v29 }
 0x804   :  { %3703 = vmatprep.subr.bf16.mxu0 %v8979_v27  ;;  %5114 = vmatprep.subr.bf16.mxu1 %v8675_v7 }
 0x805   :  { %3733 = vmatprep.mubr.bf16.mxu0 %v8581_v1  ;;  %5128 = vmatprep.mubr.msk.bf16.mxu1 %vm6018_vm0, %v8675_v7 }
 0x807   :  { %3704 = vmatpush1.bf16.msra.mxu0 %v8980_v22  ;;  %5115 = vmatpush3.bf16.msra.mxu1 %v8981_v45 }
 0x808   :  { %3705 = vmatprep.subr.bf16.mxu0 %v8982_v55  ;;  %5116 = vmatprep.subr.bf16.mxu1 %v8675_v7 }
 0x80b   :  { %3706 = vmatpush1.bf16.msra.mxu0 %v8984_v38  ;;  %5117 = vmatpush3.bf16.msra.mxu1 %v8985_v15 }
 0x80c   :  { %v5594_v1 = vpop.eup %5593  ;;  %3707 = vmatprep.subr.bf16.mxu0 %v8986_v34  ;;  %5118 = vmatprep.subr.bf16.mxu1 %v8675_v7 }
 0x80d   :  { %v3428_v2 = vmul.f32 %v5594_v1, %v3409_v23  ;;  %v5596_v8 = vpop.eup %5595 }
 0x80e   :  { %v3431_v39 = vsub.f32 1.0, %v5596_v8  ;;  %v3433_v47 = vmul.f32 %v5596_v8, %v7964_v14  ;;  %v5445_v14 = vld [vmem:[#allocation11 + $0x10] sm:$0xff]  }
 0x80f   :  { %v3429_v41 = vadd.f32 %v3428_v2, %v3327_v5  ;;  %3708 = vmatpush1.bf16.msra.mxu0 %v8987_v42  ;;  %5119 = vmatpush3.bf16.msra.mxu1 %v8988_v31 }
 0x810   :  { %3709 = vmatprep.subr.bf16.mxu0 %v8989_v0  ;;  %5120 = vmatprep.subr.bf16.mxu1 %v8675_v7  ;;  %v8117_v11 = vpop.f32.mrb[112].mxu1 }
 0x811   :  { %5597 = vtanh.f32 %v3429_v41  ;;  %v5070_v13 = vpop.f32.mrb[113].mxu1  ;;  %v3511_v42 = vadd.f32 %v8117_v11, %v6638_v37 }
 0x812   :  { %v3513_v48 = vpop.f32.mrb[114].mxu1 }
 0x813   :  { %3710 = vmatpush1.bf16.msra.mxu0 %v8990_v24  ;;  %5121 = vmatpush3.bf16.msra.mxu1 %v8991_v62  ;;  %v5071_v9 = vpop.f32.mrb[115].mxu1 }
 0x814   :  { %3711 = vmatprep.subr.bf16.mxu0 %v8992_v51  ;;  %5122 = vmatprep.subr.bf16.mxu1 %v8675_v7 }
 0x817   :  { %3712 = vmatpush1.bf16.msra.mxu0 %v8993_v50  ;;  %5123 = vmatpush3.bf16.msra.mxu1 %v8994_v10 }
 0x818   :  { %3713 = vmatprep.subr.bf16.mxu0 %v8995_v49  ;;  %5124 = vmatprep.subr.bf16.mxu1 %v8675_v7 }
 0x81b   :  { %v5598_v20 = vpop.eup %5597  ;;  %3714 = vmatpush1.bf16.msra.mxu0 %v8996_v28  ;;  %5125 = vmatpush3.bf16.msra.mxu1 %v8997_v43 }
 0x81c   :  { %3715 = vmatprep.subr.bf16.mxu0 %v7959_v33  ;;  %5126 = vmatprep.subr.bf16.mxu1 %v8675_v7  ;;  %v3432_v61 = vmul.f32 %v5598_v20, %v3431_v39  ;;  %v5443_v33 = vld [vmem:[#allocation11] sm:$0xff]  }
 0x81e   :  { %v8132_v4 = vadd.f32 %v3433_v47, %v3432_v61 }
 0x81f   :  { %3716 = vmatpush1.bf16.msra.mxu0 %v7966_v36  ;;  %5127 = vmatpush3.bf16.msra.mxu1 %v7969_v56  ;;  %v5444_v36 = vld [vmem:[#allocation11 + $0x8] sm:$0xff]   ;;  %v5446_v56 = vld [vmem:[#allocation11 + $0x18] sm:$0xff]  }
 0x820   :  { %v3700_v40 = vpack.c.bf16 %v8132_v4, %v8132_v4  ;;  %5152 = vmatprep.subr.bf16.mxu1 %v8675_v7  ;;  %5132 = vmatprep.subr.bf16.mxu0 %v8675_v7 }
 0x822   :  { %3734 = vmatmul.mubr.bf16.vlgmr.msra.gmra.mrb[60].mxu0 %v3700_v40  ;;  %5129 = vmatmul.mubr.bf16.vlgmr.msra.gmra.mrb[124].mxu1 %v3700_v40 }
 0x823   :  { %5168 = vmatprep.mubr.msk.bf16.mxu1 %vm6018_vm0, %v8675_v7  ;;  %5148 = vmatprep.mubr.msk.bf16.mxu0 %vm6018_vm0, %v8675_v7 }
 0x824   :  { %5153 = vmatpush3.bf16.msra.mxu1 %v5443_v33  ;;  %5133 = vmatpush3.bf16.msra.mxu0 %v5451_v44 }
 0x825   :  { %5154 = vmatprep.subr.bf16.mxu1 %v8675_v7  ;;  %5134 = vmatprep.subr.bf16.mxu0 %v8675_v7 }
 0x828   :  { %5155 = vmatpush3.bf16.msra.mxu1 %v5444_v36  ;;  %5135 = vmatpush3.bf16.msra.mxu0 %v5452_v46 }
 0x829   :  { %5156 = vmatprep.subr.bf16.mxu1 %v8675_v7  ;;  %5136 = vmatprep.subr.bf16.mxu0 %v8675_v7 }
 0x82c   :  { %5157 = vmatpush3.bf16.msra.mxu1 %v5445_v14  ;;  %5137 = vmatpush3.bf16.msra.mxu0 %v5453_v53 }
 0x82d   :  { %5158 = vmatprep.subr.bf16.mxu1 %v8675_v7  ;;  %5138 = vmatprep.subr.bf16.mxu0 %v8675_v7 }
 0x830   :  { %5159 = vmatpush3.bf16.msra.mxu1 %v5446_v56  ;;  %5139 = vmatpush3.bf16.msra.mxu0 %v5454_v52 }
 0x831   :  { %5160 = vmatprep.subr.bf16.mxu1 %v8675_v7  ;;  %5140 = vmatprep.subr.bf16.mxu0 %v8675_v7 }
 0x834   :  { %5161 = vmatpush3.bf16.msra.mxu1 %v5447_v63  ;;  %5141 = vmatpush3.bf16.msra.mxu0 %v5455_v30 }
 0x835   :  { %5162 = vmatprep.subr.bf16.mxu1 %v8675_v7  ;;  %5142 = vmatprep.subr.bf16.mxu0 %v8675_v7 }
 0x838   :  { %5163 = vmatpush3.bf16.msra.mxu1 %v5448_v57  ;;  %5143 = vmatpush3.bf16.msra.mxu0 %v5456_v60 }
 0x839   :  { %5164 = vmatprep.subr.bf16.mxu1 %v8675_v7  ;;  %5144 = vmatprep.subr.bf16.mxu0 %v8675_v7 }
 0x83c   :  { %5165 = vmatpush3.bf16.msra.mxu1 %v5449_v12  ;;  %5145 = vmatpush3.bf16.msra.mxu0 %v5457_v3 }
 0x83d   :  { %5166 = vmatprep.subr.bf16.mxu1 %v8675_v7  ;;  %5146 = vmatprep.subr.bf16.mxu0 %v8675_v7 }
 0x840   :  { %5167 = vmatpush3.bf16.msra.mxu1 %v5450_v6  ;;  %5147 = vmatpush3.bf16.msra.mxu0 %v5458_v26 }
 0x8b5   :  { %v3551_v25 = vpop.f32.mrb[56].mxu0  ;;  %v3592_v59 = vpop.f32.mrb[116].mxu1 }
 0x8b6   :  { %v5229_v27 = vadd.f32 %v6626_v17, %v3551_v25  ;;  %v3553_v54 = vpop.f32.mrb[57].mxu0  ;;  %v5090_v22 = vpop.f32.mrb[117].mxu1  ;;  %v3593_v41 = vadd.f32 %v3592_v59, %v6635_v35 }
 0x8b7   :  { %v3555_v45 = vpop.f32.mrb[58].mxu0  ;;  %v3595_v55 = vpop.f32.mrb[118].mxu1  ;;  %v5231_v15 = vadd.f32 %v6628_v19, %v3553_v54 }
 0x8b8   :  { %v4165_v29 = vmul.f32 -1.442695, %v5229_v27  ;;  %v3556_v23 = vpop.f32.mrb[59].mxu0  ;;  %v5091_v38 = vpop.f32.mrb[119].mxu1 }
 0x8b9   :  { %v4166_v1 = vmul.f32 -1.442695, %v5231_v15 }
 0x8ba   :  { %5599 = vpow2.f32 %v4165_v29 }
 0x8bb   :  { %5601 = vpow2.f32 %v4166_v1 }
 0x8c4   :  { %v5600_v34 = vpop.eup %5599 }
 0x8c5   :  { %v3602_v5 = vadd.f32 1.0, %v5600_v34  ;;  %v5602_v7 = vpop.eup %5601 }
 0x8c6   :  { %v3609_v2 = vadd.f32 1.0, %v5602_v7 }
 0x8c7   :  { %5603 = vrcp.f32 %v3602_v5 }
 0x8c8   :  { %5605 = vrcp.f32 %v3609_v2 }
 0x8d1   :  { %v5604_v17 = vpop.eup %5603 }
 0x8d2   :  { %v3612_v31 = vmul.f32 %v5604_v17, %v3593_v41  ;;  %v5606_v62 = vpop.eup %5605 }
 0x8d3   :  { %v3615_v9 = vsub.f32 1.0, %v5606_v62  ;;  %v3617_v50 = vmul.f32 %v5606_v62, %v8054_v58 }
 0x8d4   :  { %v3613_v0 = vadd.f32 %v3612_v31, %v3511_v42 }
 0x8d5   :  { %v3694_v13 = vpop.f32.mrb[120].mxu1 }
 0x8d6   :  { %5607 = vtanh.f32 %v3613_v0  ;;  %v5110_v19 = vpop.f32.mrb[121].mxu1  ;;  %v3695_v12 = vadd.f32 %v3694_v13, %v6719_v18  ;;  %v4185_v18 = vld [vmem:[%s8195_s11] ss:$0 sm:$0xff] }
 0x8d7   :  { %v3697_v48 = vpop.f32.mrb[122].mxu1 }
 0x8d8   :  { %v5111_v24 = vpop.f32.mrb[123].mxu1 }
 0x8e0   :  { %v5608_v51 = vpop.eup %5607 }
 0x8e1   :  { %v3616_v8 = vmul.f32 %v5608_v51, %v3615_v9 }
 0x8e3   :  { %v3618_v10 = vadd.f32 %v3617_v50, %v3616_v8 }
 0x8e5   :  { %v3803_v35 = vpack.c.bf16 %v3618_v10, %v3618_v10 }
 0x8e7   :  { %5169 = vmatmul.mubr.bf16.vlgmr.msra.gmra.mrb[128].mxu1 %v3803_v35 }
 0x8f5   :  { %v3735_v49 = vpop.f32.mrb[60].mxu0  ;;  %v3776_v39 = vpop.f32.mrb[124].mxu1 }
 0x8f6   :  { %v5233_v37 = vadd.f32 %v6677_v16, %v3735_v49  ;;  %v3737_v11 = vpop.f32.mrb[61].mxu0  ;;  %v5130_v20 = vpop.f32.mrb[125].mxu1  ;;  %v3777_v57 = vadd.f32 %v3776_v39, %v8983_v32 }
 0x8f7   :  { %v3739_v28 = vpop.f32.mrb[62].mxu0  ;;  %v3779_v43 = vpop.f32.mrb[126].mxu1  ;;  %v5235_v33 = vadd.f32 %v6681_v21, %v3737_v11 }
 0x8f8   :  { %v4167_v61 = vmul.f32 -1.442695, %v5233_v37  ;;  %v3740_v47 = vpop.f32.mrb[63].mxu0  ;;  %v5131_v40 = vpop.f32.mrb[127].mxu1 }
 0x8f9   :  { %v4168_v36 = vmul.f32 -1.442695, %v5235_v33 }
 0x8fa   :  { %5609 = vpow2.f32 %v4167_v61 }
 0x8fb   :  { %5611 = vpow2.f32 %v4168_v36 }
 0x904   :  { %v5610_v58 = vpop.eup %5609 }
 0x905   :  { %v3786_v14 = vadd.f32 1.0, %v5610_v58  ;;  %v5612_v56 = vpop.eup %5611 }
 0x906   :  { %v3793_v63 = vadd.f32 1.0, %v5612_v56 }
 0x907   :  { %5613 = vrcp.f32 %v3786_v14 }
 0x908   :  { %5615 = vrcp.f32 %v3793_v63 }
 0x911   :  { %v5614_v16 = vpop.eup %5613 }
 0x912   :  { %v3796_v6 = vmul.f32 %v5614_v16, %v3777_v57  ;;  %v5616_v46 = vpop.eup %5615 }
 0x913   :  { %v3799_v53 = vsub.f32 1.0, %v5616_v46  ;;  %v3801_v30 = vmul.f32 %v5616_v46, %v8132_v4 }
 0x914   :  { %v3797_v44 = vadd.f32 %v3796_v6, %v3695_v12 }
 0x916   :  { %5617 = vtanh.f32 %v3797_v44 }
 0x920   :  { %v5618_v21 = vpop.eup %5617 }
 0x921   :  { %v3800_v52 = vmul.f32 %v5618_v21, %v3799_v53 }
 0x923   :  { %v3802_v60 = vadd.f32 %v3801_v30, %v3800_v52 }
 0x925   :  { %v3820_v3 = vpack.c.bf16 %v3802_v60, %v3802_v60 }
 0x927   :  { %5149 = vmatmul.mubr.bf16.vlgmr.msra.gmra.mrb[64].mxu0 %v3820_v3 }
 0x9ba   :  { %v4007_v26 = vpop.f32.mrb[128].mxu1 }
 0x9bb   :  { %v5170_v25 = vpop.f32.mrb[129].mxu1 }
 0x9bc   :  { %v4010_v59 = vpop.f32.mrb[130].mxu1 }
 0x9bd   :  { %v5171_v32 = vpop.f32.mrb[131].mxu1 }
 0x9fa   :  { %v3919_v27 = vpop.f32.mrb[64].mxu0 }
 0x9fb   :  { %v4008_v54 = vadd.f32 %v4007_v26, %v3919_v27  ;;  %v5150_v22 = vpop.f32.mrb[65].mxu0 }
 0x9fc   :  { %v3922_v45 = vpop.f32.mrb[66].mxu0 }
 0x9fd   :  { %v4020_v55 = vadd.f32 %v4185_v18, %v4008_v54  ;;  %v5151_v29 = vpop.f32.mrb[67].mxu0 }
 0x9ff   :  { %5619 = vtanh.f32 %v4020_v55 }
 0xa09   :  { %v5620_v4 = vpop.eup %5619 }
 0xa0a   :  { %4022 = vst [vmem:[#allocation14] sm:$0xff] %v5620_v4 }
 0xa0b   :  { %5984 = shalt.err (!%p5981_p4)
}
 0xa0c   :  { %s5985_s27 = scalar_lea.hbm %s8196_s12, 128 }
 0xa0d   :  { %p5986_p5 = scmp.ne.s32.totalorder %s8196_s12, %s5985_s27  ;;  %p5989_p6 = scmp.lt.u32.totalorder %s5985_s27, %s8196_s12 }
 0xa0f   :  { %p5991_p7 = pnand %p5989_p6, %p5986_p5 }
 0xa11   :  { %5994 = shalt.err (!%p5991_p7)
}
 0xa12   :  { %4032 = dma.vmem_to_hbm [thread:$0]  %s4030_s21, 128, %s8196_s12, [#allocation4]  }
 0xa13   :  { %6003 = dma.done.wait [#allocation4], 128  }
 0xa14   :  { %6004 = vsyncadd [#allocation4], 4294967168 }
 0xa15   :  { %4036 = vsyncpa [#allocation3], 1 }
 0xa16   :  { %4037 = vsyncpa [#allocation6], 1 }
 0xa17   :  { %4038 = vsyncpa [#allocation9], 1 }
 0xa18   :  { %4039 = vsyncpa [#allocation12], 1 }
 0xa19   :  { %4040 = vsyncpa [#allocation4], 1 }

</bundles_post_ra>
